<compile_context>
chip_gen: v7x
topology: tpu7x:2x2x1
jax: 0.10.0
libtpu: 0.0.40
codegen_flags: <defaults>
</compile_context>

<pallas_src>
import functools

import numpy as np
import jax
import jax.numpy as jnp
from jax import lax
from jax.experimental import pallas as pl
from jax.experimental.pallas import tpu as pltpu


# ----------------------------------------------------------------------------
# Gaussian window -> conv matrices (reflect padding folded in)
# ----------------------------------------------------------------------------
def _gaussian_taps(kernel_size: int, sigma: float) -> np.ndarray:
    """1-D taps; outer(taps, taps) == the reference's normalized 2-D kernel."""
    center = kernel_size // 2
    g = np.arange(kernel_size, dtype=np.float64) - center
    w = np.exp(-0.5 * g ** 2 / sigma ** 2)
    return w / w.sum()


def _conv_matrix(n_in: int, n_out: int, taps: np.ndarray, pad: int,
                 reflect: bool) -> np.ndarray:
    """M (n_in, n_out) with  out[o] = sum_k taps[k] * x[src(o + k - pad)].

    `src` applies PyTorch-style reflect padding when `reflect` is True, i.e.
    the padding operator is folded into the convolution matrix.
    """
    M = np.zeros((n_in, n_out), dtype=np.float64)
    for o in range(n_out):
        for k in range(len(taps)):
            t = o + k - pad
            if reflect:
                if t < 0:
                    t = -t
                elif t >= n_in:
                    t = 2 * (n_in - 1) - t
            M[t, o] += taps[k]
    return M


def _pow(v, p):
    return v if p == 1 else v ** p


# ----------------------------------------------------------------------------
# Kernel
# ----------------------------------------------------------------------------
def _ssim_kernel(x_ref, y_ref, a_ref, b_ref, out_ref, r_scr, *,
                 c1, c2, c3, eps, alpha, beta, gamma, emit_map, auto_norm):
    """Process one block of `bt` images.

    x_ref, y_ref : (bt, H, W)  raw inputs (original dtype, upcast in-kernel)
    a_ref        : (Ho, H)     column-pass Gaussian (reflect pad folded in)
    b_ref        : (W, Wo)     row-pass Gaussian (reflect pad folded in)
    out_ref      : (bt, Ho, Wo) SSIM map  or  (bt, 1, 1) per-image partial sums
    r_scr        : (bt, H, 5*Wo) VMEM scratch holding the 5 row-pass results
                   lane-concatenated: [mu_x | mu_y | E[x^2] | E[y^2] | E[xy]]
    """
    bt, H, W = x_ref.shape
    Wo = r_scr.shape[2] // 5

    x = x_ref[...].astype(jnp.float32)
    y = y_ref[...].astype(jnp.float32)

    if auto_norm:
        # Per-image normalization computed from the already-resident block
        # (no extra HBM pass).  Matches the reference's (x - min) / (d + eps).
        xy_max = jnp.maximum(jnp.max(x, axis=2, keepdims=True),
                             jnp.max(y, axis=2, keepdims=True))
        xy_max = jnp.max(xy_max, axis=1, keepdims=True)          # (bt, 1, 1)
        xy_min = jnp.minimum(jnp.min(x, axis=2, keepdims=True),
                             jnp.min(y, axis=2, keepdims=True))
        xy_min = jnp.min(xy_min, axis=1, keepdims=True)          # (bt, 1, 1)
        inv_d = 1.0 / (xy_max - xy_min + eps)
        x = (x - xy_min) * inv_d
        y = (y - xy_min) * inv_d

    A = a_ref[...]     # (Ho, H) f32
    Bm = b_ref[...]    # (W, Wo) f32

    # ---- Row (W) pass: 5 big matmuls per block, M = bt*H -------------------
    x2d = x.reshape(bt * H, W)
    y2d = y.reshape(bt * H, W)
    stats = (x2d, y2d, x2d * x2d, y2d * y2d, x2d * y2d)   # hoisted products
    for s, st in enumerate(stats):
        r = jnp.dot(st, Bm, preferred_element_type=jnp.float32)  # (bt*H, Wo)
        r_scr[:, :, s * Wo:(s + 1) * Wo] = r.reshape(bt, H, Wo)

    # ---- Column (H) pass + SSIM formula: one matmul per image --------------
    def body(i, carry):
        Ri = r_scr[i]                                              # (H, 5*Wo)
        Ci = jnp.dot(A, Ri, preferred_element_type=jnp.float32)   # (Ho, 5*Wo)

        mu_x = Ci[:, 0 * Wo:1 * Wo]
        mu_y = Ci[:, 1 * Wo:2 * Wo]
        ex2 = Ci[:, 2 * Wo:3 * Wo]
        ey2 = Ci[:, 3 * Wo:4 * Wo]
        exy = Ci[:, 4 * Wo:5 * Wo]

        mu_x2 = mu_x * mu_x
        mu_y2 = mu_y * mu_y
        mu_xy = mu_x * mu_y
        luminance = (2.0 * mu_xy + c1) / (mu_x2 + mu_y2 + c1)

        sigma_x2 = jnp.maximum(ex2 - mu_x2, eps)
        sigma_y2 = jnp.maximum(ey2 - mu_y2, eps)
        sigma_x = jnp.sqrt(sigma_x2)
        sigma_y = jnp.sqrt(sigma_y2)
        contrast = (2.0 * sigma_x * sigma_y + c2) / (sigma_x2 + sigma_y2 + c2)

        sigma_xy = exy - mu_xy
        structure = (sigma_xy + c3) / (sigma_x * sigma_y + c3)

        ssim = (_pow(luminance, alpha) * _pow(contrast, beta)
                * _pow(structure, gamma))

        if emit_map:
            out_ref[i] = ssim.astype(out_ref.dtype)
        else:
            ps = jnp.sum(ssim, axis=1, keepdims=True)   # (Ho, 1)
            ps = jnp.sum(ps, axis=0, keepdims=True)     # (1, 1)
            out_ref[i] = ps
        return carry

    if bt <= 8:
        # Short fixed trip-count: unroll for LLO scheduler visibility.
        for i in range(bt):
            body(i, 0)
    else:
        lax.fori_loop(0, bt, body, 0)


# ----------------------------------------------------------------------------
# Hardware-aware block sizing
# ----------------------------------------------------------------------------
def _device_kind() -> str:
    try:
        return jax.devices()[0].device_kind.lower()
    except Exception:
        return ""


def _vmem_capacity_bytes() -> int:
    try:
        cap = getattr(pltpu.get_tpu_info(), "vmem_capacity_bytes", None)
        if cap:
            return int(cap)
    except Exception:
        pass
    kind = _device_kind()
    return (64 << 20) if ("v7" in kind or "7x" in kind) else (128 << 20)


def _num_tensorcores() -> int:
    kind = _device_kind()
    return 2 if ("v7" in kind or "7x" in kind) else 1


def _pick_batch_tile(B, H, W, Ho, Wo, in_isz, out_isz, emit_map,
                     budget, num_tc):
    """Largest divisor of B whose estimated VMEM footprint fits the budget."""
    per_img = (4 * H * W * in_isz                    # x, y double-buffered
               + 5 * H * Wo * 4                      # row-pass scratch
               + 8 * H * W * 4                       # in-kernel f32 temporaries
               + 2 * (Ho * Wo if emit_map else 1) * out_isz)
    fixed = 2 * (Ho * H + W * Wo) * 4                # A, Bm (double-buffered)
    max_bt = max(1, (budget - fixed) // max(1, per_img))
    limit = B if num_tc < 2 else max(1, B // 2)      # only split for >= 2 TCs
    max_bt = min(max_bt, limit, B)
    for bt in range(int(max_bt), 0, -1):
        if B % bt == 0:
            return bt
    return 1


# ----------------------------------------------------------------------------
# Public wrapper
# ----------------------------------------------------------------------------
def structural_similarity_index(
    x, y, *, reduction="mean", alpha=1, beta=1, gamma=1, kernel_size=11,
    sigma=1.5, k1=0.01, k2=0.03, eps=1e-8, padding="same", dynamic_range=None,
):
    assert reduction in ("none", "mean", "sum")
    assert 1 <= kernel_size and kernel_size % 2 == 1
    assert sigma > 0 and 0 < k1 < 1 and 0 < k2 < 1 and eps >= 0
    assert x.shape == y.shape

    org_shape = x.shape
    H, W = int(x.shape[-2]), int(x.shape[-1])
    if (not jnp.issubdtype(x.dtype, jnp.floating)) or jnp.dtype(x.dtype).itemsize > 4:
        x = x.astype(jnp.float32)
        y = y.astype(jnp.float32)
    dt = x.dtype
    x = x.reshape(-1, H, W)
    y = y.reshape(-1, H, W)
    B = int(x.shape[0])

    auto_norm = dynamic_range is None
    L = 1.0 if auto_norm else float(dynamic_range)

    pad = kernel_size // 2
    if padding == "same":
        assert pad < H and pad < W, "reflect padding requires kernel_size//2 < H, W"
        Ho, Wo = H, W
        reflect = True
    elif padding == "valid":
        assert H >= kernel_size and W >= kernel_size
        Ho, Wo = H - kernel_size + 1, W - kernel_size + 1
        reflect = False
        pad = 0
    else:
        raise ValueError(f"padding {padding} is not supported.")

    taps = _gaussian_taps(kernel_size, sigma)
    # conv2d(reflect_pad(X), G) == A @ X @ Bm  with  G = outer(taps, taps).
    A = jnp.asarray(_conv_matrix(H, Ho, taps, pad, reflect).T, jnp.float32)   # (Ho, H)
    Bm = jnp.asarray(_conv_matrix(W, Wo, taps, pad, reflect), jnp.float32)    # (W, Wo)

    C1 = (k1 * L) ** 2
    C2 = (k2 * L) ** 2
    C3 = 0.5 * C2

    emit_map = reduction == "none"
    in_isz = jnp.dtype(dt).itemsize
    out_isz = in_isz if emit_map else 4

    vmem_cap = _vmem_capacity_bytes()
    vmem_limit = max(16 << 20, min((vmem_cap * 3) // 4, vmem_cap - (8 << 20)))
    num_tc = _num_tensorcores()
    bt = _pick_batch_tile(B, H, W, Ho, Wo, in_isz, out_isz, emit_map,
                          budget=vmem_limit // 2, num_tc=num_tc)
    grid = (B // bt,)

    kernel_fn = functools.partial(
        _ssim_kernel, c1=float(C1), c2=float(C2), c3=float(C3),
        eps=float(eps), alpha=alpha, beta=beta, gamma=gamma,
        emit_map=emit_map, auto_norm=auto_norm)

    if emit_map:
        out_shape = jax.ShapeDtypeStruct((B, Ho, Wo), dt)
        out_spec = pl.BlockSpec((bt, Ho, Wo), lambda b: (b, 0, 0))
    else:
        # Only B floats of partial sums ever reach HBM.
        out_shape = jax.ShapeDtypeStruct((B, 1, 1), jnp.float32)
        out_spec = pl.BlockSpec((bt, 1, 1), lambda b: (b, 0, 0))

    grid_spec = pltpu.PrefetchScalarGridSpec(
        num_scalar_prefetch=0,
        grid=grid,
        in_specs=[
            pl.BlockSpec((bt, H, W), lambda b: (b, 0, 0)),
            pl.BlockSpec((bt, H, W), lambda b: (b, 0, 0)),
            pl.BlockSpec((Ho, H), lambda b: (0, 0)),
            pl.BlockSpec((W, Wo), lambda b: (0, 0)),
        ],
        out_specs=out_spec,
        scratch_shapes=[pltpu.VMEM((bt, H, 5 * Wo), jnp.float32)],
    )

    out = pl.pallas_call(
        kernel_fn,
        out_shape=out_shape,
        grid_spec=grid_spec,
        compiler_params=pltpu.CompilerParams(
            dimension_semantics=("parallel",),
            vmem_limit_bytes=int(vmem_limit)),
    )(x, y, A, Bm)

    if reduction == "none":
        return out.reshape(*org_shape[:-2], Ho, Wo)
    total = jnp.sum(out)
    if reduction == "sum":
        return total.astype(dt)
    return (total / (B * Ho * Wo)).astype(dt)   # mean


# ----------------------------------------------------------------------------
# Demo / self-check
# ----------------------------------------------------------------------------
if __name__ == "__main__":
    key = jax.random.PRNGKey(0)
    kx, ky = jax.random.split(key)
    # (..., N, D) = (2, 4, 16, 16): batch=2, channels=4, spatial 16x16
    x = jax.random.normal(kx, (2, 4, 16, 16), dtype=jnp.float32)
    y = jax.random.normal(ky, (2, 4, 16, 16), dtype=jnp.float32)

    out = structural_similarity_index(x, y)      # default reduction='mean'
    out = jax.block_until_ready(out)
    assert out.shape == ()
    assert bool(jnp.isfinite(out))

    m = jax.block_until_ready(
        structural_similarity_index(x, y, reduction="none"))
    assert m.shape == (2, 4, 16, 16)
    assert bool(jnp.all(jnp.isfinite(m)))

    # The fused partial-sum reduction must agree with the full-map mean/sum.
    assert bool(jnp.allclose(jnp.mean(m), out, rtol=1e-3, atol=1e-3))
    s = jax.block_until_ready(
        structural_similarity_index(x, y, reduction="sum"))
    assert bool(jnp.allclose(jnp.sum(m), s, rtol=1e-3, atol=1e-3))

    # Fixed dynamic-range path (no in-kernel normalization).
    d = jax.block_until_ready(
        structural_similarity_index(x, y, dynamic_range=2.0))
    assert bool(jnp.isfinite(d))

    print("KERNEL_OK")
</pallas_src>

<mosaic_0001>
module attributes {stable_mosaic.version = 11 : i64} {
  func.func @_ssim_kernel(%arg0: i32, %arg1: memref<8x16x16xf32, #tpu.memory_space<vmem>>, %arg2: memref<8x16x16xf32, #tpu.memory_space<vmem>>, %arg3: memref<16x16xf32, #tpu.memory_space<vmem>>, %arg4: memref<16x16xf32, #tpu.memory_space<vmem>>, %arg5: memref<8x1x1xf32, #tpu.memory_space<vmem>>, %arg6: memref<8x16x80xf32, #tpu.memory_space<vmem>>) attributes {dimension_semantics = [#tpu.dimension_semantics<parallel>], iteration_bounds = array<i64: 1>, scalar_prefetch = 0 : i64, scratch_operands = 1 : i64, tpu.core_type = #tpu.core_type<tc>, window_params = [{transform_indices = @transform_0, window_bounds = array<i64: 8, 16, 16>}, {transform_indices = @transform_1, window_bounds = array<i64: 8, 16, 16>}, {pipeline_mode = #tpu.pipeline_mode<synchronous>, transform_indices = @transform_2, window_bounds = array<i64: 16, 16>}, {pipeline_mode = #tpu.pipeline_mode<synchronous>, transform_indices = @transform_3, window_bounds = array<i64: 16, 16>}, {transform_indices = @transform_4, window_bounds = array<i64: 8, 1, 1>}]} {
    %c0 = arith.constant 0 : index
    %c0_0 = arith.constant 0 : index
    %c0_1 = arith.constant 0 : index
    %0 = vector.load %arg1[%c0, %c0_0, %c0_1] : memref<8x16x16xf32, #tpu.memory_space<vmem>>, vector<8x16x16xf32>
    %c0_2 = arith.constant 0 : index
    %c0_3 = arith.constant 0 : index
    %c0_4 = arith.constant 0 : index
    %1 = vector.load %arg2[%c0_2, %c0_3, %c0_4] : memref<8x16x16xf32, #tpu.memory_space<vmem>>, vector<8x16x16xf32>
    %cst = arith.constant dense<0xFF800000> : vector<8x16xf32>
    %2 = vector.multi_reduction <maximumf>, %0, %cst [2] : vector<8x16x16xf32> to vector<8x16xf32>
    %3 = vector.shape_cast %2 : vector<8x16xf32> to vector<8x16x1xf32>
    %cst_5 = arith.constant dense<0xFF800000> : vector<8x16xf32>
    %4 = vector.multi_reduction <maximumf>, %1, %cst_5 [2] : vector<8x16x16xf32> to vector<8x16xf32>
    %5 = vector.shape_cast %4 : vector<8x16xf32> to vector<8x16x1xf32>
    %6 = arith.maximumf %3, %5 : vector<8x16x1xf32>
    %cst_6 = arith.constant dense<0xFF800000> : vector<8x1xf32>
    %7 = vector.multi_reduction <maximumf>, %6, %cst_6 [1] : vector<8x16x1xf32> to vector<8x1xf32>
    %8 = vector.shape_cast %7 : vector<8x1xf32> to vector<8x1x1xf32>
    %cst_7 = arith.constant dense<0x7F800000> : vector<8x16xf32>
    %9 = vector.multi_reduction <minimumf>, %0, %cst_7 [2] : vector<8x16x16xf32> to vector<8x16xf32>
    %10 = vector.shape_cast %9 : vector<8x16xf32> to vector<8x16x1xf32>
    %cst_8 = arith.constant dense<0x7F800000> : vector<8x16xf32>
    %11 = vector.multi_reduction <minimumf>, %1, %cst_8 [2] : vector<8x16x16xf32> to vector<8x16xf32>
    %12 = vector.shape_cast %11 : vector<8x16xf32> to vector<8x16x1xf32>
    %13 = arith.minimumf %10, %12 : vector<8x16x1xf32>
    %cst_9 = arith.constant dense<0x7F800000> : vector<8x1xf32>
    %14 = vector.multi_reduction <minimumf>, %13, %cst_9 [1] : vector<8x16x1xf32> to vector<8x1xf32>
    %15 = vector.shape_cast %14 : vector<8x1xf32> to vector<8x1x1xf32>
    %16 = arith.subf %8, %15 : vector<8x1x1xf32>
    %cst_10 = arith.constant 9.99999993E-9 : f32
    %17 = vector.broadcast %cst_10 : f32 to vector<8x1x1xf32>
    %18 = arith.addf %16, %17 : vector<8x1x1xf32>
    %cst_11 = arith.constant 1.000000e+00 : f32
    %19 = vector.broadcast %cst_11 : f32 to vector<8x1x1xf32>
    %20 = arith.divf %19, %18 : vector<8x1x1xf32>
    %21 = vector.broadcast %15 : vector<8x1x1xf32> to vector<8x16x16xf32>
    %22 = arith.subf %0, %21 : vector<8x16x16xf32>
    %23 = vector.broadcast %20 : vector<8x1x1xf32> to vector<8x16x16xf32>
    %24 = arith.mulf %22, %23 : vector<8x16x16xf32>
    %25 = vector.broadcast %15 : vector<8x1x1xf32> to vector<8x16x16xf32>
    %26 = arith.subf %1, %25 : vector<8x16x16xf32>
    %27 = vector.broadcast %20 : vector<8x1x1xf32> to vector<8x16x16xf32>
    %28 = arith.mulf %26, %27 : vector<8x16x16xf32>
    %c0_12 = arith.constant 0 : index
    %c0_13 = arith.constant 0 : index
    %29 = vector.load %arg3[%c0_12, %c0_13] : memref<16x16xf32, #tpu.memory_space<vmem>>, vector<16x16xf32>
    %c0_14 = arith.constant 0 : index
    %c0_15 = arith.constant 0 : index
    %30 = vector.load %arg4[%c0_14, %c0_15] : memref<16x16xf32, #tpu.memory_space<vmem>>, vector<16x16xf32>
    %31 = vector.shape_cast %24 : vector<8x16x16xf32> to vector<128x16xf32>
    %32 = vector.shape_cast %28 : vector<8x16x16xf32> to vector<128x16xf32>
    %33 = arith.mulf %31, %31 : vector<128x16xf32>
    %34 = arith.mulf %32, %32 : vector<128x16xf32>
    %35 = arith.mulf %31, %32 : vector<128x16xf32>
    %cst_16 = arith.constant dense<0.000000e+00> : vector<128x16xf32>
    %36 = tpu.matmul %31, %30, %cst_16 {dimension_numbers = #tpu.dot_dimension_numbers<[1], [0], [0], [1], [0, 0, 1, 1], [], []>} : vector<128x16xf32>, vector<16x16xf32>, vector<128x16xf32> -> vector<128x16xf32>
    %37 = vector.shape_cast %36 : vector<128x16xf32> to vector<8x16x16xf32>
    %c0_17 = arith.constant 0 : index
    %c0_18 = arith.constant 0 : index
    %c0_19 = arith.constant 0 : index
    %38 = vector.load %arg6[%c0_17, %c0_18, %c0_19] : memref<8x16x80xf32, #tpu.memory_space<vmem>>, vector<8x16x16xf32>
    tpu.vector_store %arg6[%c0_17, %c0_18, %c0_19], %37 {strides = array<i32>} : memref<8x16x80xf32, #tpu.memory_space<vmem>>, vector<8x16x16xf32>,
    %cst_20 = arith.constant dense<0.000000e+00> : vector<128x16xf32>
    %39 = tpu.matmul %32, %30, %cst_20 {dimension_numbers = #tpu.dot_dimension_numbers<[1], [0], [0], [1], [0, 0, 1, 1], [], []>} : vector<128x16xf32>, vector<16x16xf32>, vector<128x16xf32> -> vector<128x16xf32>
    %40 = vector.shape_cast %39 : vector<128x16xf32> to vector<8x16x16xf32>
    %c0_21 = arith.constant 0 : index
    %c0_22 = arith.constant 0 : index
    %c16 = arith.constant 16 : index
    %41 = vector.load %arg6[%c0_21, %c0_22, %c16] : memref<8x16x80xf32, #tpu.memory_space<vmem>>, vector<8x16x16xf32>
    tpu.vector_store %arg6[%c0_21, %c0_22, %c16], %40 {strides = array<i32>} : memref<8x16x80xf32, #tpu.memory_space<vmem>>, vector<8x16x16xf32>,
    %cst_23 = arith.constant dense<0.000000e+00> : vector<128x16xf32>
    %42 = tpu.matmul %33, %30, %cst_23 {dimension_numbers = #tpu.dot_dimension_numbers<[1], [0], [0], [1], [0, 0, 1, 1], [], []>} : vector<128x16xf32>, vector<16x16xf32>, vector<128x16xf32> -> vector<128x16xf32>
    %43 = vector.shape_cast %42 : vector<128x16xf32> to vector<8x16x16xf32>
    %c0_24 = arith.constant 0 : index
    %c0_25 = arith.constant 0 : index
    %c32 = arith.constant 32 : index
    %44 = vector.load %arg6[%c0_24, %c0_25, %c32] : memref<8x16x80xf32, #tpu.memory_space<vmem>>, vector<8x16x16xf32>
    tpu.vector_store %arg6[%c0_24, %c0_25, %c32], %43 {strides = array<i32>} : memref<8x16x80xf32, #tpu.memory_space<vmem>>, vector<8x16x16xf32>,
    %cst_26 = arith.constant dense<0.000000e+00> : vector<128x16xf32>
    %45 = tpu.matmul %34, %30, %cst_26 {dimension_numbers = #tpu.dot_dimension_numbers<[1], [0], [0], [1], [0, 0, 1, 1], [], []>} : vector<128x16xf32>, vector<16x16xf32>, vector<128x16xf32> -> vector<128x16xf32>
    %46 = vector.shape_cast %45 : vector<128x16xf32> to vector<8x16x16xf32>
    %c0_27 = arith.constant 0 : index
    %c0_28 = arith.constant 0 : index
    %c48 = arith.constant 48 : index
    %47 = vector.load %arg6[%c0_27, %c0_28, %c48] : memref<8x16x80xf32, #tpu.memory_space<vmem>>, vector<8x16x16xf32>
    tpu.vector_store %arg6[%c0_27, %c0_28, %c48], %46 {strides = array<i32>} : memref<8x16x80xf32, #tpu.memory_space<vmem>>, vector<8x16x16xf32>,
    %cst_29 = arith.constant dense<0.000000e+00> : vector<128x16xf32>
    %48 = tpu.matmul %35, %30, %cst_29 {dimension_numbers = #tpu.dot_dimension_numbers<[1], [0], [0], [1], [0, 0, 1, 1], [], []>} : vector<128x16xf32>, vector<16x16xf32>, vector<128x16xf32> -> vector<128x16xf32>
    %49 = vector.shape_cast %48 : vector<128x16xf32> to vector<8x16x16xf32>
    %c0_30 = arith.constant 0 : index
    %c0_31 = arith.constant 0 : index
    %c64 = arith.constant 64 : index
    %50 = vector.load %arg6[%c0_30, %c0_31, %c64] : memref<8x16x80xf32, #tpu.memory_space<vmem>>, vector<8x16x16xf32>
    tpu.vector_store %arg6[%c0_30, %c0_31, %c64], %49 {strides = array<i32>} : memref<8x16x80xf32, #tpu.memory_space<vmem>>, vector<8x16x16xf32>,
    %c0_32 = arith.constant 0 : index
    %c0_33 = arith.constant 0 : index
    %c0_34 = arith.constant 0 : index
    %51 = vector.load %arg6[%c0_32, %c0_33, %c0_34] : memref<8x16x80xf32, #tpu.memory_space<vmem>>, vector<1x16x80xf32>
    %52 = vector.shape_cast %51 : vector<1x16x80xf32> to vector<16x80xf32>
    %cst_35 = arith.constant dense<0.000000e+00> : vector<16x80xf32>
    %53 = tpu.matmul %29, %52, %cst_35 {dimension_numbers = #tpu.dot_dimension_numbers<[1], [0], [0], [1], [0, 0, 1, 1], [], []>} : vector<16x16xf32>, vector<16x80xf32>, vector<16x80xf32> -> vector<16x80xf32>
    %54 = vector.extract_strided_slice %53 {offsets = [0, 0], sizes = [16, 16], strides = [1, 1]} : vector<16x80xf32> to vector<16x16xf32>
    %55 = vector.extract_strided_slice %53 {offsets = [0, 16], sizes = [16, 16], strides = [1, 1]} : vector<16x80xf32> to vector<16x16xf32>
    %56 = vector.extract_strided_slice %53 {offsets = [0, 32], sizes = [16, 16], strides = [1, 1]} : vector<16x80xf32> to vector<16x16xf32>
    %57 = vector.extract_strided_slice %53 {offsets = [0, 48], sizes = [16, 16], strides = [1, 1]} : vector<16x80xf32> to vector<16x16xf32>
    %58 = vector.extract_strided_slice %53 {offsets = [0, 64], sizes = [16, 16], strides = [1, 1]} : vector<16x80xf32> to vector<16x16xf32>
    %59 = arith.mulf %54, %54 : vector<16x16xf32>
    %60 = arith.mulf %55, %55 : vector<16x16xf32>
    %61 = arith.mulf %54, %55 : vector<16x16xf32>
    %cst_36 = arith.constant 2.000000e+00 : f32
    %62 = vector.broadcast %cst_36 : f32 to vector<16x16xf32>
    %63 = arith.mulf %62, %61 : vector<16x16xf32>
    %cst_37 = arith.constant 9.99999974E-5 : f32
    %64 = vector.broadcast %cst_37 : f32 to vector<16x16xf32>
    %65 = arith.addf %63, %64 : vector<16x16xf32>
    %66 = arith.addf %59, %60 : vector<16x16xf32>
    %cst_38 = arith.constant 9.99999974E-5 : f32
    %67 = vector.broadcast %cst_38 : f32 to vector<16x16xf32>
    %68 = arith.addf %66, %67 : vector<16x16xf32>
    %69 = arith.divf %65, %68 : vector<16x16xf32>
    %70 = arith.subf %56, %59 : vector<16x16xf32>
    %cst_39 = arith.constant 9.99999993E-9 : f32
    %71 = vector.broadcast %cst_39 : f32 to vector<16x16xf32>
    %72 = arith.maximumf %70, %71 : vector<16x16xf32>
    %73 = arith.subf %57, %60 : vector<16x16xf32>
    %cst_40 = arith.constant 9.99999993E-9 : f32
    %74 = vector.broadcast %cst_40 : f32 to vector<16x16xf32>
    %75 = arith.maximumf %73, %74 : vector<16x16xf32>
    %76 = math.sqrt %72 : vector<16x16xf32>
    %77 = math.sqrt %75 : vector<16x16xf32>
    %cst_41 = arith.constant 2.000000e+00 : f32
    %78 = vector.broadcast %cst_41 : f32 to vector<16x16xf32>
    %79 = arith.mulf %78, %76 : vector<16x16xf32>
    %80 = arith.mulf %79, %77 : vector<16x16xf32>
    %cst_42 = arith.constant 8.99999984E-4 : f32
    %81 = vector.broadcast %cst_42 : f32 to vector<16x16xf32>
    %82 = arith.addf %80, %81 : vector<16x16xf32>
    %83 = arith.addf %72, %75 : vector<16x16xf32>
    %cst_43 = arith.constant 8.99999984E-4 : f32
    %84 = vector.broadcast %cst_43 : f32 to vector<16x16xf32>
    %85 = arith.addf %83, %84 : vector<16x16xf32>
    %86 = arith.divf %82, %85 : vector<16x16xf32>
    %87 = arith.subf %58, %61 : vector<16x16xf32>
    %cst_44 = arith.constant 4.500000e-04 : f32
    %88 = vector.broadcast %cst_44 : f32 to vector<16x16xf32>
    %89 = arith.addf %87, %88 : vector<16x16xf32>
    %90 = arith.mulf %76, %77 : vector<16x16xf32>
    %cst_45 = arith.constant 4.500000e-04 : f32
    %91 = vector.broadcast %cst_45 : f32 to vector<16x16xf32>
    %92 = arith.addf %90, %91 : vector<16x16xf32>
    %93 = arith.divf %89, %92 : vector<16x16xf32>
    %94 = arith.mulf %69, %86 : vector<16x16xf32>
    %95 = arith.mulf %94, %93 : vector<16x16xf32>
    %cst_46 = arith.constant dense<0.000000e+00> : vector<16xf32>
    %96 = vector.multi_reduction <add>, %95, %cst_46 [1] : vector<16x16xf32> to vector<16xf32>
    %97 = vector.shape_cast %96 : vector<16xf32> to vector<16x1xf32>
    %cst_47 = arith.constant dense<0.000000e+00> : vector<1xf32>
    %98 = vector.multi_reduction <add>, %97, %cst_47 [0] : vector<16x1xf32> to vector<1xf32>
    %99 = vector.shape_cast %98 : vector<1xf32> to vector<1x1xf32>
    %c0_48 = arith.constant 0 : index
    %c0_49 = arith.constant 0 : index
    %c0_50 = arith.constant 0 : index
    %100 = vector.load %arg5[%c0_48, %c0_49, %c0_50] : memref<8x1x1xf32, #tpu.memory_space<vmem>>, vector<1x1x1xf32>
    %101 = vector.shape_cast %100 : vector<1x1x1xf32> to vector<1x1xf32>
    %102 = vector.shape_cast %99 : vector<1x1xf32> to vector<1x1x1xf32>
    tpu.vector_store %arg5[%c0_48, %c0_49, %c0_50], %102 {strides = array<i32>} : memref<8x1x1xf32, #tpu.memory_space<vmem>>, vector<1x1x1xf32>,
    %c1 = arith.constant 1 : index
    %c0_51 = arith.constant 0 : index
    %c0_52 = arith.constant 0 : index
    %103 = vector.load %arg6[%c1, %c0_51, %c0_52] : memref<8x16x80xf32, #tpu.memory_space<vmem>>, vector<1x16x80xf32>
    %104 = vector.shape_cast %103 : vector<1x16x80xf32> to vector<16x80xf32>
    %cst_53 = arith.constant dense<0.000000e+00> : vector<16x80xf32>
    %105 = tpu.matmul %29, %104, %cst_53 {dimension_numbers = #tpu.dot_dimension_numbers<[1], [0], [0], [1], [0, 0, 1, 1], [], []>} : vector<16x16xf32>, vector<16x80xf32>, vector<16x80xf32> -> vector<16x80xf32>
    %106 = vector.extract_strided_slice %105 {offsets = [0, 0], sizes = [16, 16], strides = [1, 1]} : vector<16x80xf32> to vector<16x16xf32>
    %107 = vector.extract_strided_slice %105 {offsets = [0, 16], sizes = [16, 16], strides = [1, 1]} : vector<16x80xf32> to vector<16x16xf32>
    %108 = vector.extract_strided_slice %105 {offsets = [0, 32], sizes = [16, 16], strides = [1, 1]} : vector<16x80xf32> to vector<16x16xf32>
    %109 = vector.extract_strided_slice %105 {offsets = [0, 48], sizes = [16, 16], strides = [1, 1]} : vector<16x80xf32> to vector<16x16xf32>
    %110 = vector.extract_strided_slice %105 {offsets = [0, 64], sizes = [16, 16], strides = [1, 1]} : vector<16x80xf32> to vector<16x16xf32>
    %111 = arith.mulf %106, %106 : vector<16x16xf32>
    %112 = arith.mulf %107, %107 : vector<16x16xf32>
    %113 = arith.mulf %106, %107 : vector<16x16xf32>
    %cst_54 = arith.constant 2.000000e+00 : f32
    %114 = vector.broadcast %cst_54 : f32 to vector<16x16xf32>
    %115 = arith.mulf %114, %113 : vector<16x16xf32>
    %cst_55 = arith.constant 9.99999974E-5 : f32
    %116 = vector.broadcast %cst_55 : f32 to vector<16x16xf32>
    %117 = arith.addf %115, %116 : vector<16x16xf32>
    %118 = arith.addf %111, %112 : vector<16x16xf32>
    %cst_56 = arith.constant 9.99999974E-5 : f32
    %119 = vector.broadcast %cst_56 : f32 to vector<16x16xf32>
    %120 = arith.addf %118, %119 : vector<16x16xf32>
    %121 = arith.divf %117, %120 : vector<16x16xf32>
    %122 = arith.subf %108, %111 : vector<16x16xf32>
    %cst_57 = arith.constant 9.99999993E-9 : f32
    %123 = vector.broadcast %cst_57 : f32 to vector<16x16xf32>
    %124 = arith.maximumf %122, %123 : vector<16x16xf32>
    %125 = arith.subf %109, %112 : vector<16x16xf32>
    %cst_58 = arith.constant 9.99999993E-9 : f32
    %126 = vector.broadcast %cst_58 : f32 to vector<16x16xf32>
    %127 = arith.maximumf %125, %126 : vector<16x16xf32>
    %128 = math.sqrt %124 : vector<16x16xf32>
    %129 = math.sqrt %127 : vector<16x16xf32>
    %cst_59 = arith.constant 2.000000e+00 : f32
    %130 = vector.broadcast %cst_59 : f32 to vector<16x16xf32>
    %131 = arith.mulf %130, %128 : vector<16x16xf32>
    %132 = arith.mulf %131, %129 : vector<16x16xf32>
    %cst_60 = arith.constant 8.99999984E-4 : f32
    %133 = vector.broadcast %cst_60 : f32 to vector<16x16xf32>
    %134 = arith.addf %132, %133 : vector<16x16xf32>
    %135 = arith.addf %124, %127 : vector<16x16xf32>
    %cst_61 = arith.constant 8.99999984E-4 : f32
    %136 = vector.broadcast %cst_61 : f32 to vector<16x16xf32>
    %137 = arith.addf %135, %136 : vector<16x16xf32>
    %138 = arith.divf %134, %137 : vector<16x16xf32>
    %139 = arith.subf %110, %113 : vector<16x16xf32>
    %cst_62 = arith.constant 4.500000e-04 : f32
    %140 = vector.broadcast %cst_62 : f32 to vector<16x16xf32>
    %141 = arith.addf %139, %140 : vector<16x16xf32>
    %142 = arith.mulf %128, %129 : vector<16x16xf32>
    %cst_63 = arith.constant 4.500000e-04 : f32
    %143 = vector.broadcast %cst_63 : f32 to vector<16x16xf32>
    %144 = arith.addf %142, %143 : vector<16x16xf32>
    %145 = arith.divf %141, %144 : vector<16x16xf32>
    %146 = arith.mulf %121, %138 : vector<16x16xf32>
    %147 = arith.mulf %146, %145 : vector<16x16xf32>
    %cst_64 = arith.constant dense<0.000000e+00> : vector<16xf32>
    %148 = vector.multi_reduction <add>, %147, %cst_64 [1] : vector<16x16xf32> to vector<16xf32>
    %149 = vector.shape_cast %148 : vector<16xf32> to vector<16x1xf32>
    %cst_65 = arith.constant dense<0.000000e+00> : vector<1xf32>
    %150 = vector.multi_reduction <add>, %149, %cst_65 [0] : vector<16x1xf32> to vector<1xf32>
    %151 = vector.shape_cast %150 : vector<1xf32> to vector<1x1xf32>
    %c1_66 = arith.constant 1 : index
    %c0_67 = arith.constant 0 : index
    %c0_68 = arith.constant 0 : index
    %152 = vector.load %arg5[%c1_66, %c0_67, %c0_68] : memref<8x1x1xf32, #tpu.memory_space<vmem>>, vector<1x1x1xf32>
    %153 = vector.shape_cast %152 : vector<1x1x1xf32> to vector<1x1xf32>
    %154 = vector.shape_cast %151 : vector<1x1xf32> to vector<1x1x1xf32>
    tpu.vector_store %arg5[%c1_66, %c0_67, %c0_68], %154 {strides = array<i32>} : memref<8x1x1xf32, #tpu.memory_space<vmem>>, vector<1x1x1xf32>,
    %c2 = arith.constant 2 : index
    %c0_69 = arith.constant 0 : index
    %c0_70 = arith.constant 0 : index
    %155 = vector.load %arg6[%c2, %c0_69, %c0_70] : memref<8x16x80xf32, #tpu.memory_space<vmem>>, vector<1x16x80xf32>
    %156 = vector.shape_cast %155 : vector<1x16x80xf32> to vector<16x80xf32>
    %cst_71 = arith.constant dense<0.000000e+00> : vector<16x80xf32>
    %157 = tpu.matmul %29, %156, %cst_71 {dimension_numbers = #tpu.dot_dimension_numbers<[1], [0], [0], [1], [0, 0, 1, 1], [], []>} : vector<16x16xf32>, vector<16x80xf32>, vector<16x80xf32> -> vector<16x80xf32>
    %158 = vector.extract_strided_slice %157 {offsets = [0, 0], sizes = [16, 16], strides = [1, 1]} : vector<16x80xf32> to vector<16x16xf32>
    %159 = vector.extract_strided_slice %157 {offsets = [0, 16], sizes = [16, 16], strides = [1, 1]} : vector<16x80xf32> to vector<16x16xf32>
    %160 = vector.extract_strided_slice %157 {offsets = [0, 32], sizes = [16, 16], strides = [1, 1]} : vector<16x80xf32> to vector<16x16xf32>
    %161 = vector.extract_strided_slice %157 {offsets = [0, 48], sizes = [16, 16], strides = [1, 1]} : vector<16x80xf32> to vector<16x16xf32>
    %162 = vector.extract_strided_slice %157 {offsets = [0, 64], sizes = [16, 16], strides = [1, 1]} : vector<16x80xf32> to vector<16x16xf32>
    %163 = arith.mulf %158, %158 : vector<16x16xf32>
    %164 = arith.mulf %159, %159 : vector<16x16xf32>
    %165 = arith.mulf %158, %159 : vector<16x16xf32>
    %cst_72 = arith.constant 2.000000e+00 : f32
    %166 = vector.broadcast %cst_72 : f32 to vector<16x16xf32>
    %167 = arith.mulf %166, %165 : vector<16x16xf32>
    %cst_73 = arith.constant 9.99999974E-5 : f32
    %168 = vector.broadcast %cst_73 : f32 to vector<16x16xf32>
    %169 = arith.addf %167, %168 : vector<16x16xf32>
    %170 = arith.addf %163, %164 : vector<16x16xf32>
    %cst_74 = arith.constant 9.99999974E-5 : f32
    %171 = vector.broadcast %cst_74 : f32 to vector<16x16xf32>
    %172 = arith.addf %170, %171 : vector<16x16xf32>
    %173 = arith.divf %169, %172 : vector<16x16xf32>
    %174 = arith.subf %160, %163 : vector<16x16xf32>
    %cst_75 = arith.constant 9.99999993E-9 : f32
    %175 = vector.broadcast %cst_75 : f32 to vector<16x16xf32>
    %176 = arith.maximumf %174, %175 : vector<16x16xf32>
    %177 = arith.subf %161, %164 : vector<16x16xf32>
    %cst_76 = arith.constant 9.99999993E-9 : f32
    %178 = vector.broadcast %cst_76 : f32 to vector<16x16xf32>
    %179 = arith.maximumf %177, %178 : vector<16x16xf32>
    %180 = math.sqrt %176 : vector<16x16xf32>
    %181 = math.sqrt %179 : vector<16x16xf32>
    %cst_77 = arith.constant 2.000000e+00 : f32
    %182 = vector.broadcast %cst_77 : f32 to vector<16x16xf32>
    %183 = arith.mulf %182, %180 : vector<16x16xf32>
    %184 = arith.mulf %183, %181 : vector<16x16xf32>
    %cst_78 = arith.constant 8.99999984E-4 : f32
    %185 = vector.broadcast %cst_78 : f32 to vector<16x16xf32>
    %186 = arith.addf %184, %185 : vector<16x16xf32>
    %187 = arith.addf %176, %179 : vector<16x16xf32>
    %cst_79 = arith.constant 8.99999984E-4 : f32
    %188 = vector.broadcast %cst_79 : f32 to vector<16x16xf32>
    %189 = arith.addf %187, %188 : vector<16x16xf32>
    %190 = arith.divf %186, %189 : vector<16x16xf32>
    %191 = arith.subf %162, %165 : vector<16x16xf32>
    %cst_80 = arith.constant 4.500000e-04 : f32
    %192 = vector.broadcast %cst_80 : f32 to vector<16x16xf32>
    %193 = arith.addf %191, %192 : vector<16x16xf32>
    %194 = arith.mulf %180, %181 : vector<16x16xf32>
    %cst_81 = arith.constant 4.500000e-04 : f32
    %195 = vector.broadcast %cst_81 : f32 to vector<16x16xf32>
    %196 = arith.addf %194, %195 : vector<16x16xf32>
    %197 = arith.divf %193, %196 : vector<16x16xf32>
    %198 = arith.mulf %173, %190 : vector<16x16xf32>
    %199 = arith.mulf %198, %197 : vector<16x16xf32>
    %cst_82 = arith.constant dense<0.000000e+00> : vector<16xf32>
    %200 = vector.multi_reduction <add>, %199, %cst_82 [1] : vector<16x16xf32> to vector<16xf32>
    %201 = vector.shape_cast %200 : vector<16xf32> to vector<16x1xf32>
    %cst_83 = arith.constant dense<0.000000e+00> : vector<1xf32>
    %202 = vector.multi_reduction <add>, %201, %cst_83 [0] : vector<16x1xf32> to vector<1xf32>
    %203 = vector.shape_cast %202 : vector<1xf32> to vector<1x1xf32>
    %c2_84 = arith.constant 2 : index
    %c0_85 = arith.constant 0 : index
    %c0_86 = arith.constant 0 : index
    %204 = vector.load %arg5[%c2_84, %c0_85, %c0_86] : memref<8x1x1xf32, #tpu.memory_space<vmem>>, vector<1x1x1xf32>
    %205 = vector.shape_cast %204 : vector<1x1x1xf32> to vector<1x1xf32>
    %206 = vector.shape_cast %203 : vector<1x1xf32> to vector<1x1x1xf32>
    tpu.vector_store %arg5[%c2_84, %c0_85, %c0_86], %206 {strides = array<i32>} : memref<8x1x1xf32, #tpu.memory_space<vmem>>, vector<1x1x1xf32>,
    %c3 = arith.constant 3 : index
    %c0_87 = arith.constant 0 : index
    %c0_88 = arith.constant 0 : index
    %207 = vector.load %arg6[%c3, %c0_87, %c0_88] : memref<8x16x80xf32, #tpu.memory_space<vmem>>, vector<1x16x80xf32>
    %208 = vector.shape_cast %207 : vector<1x16x80xf32> to vector<16x80xf32>
    %cst_89 = arith.constant dense<0.000000e+00> : vector<16x80xf32>
    %209 = tpu.matmul %29, %208, %cst_89 {dimension_numbers = #tpu.dot_dimension_numbers<[1], [0], [0], [1], [0, 0, 1, 1], [], []>} : vector<16x16xf32>, vector<16x80xf32>, vector<16x80xf32> -> vector<16x80xf32>
    %210 = vector.extract_strided_slice %209 {offsets = [0, 0], sizes = [16, 16], strides = [1, 1]} : vector<16x80xf32> to vector<16x16xf32>
    %211 = vector.extract_strided_slice %209 {offsets = [0, 16], sizes = [16, 16], strides = [1, 1]} : vector<16x80xf32> to vector<16x16xf32>
    %212 = vector.extract_strided_slice %209 {offsets = [0, 32], sizes = [16, 16], strides = [1, 1]} : vector<16x80xf32> to vector<16x16xf32>
    %213 = vector.extract_strided_slice %209 {offsets = [0, 48], sizes = [16, 16], strides = [1, 1]} : vector<16x80xf32> to vector<16x16xf32>
    %214 = vector.extract_strided_slice %209 {offsets = [0, 64], sizes = [16, 16], strides = [1, 1]} : vector<16x80xf32> to vector<16x16xf32>
    %215 = arith.mulf %210, %210 : vector<16x16xf32>
    %216 = arith.mulf %211, %211 : vector<16x16xf32>
    %217 = arith.mulf %210, %211 : vector<16x16xf32>
    %cst_90 = arith.constant 2.000000e+00 : f32
    %218 = vector.broadcast %cst_90 : f32 to vector<16x16xf32>
    %219 = arith.mulf %218, %217 : vector<16x16xf32>
    %cst_91 = arith.constant 9.99999974E-5 : f32
    %220 = vector.broadcast %cst_91 : f32 to vector<16x16xf32>
    %221 = arith.addf %219, %220 : vector<16x16xf32>
    %222 = arith.addf %215, %216 : vector<16x16xf32>
    %cst_92 = arith.constant 9.99999974E-5 : f32
    %223 = vector.broadcast %cst_92 : f32 to vector<16x16xf32>
    %224 = arith.addf %222, %223 : vector<16x16xf32>
    %225 = arith.divf %221, %224 : vector<16x16xf32>
    %226 = arith.subf %212, %215 : vector<16x16xf32>
    %cst_93 = arith.constant 9.99999993E-9 : f32
    %227 = vector.broadcast %cst_93 : f32 to vector<16x16xf32>
    %228 = arith.maximumf %226, %227 : vector<16x16xf32>
    %229 = arith.subf %213, %216 : vector<16x16xf32>
    %cst_94 = arith.constant 9.99999993E-9 : f32
    %230 = vector.broadcast %cst_94 : f32 to vector<16x16xf32>
    %231 = arith.maximumf %229, %230 : vector<16x16xf32>
    %232 = math.sqrt %228 : vector<16x16xf32>
    %233 = math.sqrt %231 : vector<16x16xf32>
    %cst_95 = arith.constant 2.000000e+00 : f32
    %234 = vector.broadcast %cst_95 : f32 to vector<16x16xf32>
    %235 = arith.mulf %234, %232 : vector<16x16xf32>
    %236 = arith.mulf %235, %233 : vector<16x16xf32>
    %cst_96 = arith.constant 8.99999984E-4 : f32
    %237 = vector.broadcast %cst_96 : f32 to vector<16x16xf32>
    %238 = arith.addf %236, %237 : vector<16x16xf32>
    %239 = arith.addf %228, %231 : vector<16x16xf32>
    %cst_97 = arith.constant 8.99999984E-4 : f32
    %240 = vector.broadcast %cst_97 : f32 to vector<16x16xf32>
    %241 = arith.addf %239, %240 : vector<16x16xf32>
    %242 = arith.divf %238, %241 : vector<16x16xf32>
    %243 = arith.subf %214, %217 : vector<16x16xf32>
    %cst_98 = arith.constant 4.500000e-04 : f32
    %244 = vector.broadcast %cst_98 : f32 to vector<16x16xf32>
    %245 = arith.addf %243, %244 : vector<16x16xf32>
    %246 = arith.mulf %232, %233 : vector<16x16xf32>
    %cst_99 = arith.constant 4.500000e-04 : f32
    %247 = vector.broadcast %cst_99 : f32 to vector<16x16xf32>
    %248 = arith.addf %246, %247 : vector<16x16xf32>
    %249 = arith.divf %245, %248 : vector<16x16xf32>
    %250 = arith.mulf %225, %242 : vector<16x16xf32>
    %251 = arith.mulf %250, %249 : vector<16x16xf32>
    %cst_100 = arith.constant dense<0.000000e+00> : vector<16xf32>
    %252 = vector.multi_reduction <add>, %251, %cst_100 [1] : vector<16x16xf32> to vector<16xf32>
    %253 = vector.shape_cast %252 : vector<16xf32> to vector<16x1xf32>
    %cst_101 = arith.constant dense<0.000000e+00> : vector<1xf32>
    %254 = vector.multi_reduction <add>, %253, %cst_101 [0] : vector<16x1xf32> to vector<1xf32>
    %255 = vector.shape_cast %254 : vector<1xf32> to vector<1x1xf32>
    %c3_102 = arith.constant 3 : index
    %c0_103 = arith.constant 0 : index
    %c0_104 = arith.constant 0 : index
    %256 = vector.load %arg5[%c3_102, %c0_103, %c0_104] : memref<8x1x1xf32, #tpu.memory_space<vmem>>, vector<1x1x1xf32>
    %257 = vector.shape_cast %256 : vector<1x1x1xf32> to vector<1x1xf32>
    %258 = vector.shape_cast %255 : vector<1x1xf32> to vector<1x1x1xf32>
    tpu.vector_store %arg5[%c3_102, %c0_103, %c0_104], %258 {strides = array<i32>} : memref<8x1x1xf32, #tpu.memory_space<vmem>>, vector<1x1x1xf32>,
    %c4 = arith.constant 4 : index
    %c0_105 = arith.constant 0 : index
    %c0_106 = arith.constant 0 : index
    %259 = vector.load %arg6[%c4, %c0_105, %c0_106] : memref<8x16x80xf32, #tpu.memory_space<vmem>>, vector<1x16x80xf32>
    %260 = vector.shape_cast %259 : vector<1x16x80xf32> to vector<16x80xf32>
    %cst_107 = arith.constant dense<0.000000e+00> : vector<16x80xf32>
    %261 = tpu.matmul %29, %260, %cst_107 {dimension_numbers = #tpu.dot_dimension_numbers<[1], [0], [0], [1], [0, 0, 1, 1], [], []>} : vector<16x16xf32>, vector<16x80xf32>, vector<16x80xf32> -> vector<16x80xf32>
    %262 = vector.extract_strided_slice %261 {offsets = [0, 0], sizes = [16, 16], strides = [1, 1]} : vector<16x80xf32> to vector<16x16xf32>
    %263 = vector.extract_strided_slice %261 {offsets = [0, 16], sizes = [16, 16], strides = [1, 1]} : vector<16x80xf32> to vector<16x16xf32>
    %264 = vector.extract_strided_slice %261 {offsets = [0, 32], sizes = [16, 16], strides = [1, 1]} : vector<16x80xf32> to vector<16x16xf32>
    %265 = vector.extract_strided_slice %261 {offsets = [0, 48], sizes = [16, 16], strides = [1, 1]} : vector<16x80xf32> to vector<16x16xf32>
    %266 = vector.extract_strided_slice %261 {offsets = [0, 64], sizes = [16, 16], strides = [1, 1]} : vector<16x80xf32> to vector<16x16xf32>
    %267 = arith.mulf %262, %262 : vector<16x16xf32>
    %268 = arith.mulf %263, %263 : vector<16x16xf32>
    %269 = arith.mulf %262, %263 : vector<16x16xf32>
    %cst_108 = arith.constant 2.000000e+00 : f32
    %270 = vector.broadcast %cst_108 : f32 to vector<16x16xf32>
    %271 = arith.mulf %270, %269 : vector<16x16xf32>
    %cst_109 = arith.constant 9.99999974E-5 : f32
    %272 = vector.broadcast %cst_109 : f32 to vector<16x16xf32>
    %273 = arith.addf %271, %272 : vector<16x16xf32>
    %274 = arith.addf %267, %268 : vector<16x16xf32>
    %cst_110 = arith.constant 9.99999974E-5 : f32
    %275 = vector.broadcast %cst_110 : f32 to vector<16x16xf32>
    %276 = arith.addf %274, %275 : vector<16x16xf32>
    %277 = arith.divf %273, %276 : vector<16x16xf32>
    %278 = arith.subf %264, %267 : vector<16x16xf32>
    %cst_111 = arith.constant 9.99999993E-9 : f32
    %279 = vector.broadcast %cst_111 : f32 to vector<16x16xf32>
    %280 = arith.maximumf %278, %279 : vector<16x16xf32>
    %281 = arith.subf %265, %268 : vector<16x16xf32>
    %cst_112 = arith.constant 9.99999993E-9 : f32
    %282 = vector.broadcast %cst_112 : f32 to vector<16x16xf32>
    %283 = arith.maximumf %281, %282 : vector<16x16xf32>
    %284 = math.sqrt %280 : vector<16x16xf32>
    %285 = math.sqrt %283 : vector<16x16xf32>
    %cst_113 = arith.constant 2.000000e+00 : f32
    %286 = vector.broadcast %cst_113 : f32 to vector<16x16xf32>
    %287 = arith.mulf %286, %284 : vector<16x16xf32>
    %288 = arith.mulf %287, %285 : vector<16x16xf32>
    %cst_114 = arith.constant 8.99999984E-4 : f32
    %289 = vector.broadcast %cst_114 : f32 to vector<16x16xf32>
    %290 = arith.addf %288, %289 : vector<16x16xf32>
    %291 = arith.addf %280, %283 : vector<16x16xf32>
    %cst_115 = arith.constant 8.99999984E-4 : f32
    %292 = vector.broadcast %cst_115 : f32 to vector<16x16xf32>
    %293 = arith.addf %291, %292 : vector<16x16xf32>
    %294 = arith.divf %290, %293 : vector<16x16xf32>
    %295 = arith.subf %266, %269 : vector<16x16xf32>
    %cst_116 = arith.constant 4.500000e-04 : f32
    %296 = vector.broadcast %cst_116 : f32 to vector<16x16xf32>
    %297 = arith.addf %295, %296 : vector<16x16xf32>
    %298 = arith.mulf %284, %285 : vector<16x16xf32>
    %cst_117 = arith.constant 4.500000e-04 : f32
    %299 = vector.broadcast %cst_117 : f32 to vector<16x16xf32>
    %300 = arith.addf %298, %299 : vector<16x16xf32>
    %301 = arith.divf %297, %300 : vector<16x16xf32>
    %302 = arith.mulf %277, %294 : vector<16x16xf32>
    %303 = arith.mulf %302, %301 : vector<16x16xf32>
    %cst_118 = arith.constant dense<0.000000e+00> : vector<16xf32>
    %304 = vector.multi_reduction <add>, %303, %cst_118 [1] : vector<16x16xf32> to vector<16xf32>
    %305 = vector.shape_cast %304 : vector<16xf32> to vector<16x1xf32>
    %cst_119 = arith.constant dense<0.000000e+00> : vector<1xf32>
    %306 = vector.multi_reduction <add>, %305, %cst_119 [0] : vector<16x1xf32> to vector<1xf32>
    %307 = vector.shape_cast %306 : vector<1xf32> to vector<1x1xf32>
    %c4_120 = arith.constant 4 : index
    %c0_121 = arith.constant 0 : index
    %c0_122 = arith.constant 0 : index
    %308 = vector.load %arg5[%c4_120, %c0_121, %c0_122] : memref<8x1x1xf32, #tpu.memory_space<vmem>>, vector<1x1x1xf32>
    %309 = vector.shape_cast %308 : vector<1x1x1xf32> to vector<1x1xf32>
    %310 = vector.shape_cast %307 : vector<1x1xf32> to vector<1x1x1xf32>
    tpu.vector_store %arg5[%c4_120, %c0_121, %c0_122], %310 {strides = array<i32>} : memref<8x1x1xf32, #tpu.memory_space<vmem>>, vector<1x1x1xf32>,
    %c5 = arith.constant 5 : index
    %c0_123 = arith.constant 0 : index
    %c0_124 = arith.constant 0 : index
    %311 = vector.load %arg6[%c5, %c0_123, %c0_124] : memref<8x16x80xf32, #tpu.memory_space<vmem>>, vector<1x16x80xf32>
    %312 = vector.shape_cast %311 : vector<1x16x80xf32> to vector<16x80xf32>
    %cst_125 = arith.constant dense<0.000000e+00> : vector<16x80xf32>
    %313 = tpu.matmul %29, %312, %cst_125 {dimension_numbers = #tpu.dot_dimension_numbers<[1], [0], [0], [1], [0, 0, 1, 1], [], []>} : vector<16x16xf32>, vector<16x80xf32>, vector<16x80xf32> -> vector<16x80xf32>
    %314 = vector.extract_strided_slice %313 {offsets = [0, 0], sizes = [16, 16], strides = [1, 1]} : vector<16x80xf32> to vector<16x16xf32>
    %315 = vector.extract_strided_slice %313 {offsets = [0, 16], sizes = [16, 16], strides = [1, 1]} : vector<16x80xf32> to vector<16x16xf32>
    %316 = vector.extract_strided_slice %313 {offsets = [0, 32], sizes = [16, 16], strides = [1, 1]} : vector<16x80xf32> to vector<16x16xf32>
    %317 = vector.extract_strided_slice %313 {offsets = [0, 48], sizes = [16, 16], strides = [1, 1]} : vector<16x80xf32> to vector<16x16xf32>
    %318 = vector.extract_strided_slice %313 {offsets = [0, 64], sizes = [16, 16], strides = [1, 1]} : vector<16x80xf32> to vector<16x16xf32>
    %319 = arith.mulf %314, %314 : vector<16x16xf32>
    %320 = arith.mulf %315, %315 : vector<16x16xf32>
    %321 = arith.mulf %314, %315 : vector<16x16xf32>
    %cst_126 = arith.constant 2.000000e+00 : f32
    %322 = vector.broadcast %cst_126 : f32 to vector<16x16xf32>
    %323 = arith.mulf %322, %321 : vector<16x16xf32>
    %cst_127 = arith.constant 9.99999974E-5 : f32
    %324 = vector.broadcast %cst_127 : f32 to vector<16x16xf32>
    %325 = arith.addf %323, %324 : vector<16x16xf32>
    %326 = arith.addf %319, %320 : vector<16x16xf32>
    %cst_128 = arith.constant 9.99999974E-5 : f32
    %327 = vector.broadcast %cst_128 : f32 to vector<16x16xf32>
    %328 = arith.addf %326, %327 : vector<16x16xf32>
    %329 = arith.divf %325, %328 : vector<16x16xf32>
    %330 = arith.subf %316, %319 : vector<16x16xf32>
    %cst_129 = arith.constant 9.99999993E-9 : f32
    %331 = vector.broadcast %cst_129 : f32 to vector<16x16xf32>
    %332 = arith.maximumf %330, %331 : vector<16x16xf32>
    %333 = arith.subf %317, %320 : vector<16x16xf32>
    %cst_130 = arith.constant 9.99999993E-9 : f32
    %334 = vector.broadcast %cst_130 : f32 to vector<16x16xf32>
    %335 = arith.maximumf %333, %334 : vector<16x16xf32>
    %336 = math.sqrt %332 : vector<16x16xf32>
    %337 = math.sqrt %335 : vector<16x16xf32>
    %cst_131 = arith.constant 2.000000e+00 : f32
    %338 = vector.broadcast %cst_131 : f32 to vector<16x16xf32>
    %339 = arith.mulf %338, %336 : vector<16x16xf32>
    %340 = arith.mulf %339, %337 : vector<16x16xf32>
    %cst_132 = arith.constant 8.99999984E-4 : f32
    %341 = vector.broadcast %cst_132 : f32 to vector<16x16xf32>
    %342 = arith.addf %340, %341 : vector<16x16xf32>
    %343 = arith.addf %332, %335 : vector<16x16xf32>
    %cst_133 = arith.constant 8.99999984E-4 : f32
    %344 = vector.broadcast %cst_133 : f32 to vector<16x16xf32>
    %345 = arith.addf %343, %344 : vector<16x16xf32>
    %346 = arith.divf %342, %345 : vector<16x16xf32>
    %347 = arith.subf %318, %321 : vector<16x16xf32>
    %cst_134 = arith.constant 4.500000e-04 : f32
    %348 = vector.broadcast %cst_134 : f32 to vector<16x16xf32>
    %349 = arith.addf %347, %348 : vector<16x16xf32>
    %350 = arith.mulf %336, %337 : vector<16x16xf32>
    %cst_135 = arith.constant 4.500000e-04 : f32
    %351 = vector.broadcast %cst_135 : f32 to vector<16x16xf32>
    %352 = arith.addf %350, %351 : vector<16x16xf32>
    %353 = arith.divf %349, %352 : vector<16x16xf32>
    %354 = arith.mulf %329, %346 : vector<16x16xf32>
    %355 = arith.mulf %354, %353 : vector<16x16xf32>
    %cst_136 = arith.constant dense<0.000000e+00> : vector<16xf32>
    %356 = vector.multi_reduction <add>, %355, %cst_136 [1] : vector<16x16xf32> to vector<16xf32>
    %357 = vector.shape_cast %356 : vector<16xf32> to vector<16x1xf32>
    %cst_137 = arith.constant dense<0.000000e+00> : vector<1xf32>
    %358 = vector.multi_reduction <add>, %357, %cst_137 [0] : vector<16x1xf32> to vector<1xf32>
    %359 = vector.shape_cast %358 : vector<1xf32> to vector<1x1xf32>
    %c5_138 = arith.constant 5 : index
    %c0_139 = arith.constant 0 : index
    %c0_140 = arith.constant 0 : index
    %360 = vector.load %arg5[%c5_138, %c0_139, %c0_140] : memref<8x1x1xf32, #tpu.memory_space<vmem>>, vector<1x1x1xf32>
    %361 = vector.shape_cast %360 : vector<1x1x1xf32> to vector<1x1xf32>
    %362 = vector.shape_cast %359 : vector<1x1xf32> to vector<1x1x1xf32>
    tpu.vector_store %arg5[%c5_138, %c0_139, %c0_140], %362 {strides = array<i32>} : memref<8x1x1xf32, #tpu.memory_space<vmem>>, vector<1x1x1xf32>,
    %c6 = arith.constant 6 : index
    %c0_141 = arith.constant 0 : index
    %c0_142 = arith.constant 0 : index
    %363 = vector.load %arg6[%c6, %c0_141, %c0_142] : memref<8x16x80xf32, #tpu.memory_space<vmem>>, vector<1x16x80xf32>
    %364 = vector.shape_cast %363 : vector<1x16x80xf32> to vector<16x80xf32>
    %cst_143 = arith.constant dense<0.000000e+00> : vector<16x80xf32>
    %365 = tpu.matmul %29, %364, %cst_143 {dimension_numbers = #tpu.dot_dimension_numbers<[1], [0], [0], [1], [0, 0, 1, 1], [], []>} : vector<16x16xf32>, vector<16x80xf32>, vector<16x80xf32> -> vector<16x80xf32>
    %366 = vector.extract_strided_slice %365 {offsets = [0, 0], sizes = [16, 16], strides = [1, 1]} : vector<16x80xf32> to vector<16x16xf32>
    %367 = vector.extract_strided_slice %365 {offsets = [0, 16], sizes = [16, 16], strides = [1, 1]} : vector<16x80xf32> to vector<16x16xf32>
    %368 = vector.extract_strided_slice %365 {offsets = [0, 32], sizes = [16, 16], strides = [1, 1]} : vector<16x80xf32> to vector<16x16xf32>
    %369 = vector.extract_strided_slice %365 {offsets = [0, 48], sizes = [16, 16], strides = [1, 1]} : vector<16x80xf32> to vector<16x16xf32>
    %370 = vector.extract_strided_slice %365 {offsets = [0, 64], sizes = [16, 16], strides = [1, 1]} : vector<16x80xf32> to vector<16x16xf32>
    %371 = arith.mulf %366, %366 : vector<16x16xf32>
    %372 = arith.mulf %367, %367 : vector<16x16xf32>
    %373 = arith.mulf %366, %367 : vector<16x16xf32>
    %cst_144 = arith.constant 2.000000e+00 : f32
    %374 = vector.broadcast %cst_144 : f32 to vector<16x16xf32>
    %375 = arith.mulf %374, %373 : vector<16x16xf32>
    %cst_145 = arith.constant 9.99999974E-5 : f32
    %376 = vector.broadcast %cst_145 : f32 to vector<16x16xf32>
    %377 = arith.addf %375, %376 : vector<16x16xf32>
    %378 = arith.addf %371, %372 : vector<16x16xf32>
    %cst_146 = arith.constant 9.99999974E-5 : f32
    %379 = vector.broadcast %cst_146 : f32 to vector<16x16xf32>
    %380 = arith.addf %378, %379 : vector<16x16xf32>
    %381 = arith.divf %377, %380 : vector<16x16xf32>
    %382 = arith.subf %368, %371 : vector<16x16xf32>
    %cst_147 = arith.constant 9.99999993E-9 : f32
    %383 = vector.broadcast %cst_147 : f32 to vector<16x16xf32>
    %384 = arith.maximumf %382, %383 : vector<16x16xf32>
    %385 = arith.subf %369, %372 : vector<16x16xf32>
    %cst_148 = arith.constant 9.99999993E-9 : f32
    %386 = vector.broadcast %cst_148 : f32 to vector<16x16xf32>
    %387 = arith.maximumf %385, %386 : vector<16x16xf32>
    %388 = math.sqrt %384 : vector<16x16xf32>
    %389 = math.sqrt %387 : vector<16x16xf32>
    %cst_149 = arith.constant 2.000000e+00 : f32
    %390 = vector.broadcast %cst_149 : f32 to vector<16x16xf32>
    %391 = arith.mulf %390, %388 : vector<16x16xf32>
    %392 = arith.mulf %391, %389 : vector<16x16xf32>
    %cst_150 = arith.constant 8.99999984E-4 : f32
    %393 = vector.broadcast %cst_150 : f32 to vector<16x16xf32>
    %394 = arith.addf %392, %393 : vector<16x16xf32>
    %395 = arith.addf %384, %387 : vector<16x16xf32>
    %cst_151 = arith.constant 8.99999984E-4 : f32
    %396 = vector.broadcast %cst_151 : f32 to vector<16x16xf32>
    %397 = arith.addf %395, %396 : vector<16x16xf32>
    %398 = arith.divf %394, %397 : vector<16x16xf32>
    %399 = arith.subf %370, %373 : vector<16x16xf32>
    %cst_152 = arith.constant 4.500000e-04 : f32
    %400 = vector.broadcast %cst_152 : f32 to vector<16x16xf32>
    %401 = arith.addf %399, %400 : vector<16x16xf32>
    %402 = arith.mulf %388, %389 : vector<16x16xf32>
    %cst_153 = arith.constant 4.500000e-04 : f32
    %403 = vector.broadcast %cst_153 : f32 to vector<16x16xf32>
    %404 = arith.addf %402, %403 : vector<16x16xf32>
    %405 = arith.divf %401, %404 : vector<16x16xf32>
    %406 = arith.mulf %381, %398 : vector<16x16xf32>
    %407 = arith.mulf %406, %405 : vector<16x16xf32>
    %cst_154 = arith.constant dense<0.000000e+00> : vector<16xf32>
    %408 = vector.multi_reduction <add>, %407, %cst_154 [1] : vector<16x16xf32> to vector<16xf32>
    %409 = vector.shape_cast %408 : vector<16xf32> to vector<16x1xf32>
    %cst_155 = arith.constant dense<0.000000e+00> : vector<1xf32>
    %410 = vector.multi_reduction <add>, %409, %cst_155 [0] : vector<16x1xf32> to vector<1xf32>
    %411 = vector.shape_cast %410 : vector<1xf32> to vector<1x1xf32>
    %c6_156 = arith.constant 6 : index
    %c0_157 = arith.constant 0 : index
    %c0_158 = arith.constant 0 : index
    %412 = vector.load %arg5[%c6_156, %c0_157, %c0_158] : memref<8x1x1xf32, #tpu.memory_space<vmem>>, vector<1x1x1xf32>
    %413 = vector.shape_cast %412 : vector<1x1x1xf32> to vector<1x1xf32>
    %414 = vector.shape_cast %411 : vector<1x1xf32> to vector<1x1x1xf32>
    tpu.vector_store %arg5[%c6_156, %c0_157, %c0_158], %414 {strides = array<i32>} : memref<8x1x1xf32, #tpu.memory_space<vmem>>, vector<1x1x1xf32>,
    %c7 = arith.constant 7 : index
    %c0_159 = arith.constant 0 : index
    %c0_160 = arith.constant 0 : index
    %415 = vector.load %arg6[%c7, %c0_159, %c0_160] : memref<8x16x80xf32, #tpu.memory_space<vmem>>, vector<1x16x80xf32>
    %416 = vector.shape_cast %415 : vector<1x16x80xf32> to vector<16x80xf32>
    %cst_161 = arith.constant dense<0.000000e+00> : vector<16x80xf32>
    %417 = tpu.matmul %29, %416, %cst_161 {dimension_numbers = #tpu.dot_dimension_numbers<[1], [0], [0], [1], [0, 0, 1, 1], [], []>} : vector<16x16xf32>, vector<16x80xf32>, vector<16x80xf32> -> vector<16x80xf32>
    %418 = vector.extract_strided_slice %417 {offsets = [0, 0], sizes = [16, 16], strides = [1, 1]} : vector<16x80xf32> to vector<16x16xf32>
    %419 = vector.extract_strided_slice %417 {offsets = [0, 16], sizes = [16, 16], strides = [1, 1]} : vector<16x80xf32> to vector<16x16xf32>
    %420 = vector.extract_strided_slice %417 {offsets = [0, 32], sizes = [16, 16], strides = [1, 1]} : vector<16x80xf32> to vector<16x16xf32>
    %421 = vector.extract_strided_slice %417 {offsets = [0, 48], sizes = [16, 16], strides = [1, 1]} : vector<16x80xf32> to vector<16x16xf32>
    %422 = vector.extract_strided_slice %417 {offsets = [0, 64], sizes = [16, 16], strides = [1, 1]} : vector<16x80xf32> to vector<16x16xf32>
    %423 = arith.mulf %418, %418 : vector<16x16xf32>
    %424 = arith.mulf %419, %419 : vector<16x16xf32>
    %425 = arith.mulf %418, %419 : vector<16x16xf32>
    %cst_162 = arith.constant 2.000000e+00 : f32
    %426 = vector.broadcast %cst_162 : f32 to vector<16x16xf32>
    %427 = arith.mulf %426, %425 : vector<16x16xf32>
    %cst_163 = arith.constant 9.99999974E-5 : f32
    %428 = vector.broadcast %cst_163 : f32 to vector<16x16xf32>
    %429 = arith.addf %427, %428 : vector<16x16xf32>
    %430 = arith.addf %423, %424 : vector<16x16xf32>
    %cst_164 = arith.constant 9.99999974E-5 : f32
    %431 = vector.broadcast %cst_164 : f32 to vector<16x16xf32>
    %432 = arith.addf %430, %431 : vector<16x16xf32>
    %433 = arith.divf %429, %432 : vector<16x16xf32>
    %434 = arith.subf %420, %423 : vector<16x16xf32>
    %cst_165 = arith.constant 9.99999993E-9 : f32
    %435 = vector.broadcast %cst_165 : f32 to vector<16x16xf32>
    %436 = arith.maximumf %434, %435 : vector<16x16xf32>
    %437 = arith.subf %421, %424 : vector<16x16xf32>
    %cst_166 = arith.constant 9.99999993E-9 : f32
    %438 = vector.broadcast %cst_166 : f32 to vector<16x16xf32>
    %439 = arith.maximumf %437, %438 : vector<16x16xf32>
    %440 = math.sqrt %436 : vector<16x16xf32>
    %441 = math.sqrt %439 : vector<16x16xf32>
    %cst_167 = arith.constant 2.000000e+00 : f32
    %442 = vector.broadcast %cst_167 : f32 to vector<16x16xf32>
    %443 = arith.mulf %442, %440 : vector<16x16xf32>
    %444 = arith.mulf %443, %441 : vector<16x16xf32>
    %cst_168 = arith.constant 8.99999984E-4 : f32
    %445 = vector.broadcast %cst_168 : f32 to vector<16x16xf32>
    %446 = arith.addf %444, %445 : vector<16x16xf32>
    %447 = arith.addf %436, %439 : vector<16x16xf32>
    %cst_169 = arith.constant 8.99999984E-4 : f32
    %448 = vector.broadcast %cst_169 : f32 to vector<16x16xf32>
    %449 = arith.addf %447, %448 : vector<16x16xf32>
    %450 = arith.divf %446, %449 : vector<16x16xf32>
    %451 = arith.subf %422, %425 : vector<16x16xf32>
    %cst_170 = arith.constant 4.500000e-04 : f32
    %452 = vector.broadcast %cst_170 : f32 to vector<16x16xf32>
    %453 = arith.addf %451, %452 : vector<16x16xf32>
    %454 = arith.mulf %440, %441 : vector<16x16xf32>
    %cst_171 = arith.constant 4.500000e-04 : f32
    %455 = vector.broadcast %cst_171 : f32 to vector<16x16xf32>
    %456 = arith.addf %454, %455 : vector<16x16xf32>
    %457 = arith.divf %453, %456 : vector<16x16xf32>
    %458 = arith.mulf %433, %450 : vector<16x16xf32>
    %459 = arith.mulf %458, %457 : vector<16x16xf32>
    %cst_172 = arith.constant dense<0.000000e+00> : vector<16xf32>
    %460 = vector.multi_reduction <add>, %459, %cst_172 [1] : vector<16x16xf32> to vector<16xf32>
    %461 = vector.shape_cast %460 : vector<16xf32> to vector<16x1xf32>
    %cst_173 = arith.constant dense<0.000000e+00> : vector<1xf32>
    %462 = vector.multi_reduction <add>, %461, %cst_173 [0] : vector<16x1xf32> to vector<1xf32>
    %463 = vector.shape_cast %462 : vector<1xf32> to vector<1x1xf32>
    %c7_174 = arith.constant 7 : index
    %c0_175 = arith.constant 0 : index
    %c0_176 = arith.constant 0 : index
    %464 = vector.load %arg5[%c7_174, %c0_175, %c0_176] : memref<8x1x1xf32, #tpu.memory_space<vmem>>, vector<1x1x1xf32>
    %465 = vector.shape_cast %464 : vector<1x1x1xf32> to vector<1x1xf32>
    %466 = vector.shape_cast %463 : vector<1x1xf32> to vector<1x1x1xf32>
    tpu.vector_store %arg5[%c7_174, %c0_175, %c0_176], %466 {strides = array<i32>} : memref<8x1x1xf32, #tpu.memory_space<vmem>>, vector<1x1x1xf32>,
    return
  }
  func.func @transform_0(%arg0: i32) -> (i32, i32, i32) {
    %c0_i32 = arith.constant 0 : i32
    %c0_i32_0 = arith.constant 0 : i32
    %c0_i32_1 = arith.constant 0 : i32
    return %arg0, %c0_i32, %c0_i32_0 : i32, i32, i32
  }
  func.func @transform_1(%arg0: i32) -> (i32, i32, i32) {
    %c0_i32 = arith.constant 0 : i32
    %c0_i32_0 = arith.constant 0 : i32
    %c0_i32_1 = arith.constant 0 : i32
    return %arg0, %c0_i32, %c0_i32_0 : i32, i32, i32
  }
  func.func @transform_2(%arg0: i32) -> (i32, i32) {
    %c0_i32 = arith.constant 0 : i32
    %c0_i32_0 = arith.constant 0 : i32
    %c0_i32_1 = arith.constant 0 : i32
    return %c0_i32, %c0_i32_0 : i32, i32
  }
  func.func @transform_3(%arg0: i32) -> (i32, i32) {
    %c0_i32 = arith.constant 0 : i32
    %c0_i32_0 = arith.constant 0 : i32
    %c0_i32_1 = arith.constant 0 : i32
    return %c0_i32, %c0_i32_0 : i32, i32
  }
  func.func @transform_4(%arg0: i32) -> (i32, i32, i32) {
    %c0_i32 = arith.constant 0 : i32
    %c0_i32_0 = arith.constant 0 : i32
    %c0_i32_1 = arith.constant 0 : i32
    return %arg0, %c0_i32, %c0_i32_0 : i32, i32, i32
  }
}

</mosaic_0001>

<bundles_post_ra>
// kernel: tpu_custom_call.1
= control target key start
LH: loop header
LB: loop body
LE: loop exit
PB: predicated region body
PF: predicated region fallthrough
CT: control target
= control target key end

     0   :  { %9 = vsyncpa [#allocation4], 0  ;;  %s6210_s0 = inlined_call_operand.hbm [shape: f32[8,16,16], index: 0, kind: input, shape index: {}]   ;;  %s6211_s1 = inlined_call_operand.hbm [shape: f32[8,16,16], index: 1, kind: input, shape index: {}]   ;;  %s6212_s2 = inlined_call_operand.hbm [shape: f32[16,16], index: 2, kind: input, shape index: {}]   ;;  %s6213_s3 = inlined_call_operand.hbm [shape: f32[16,16], index: 3, kind: input, shape index: {}]   ;;  %s6214_s4 = inlined_call_operand.hbm [shape: f32[8,1,1], index: 4, kind: output, shape index: {}]  }
   0x1   :  { %10 = vsyncpa [#allocation7], 0 }
   0x2   :  { %11 = vsyncpa [#allocation10], 0 }
   0x3   :  { %12 = vsyncpa [#allocation5], 0  ;;  %s4477_s15 = smov [#allocation6]   ;;  %s4478_s17 = smov [#allocation3]  }
   0x4   :  { %s30_s16 = sshll.u32 %s4477_s15, 4  ;;  %s18_s18 = sshll.u32 %s4478_s17, 4  ;;  %s31_s16 = int_to_ptr.vmem [resolvable:$true] %s30_s16  ;;  %s4516_s18 = int_to_ptr.vmem [resolvable:$true] %s18_s18 }
   0x5   :  { %s4359_s21 = scalar_lea.hbm %s6211_s1, 2048 }
   0x6   :  { %p4360_p0 = scmp.ne.s32.totalorder %s6211_s1, %s4359_s21  ;;  %p4363_p1 = scmp.lt.u32.totalorder %s4359_s21, %s6211_s1 }
   0x8   :  { %p4365_p2 = pnand %p4363_p1, %p4360_p0 }
   0xa   :  { %4368 = shalt.err (!%p4365_p2)
}
   0xb   :  { %s4369_s26 = scalar_lea.vmem %s31_s16, 2048  ;;  %p4374_p4 = scmp.lt.s32.totalorder %s31_s16, %s31_s16 }
   0xc   :  { %p4370_p3 = scmp.ne.s32.totalorder %s31_s16, %s4369_s26  ;;  %p4375_p5 = scmp.lt.s32.totalorder %s4369_s26, %s4369_s26 }
   0xe   :  { %p4376_p6 = por %p4375_p5, %p4374_p4 }
  0x10   :  { %p4377_p7 = pnand %p4376_p6, %p4370_p3 }
  0x12   :  { %4380 = shalt.err (!%p4377_p7)
}
  0x13   :  { %s4479_s27 = smov 128   ;;  %s4480_s28 = smov 8  }
  0x14   :  { %36 = dma.hbm_to_vmem [thread:$0]  %s6211_s1, 2048, %s31_s16, [#allocation7], %s4479_s27, %s4479_s27, %s4480_s28  }
  0x15   :  { %s4381_s7 = scalar_lea.hbm %s6210_s0, 2048 }
  0x16   :  { %p4382_p8 = scmp.ne.s32.totalorder %s6210_s0, %s4381_s7  ;;  %p4385_p9 = scmp.lt.u32.totalorder %s4381_s7, %s6210_s0 }
  0x18   :  { %p4387_p10 = pnand %p4385_p9, %p4382_p8 }
  0x1a   :  { %4390 = shalt.err (!%p4387_p10)
}
  0x1b   :  { %s4391_s12 = scalar_lea.vmem %s4516_s18, 2048  ;;  %p4396_p12 = scmp.lt.s32.totalorder %s4516_s18, %s4516_s18 }
  0x1c   :  { %p4392_p11 = scmp.ne.s32.totalorder %s4516_s18, %s4391_s12  ;;  %p4397_p13 = scmp.lt.s32.totalorder %s4391_s12, %s4391_s12 }
  0x1e   :  { %p4398_p0 = por %p4397_p13, %p4396_p12 }
  0x20   :  { %p4399_p1 = pnand %p4398_p0, %p4392_p11 }
  0x22   :  { %4402 = shalt.err (!%p4399_p1)
}
  0x23   :  { %24 = dma.hbm_to_vmem [thread:$0]  %s6210_s0, 2048, %s4516_s18, [#allocation4], %s4479_s27, %s4479_s27, %s4480_s28  }
  0x24   :  { %s4481_s14 = smov [#allocation8]   ;;  %s4482_s16 = smov [#allocation9]  }
  0x25   :  { %s42_s15 = sshll.u32 %s4481_s14, 4  ;;  %s54_s17 = sshll.u32 %s4482_s16, 4  ;;  %s43_s15 = int_to_ptr.vmem [resolvable:$true] %s42_s15  ;;  %s4553_s17 = int_to_ptr.vmem [resolvable:$true] %s54_s17 }
  0x26   :  { %s4403_s21 = scalar_lea.hbm %s6212_s2, 256 }
  0x27   :  { %p4404_p2 = scmp.ne.s32.totalorder %s6212_s2, %s4403_s21  ;;  %p4407_p3 = scmp.lt.u32.totalorder %s4403_s21, %s6212_s2 }
  0x29   :  { %p4409_p4 = pnand %p4407_p3, %p4404_p2 }
  0x2b   :  { %4412 = shalt.err (!%p4409_p4)
}
  0x2c   :  { %s4413_s0 = scalar_lea.vmem %s43_s15, 256  ;;  %p4418_p6 = scmp.lt.s32.totalorder %s43_s15, %s43_s15 }
  0x2d   :  { %p4414_p5 = scmp.ne.s32.totalorder %s43_s15, %s4413_s0  ;;  %p4419_p7 = scmp.lt.s32.totalorder %s4413_s0, %s4413_s0 }
  0x2f   :  { %p4420_p8 = por %p4419_p7, %p4418_p6 }
  0x31   :  { %p4421_p9 = pnand %p4420_p8, %p4414_p5 }
  0x33   :  { %4424 = shalt.err (!%p4421_p9)
}
  0x34   :  { %48 = dma.hbm_to_vmem [thread:$0]  %s6212_s2, 256, %s43_s15, [#allocation7], %s4479_s27, %s4479_s27, %s4480_s28  }
  0x35   :  { %s4425_s5 = scalar_lea.hbm %s6213_s3, 256 }
  0x36   :  { %p4426_p10 = scmp.ne.s32.totalorder %s6213_s3, %s4425_s5  ;;  %p4429_p11 = scmp.lt.u32.totalorder %s4425_s5, %s6213_s3 }
  0x38   :  { %p4431_p12 = pnand %p4429_p11, %p4426_p10 }
  0x3a   :  { %4434 = shalt.err (!%p4431_p12)
}
  0x3b   :  { %s4435_s10 = scalar_lea.vmem %s4553_s17, 256  ;;  %p4440_p0 = scmp.lt.s32.totalorder %s4553_s17, %s4553_s17 }
  0x3c   :  { %p4436_p13 = scmp.ne.s32.totalorder %s4553_s17, %s4435_s10  ;;  %p4441_p1 = scmp.lt.s32.totalorder %s4435_s10, %s4435_s10 }
  0x3e   :  { %p4442_p2 = por %p4441_p1, %p4440_p0 }
  0x40   :  { %p4443_p3 = pnand %p4442_p2, %p4436_p13 }
  0x42   :  { %4446 = shalt.err (!%p4443_p3)
}
  0x43   :  { %60 = dma.hbm_to_vmem [thread:$0]  %s6213_s3, 256, %s4553_s17, [#allocation10], %s4479_s27, %s4479_s27, %s4480_s28  }
  0x44   :  { %4469 = dma.done.wait [#allocation4], 2048  }
  0x45   :  { %4470 = vsyncadd [#allocation4], 4294965248 }
  0x46   :  { %4471 = dma.done.wait [#allocation7], 2304  }
  0x47   :  { %4472 = vsyncadd [#allocation7], 4294964992 }
  0x48   :  { %4473 = dma.done.wait [#allocation10], 256  }
  0x49   :  { %4474 = vsyncadd [#allocation10], 4294967040  ;;  %vm105_vm0 = vcmask 130048   ;;  %v4590_v0 = vld [vmem:[#allocation6] sm:$0xff]  ;;  %v4594_v2 = vld [vmem:[#allocation6 + $0x8] sm:$0xff]  ;;  %s4483_s3 = smov 16  }
  0x4a   :  { %v4592_v1 = vld [vmem:[#allocation3] sm:$0xff]  ;;  %v154_v3 = vsel %vm105_vm0, %v4590_v0, -inf  ;;  %v4600_v5 = vld [vmem:[#allocation3 + $0x8] sm:$0xff]  ;;  %v157_v6 = vsel %vm105_vm0, %v4594_v2, -inf  ;;  %v325_v10 = vsel %vm105_vm0, %v4594_v2, inf  ;;  %v322_v11 = vsel %vm105_vm0, %v4590_v0, inf }
  0x4b   :  { %v106_v4 = vsel %vm105_vm0, %v4592_v1, -inf  ;;  %155 = vmax.xlane.f32.xlu1 %v154_v3  ;;  %v109_v7 = vsel %vm105_vm0, %v4600_v5, -inf  ;;  %v277_v8 = vsel %vm105_vm0, %v4600_v5, inf  ;;  %v274_v9 = vsel %vm105_vm0, %v4592_v1, inf  ;;  %v4614_v12 = vld [vmem:[#allocation3 + $0x18] sm:$0xff]  ;;  %v4616_v13 = vld [vmem:[#allocation3 + $0x10] sm:$0xff] }
  0x4c   :  { %107 = vmax.xlane.f32.xlu0 %v106_v4  ;;  %v115_v14 = vsel %vm105_vm0, %v4614_v12, -inf  ;;  %v112_v15 = vsel %vm105_vm0, %v4616_v13, -inf  ;;  %v4622_v16 = vld [vmem:[#allocation6 + $0x18] sm:$0xff]  ;;  %v4624_v17 = vld [vmem:[#allocation6 + $0x10] sm:$0xff]  ;;  %v283_v20 = vsel %vm105_vm0, %v4614_v12, inf  ;;  %v280_v21 = vsel %vm105_vm0, %v4616_v13, inf }
  0x4d   :  { %v163_v18 = vsel %vm105_vm0, %v4622_v16, -inf  ;;  %v160_v19 = vsel %vm105_vm0, %v4624_v17, -inf  ;;  %v331_v22 = vsel %vm105_vm0, %v4622_v16, inf  ;;  %v328_v23 = vsel %vm105_vm0, %v4624_v17, inf  ;;  %v4638_v24 = vld [vmem:[#allocation3 + $0x28] sm:$0xff]  ;;  %v4640_v25 = vld [vmem:[#allocation3 + $0x20] sm:$0xff] }
  0x4e   :  { %v121_v26 = vsel %vm105_vm0, %v4638_v24, -inf  ;;  %v118_v27 = vsel %vm105_vm0, %v4640_v25, -inf  ;;  %v4646_v28 = vld [vmem:[#allocation6 + $0x28] sm:$0xff]  ;;  %v4648_v29 = vld [vmem:[#allocation6 + $0x20] sm:$0xff]  ;;  %v289_v32 = vsel %vm105_vm0, %v4638_v24, inf  ;;  %v286_v33 = vsel %vm105_vm0, %v4640_v25, inf }
  0x4f   :  { %158 = vmax.xlane.f32.xlu1 %v157_v6  ;;  %v169_v30 = vsel %vm105_vm0, %v4646_v28, -inf  ;;  %v166_v31 = vsel %vm105_vm0, %v4648_v29, -inf  ;;  %v337_v34 = vsel %vm105_vm0, %v4646_v28, inf  ;;  %v334_v35 = vsel %vm105_vm0, %v4648_v29, inf  ;;  %v4662_v36 = vld [vmem:[#allocation3 + $0x38] sm:$0xff]  ;;  %v4664_v37 = vld [vmem:[#allocation3 + $0x30] sm:$0xff] }
  0x50   :  { %110 = vmax.xlane.f32.xlu0 %v109_v7  ;;  %v127_v38 = vsel %vm105_vm0, %v4662_v36, -inf  ;;  %v124_v39 = vsel %vm105_vm0, %v4664_v37, -inf  ;;  %v4670_v40 = vld [vmem:[#allocation6 + $0x38] sm:$0xff]  ;;  %v4672_v41 = vld [vmem:[#allocation6 + $0x30] sm:$0xff]  ;;  %v295_v44 = vsel %vm105_vm0, %v4662_v36, inf  ;;  %v292_v45 = vsel %vm105_vm0, %v4664_v37, inf }
  0x51   :  { %v175_v42 = vsel %vm105_vm0, %v4670_v40, -inf  ;;  %v172_v43 = vsel %vm105_vm0, %v4672_v41, -inf  ;;  %v540_v46 = vld [vmem:[#allocation9] sm:$0xff]  ;;  %v541_v47 = vld [vmem:[#allocation9 + $0x8] sm:$0xff]  ;;  %v343_v49 = vsel %vm105_vm0, %v4670_v40, inf  ;;  %v340_v50 = vsel %vm105_vm0, %v4672_v41, inf }
  0x52   :  { %v4682_v48 = vpack.c.bf16 %v541_v47, %v540_v46  ;;  %v4690_v51 = vld [vmem:[#allocation3 + $0x48] sm:$0xff]  ;;  %v4692_v52 = vld [vmem:[#allocation3 + $0x40] sm:$0xff]  ;;  %v4718_v63 = vld [vmem:[#allocation3 + $0x58] sm:$0xff]  ;;  %vm1056_vm1 = vcmask 261248   ;;  %s4484_s27 = smov 32   ;;  %s4485_s28 = smov 48  }
  0x53   :  { %278 = vmin.xlane.f32.xlu1 %v277_v8  ;;  %v133_v53 = vsel %vm105_vm0, %v4690_v51, -inf  ;;  %v130_v54 = vsel %vm105_vm0, %v4692_v52, -inf  ;;  %v4702_v55 = vld [vmem:[#allocation6 + $0x48] sm:$0xff]  ;;  %v4704_v56 = vld [vmem:[#allocation6 + $0x40] sm:$0xff]  ;;  %v301_v59 = vsel %vm105_vm0, %v4690_v51, inf  ;;  %v298_v60 = vsel %vm105_vm0, %v4692_v52, inf }
  0x54   :  { %275 = vmin.xlane.f32.xlu0 %v274_v9  ;;  %4150 = vmatprep.subr.bf16.mxu0 %v4682_v48  ;;  %v181_v57 = vsel %vm105_vm0, %v4702_v55, -inf  ;;  %v178_v58 = vsel %vm105_vm0, %v4704_v56, -inf  ;;  %v349_v61 = vsel %vm105_vm0, %v4702_v55, inf  ;;  %v346_v62 = vsel %vm105_vm0, %v4704_v56, inf  ;;  %v4720_v3 = vld [vmem:[#allocation3 + $0x50] sm:$0xff]  ;;  %v4726_v7 = vld [vmem:[#allocation6 + $0x58] sm:$0xff] }
  0x55   :  { %4154 = vmatprep.subr.bf16.mxu1 %v4682_v48  ;;  %4152 = vmatpush3.bf16.msra.mxu0 %v4682_v48  ;;  %v139_v4 = vsel %vm105_vm0, %v4718_v63, -inf  ;;  %v136_v6 = vsel %vm105_vm0, %v4720_v3, -inf  ;;  %v4728_v8 = vld [vmem:[#allocation6 + $0x50] sm:$0xff]  ;;  %v187_v9 = vsel %vm105_vm0, %v4726_v7, -inf  ;;  %s4486_s12 = smov 64   ;;  %vm1330_vm2 = vcmask 392448  }
  0x56   :  { %4156 = vmatpush3.bf16.msra.mxu1 %v4682_v48  ;;  %4158 = vmatprep.subr.bf16.mxu0 %v4682_v48  ;;  %vm1604_vm3 = vcmask 523648   ;;  %vm1878_vm4 = vcmask 654848   ;;  %s4487_s1 = smov 112   ;;  %s4488_s13 = smov 96  }
  0x57   :  { %326 = vmin.xlane.f32.xlu1 %v325_v10  ;;  %4162 = vmatprep.subr.bf16.mxu1 %v4682_v48  ;;  %v184_v10 = vsel %vm105_vm0, %v4728_v8, -inf  ;;  %s4489_s14 = smov [#allocation11]  }
  0x58   :  { %323 = vmin.xlane.f32.xlu0 %v322_v11  ;;  %v307_v11 = vsel %vm105_vm0, %v4718_v63, inf  ;;  %s3721_s15 = sshll.u32 %s4489_s14, 4  ;;  %s3722_s15 = int_to_ptr.vmem [resolvable:$true] %s3721_s15 }
  0x59   :  { %s4447_s16 = scalar_lea.vmem %s3722_s15, 128  ;;  %p4452_p5 = scmp.lt.s32.totalorder %s3722_s15, %s3722_s15 }
  0x5a   :  { %p4448_p4 = scmp.ne.s32.totalorder %s3722_s15, %s4447_s16  ;;  %p4453_p6 = scmp.lt.s32.totalorder %s4447_s16, %s4447_s16 }
  0x5b   :  { %116 = vmax.xlane.f32.xlu1 %v115_v14  ;;  %v304_v14 = vsel %vm105_vm0, %v4720_v3, inf }
  0x5c   :  { %113 = vmax.xlane.f32.xlu0 %v112_v15  ;;  %v355_v15 = vsel %vm105_vm0, %v4726_v7, inf  ;;  %p4454_p7 = por %p4453_p6, %p4452_p5 }
  0x5e   :  { %p4455_p8 = pnand %p4454_p7, %p4448_p4 }
  0x5f   :  { %164 = vmax.xlane.f32.xlu1 %v163_v18  ;;  %v352_v18 = vsel %vm105_vm0, %v4728_v8, inf }
  0x60   :  { %161 = vmax.xlane.f32.xlu0 %v160_v19  ;;  %v4742_v19 = vld [vmem:[#allocation3 + $0x68] sm:$0xff] }
  0x63   :  { %284 = vmin.xlane.f32.xlu1 %v283_v20  ;;  %v4744_v20 = vld [vmem:[#allocation3 + $0x60] sm:$0xff] }
  0x64   :  { %281 = vmin.xlane.f32.xlu0 %v280_v21  ;;  %v145_v21 = vsel %vm105_vm0, %v4742_v19, -inf }
  0x67   :  { %332 = vmin.xlane.f32.xlu1 %v331_v22  ;;  %v142_v22 = vsel %vm105_vm0, %v4744_v20, -inf }
  0x68   :  { %329 = vmin.xlane.f32.xlu0 %v328_v23  ;;  %v4750_v23 = vld [vmem:[#allocation6 + $0x68] sm:$0xff] }
  0x6b   :  { %122 = vmax.xlane.f32.xlu1 %v121_v26  ;;  %v4752_v26 = vld [vmem:[#allocation6 + $0x60] sm:$0xff] }
  0x6c   :  { %119 = vmax.xlane.f32.xlu0 %v118_v27  ;;  %v193_v27 = vsel %vm105_vm0, %v4750_v23, -inf }
  0x6f   :  { %170 = vmax.xlane.f32.xlu1 %v169_v30  ;;  %v190_v30 = vsel %vm105_vm0, %v4752_v26, -inf }
  0x70   :  { %167 = vmax.xlane.f32.xlu0 %v166_v31  ;;  %v313_v31 = vsel %vm105_vm0, %v4742_v19, inf }
  0x73   :  { %290 = vmin.xlane.f32.xlu1 %v289_v32  ;;  %v310_v32 = vsel %vm105_vm0, %v4744_v20, inf }
  0x74   :  { %287 = vmin.xlane.f32.xlu0 %v286_v33  ;;  %v361_v33 = vsel %vm105_vm0, %v4750_v23, inf }
  0x77   :  { %338 = vmin.xlane.f32.xlu1 %v337_v34  ;;  %v358_v34 = vsel %vm105_vm0, %v4752_v26, inf }
  0x78   :  { %335 = vmin.xlane.f32.xlu0 %v334_v35  ;;  %v4766_v35 = vld [vmem:[#allocation3 + $0x78] sm:$0xff] }
  0x79   :  { %v319_v47 = vsel %vm105_vm0, %v4766_v35, inf }
  0x7b   :  { %128 = vmax.xlane.f32.xlu1 %v127_v38  ;;  %v4768_v38 = vld [vmem:[#allocation3 + $0x70] sm:$0xff] }
  0x7c   :  { %125 = vmax.xlane.f32.xlu0 %v124_v39  ;;  %v151_v39 = vsel %vm105_vm0, %v4766_v35, -inf }
  0x7f   :  { %176 = vmax.xlane.f32.xlu1 %v175_v42  ;;  %v148_v42 = vsel %vm105_vm0, %v4768_v38, -inf }
  0x80   :  { %173 = vmax.xlane.f32.xlu0 %v172_v43  ;;  %v4774_v43 = vld [vmem:[#allocation6 + $0x78] sm:$0xff] }
  0x83   :  { %296 = vmin.xlane.f32.xlu1 %v295_v44  ;;  %v4776_v44 = vld [vmem:[#allocation6 + $0x70] sm:$0xff] }
  0x84   :  { %293 = vmin.xlane.f32.xlu0 %v292_v45  ;;  %v199_v45 = vsel %vm105_vm0, %v4774_v43, -inf  ;;  %v196_v46 = vsel %vm105_vm0, %v4776_v44, -inf }
  0x87   :  { %344 = vmin.xlane.f32.xlu1 %v343_v49  ;;  %v316_v49 = vsel %vm105_vm0, %v4768_v38, inf }
  0x88   :  { %341 = vmin.xlane.f32.xlu0 %v340_v50  ;;  %v367_v50 = vsel %vm105_vm0, %v4774_v43, inf }
  0x8b   :  { %134 = vmax.xlane.f32.xlu1 %v133_v53  ;;  %v364_v53 = vsel %vm105_vm0, %v4776_v44, inf }
  0x8c   :  { %131 = vmax.xlane.f32.xlu0 %v130_v54 }
  0x8f   :  { %182 = vmax.xlane.f32.xlu1 %v181_v57 }
  0x90   :  { %179 = vmax.xlane.f32.xlu0 %v178_v58 }
  0x93   :  { %302 = vmin.xlane.f32.xlu1 %v301_v59 }
  0x94   :  { %299 = vmin.xlane.f32.xlu0 %v298_v60 }
  0x97   :  { %350 = vmin.xlane.f32.xlu1 %v349_v61 }
  0x98   :  { %347 = vmin.xlane.f32.xlu0 %v346_v62 }
  0x9b   :  { %140 = vmax.xlane.f32.xlu1 %v139_v4 }
  0x9c   :  { %137 = vmax.xlane.f32.xlu0 %v136_v6 }
  0x9f   :  { %188 = vmax.xlane.f32.xlu1 %v187_v9 }
  0xa0   :  { %185 = vmax.xlane.f32.xlu0 %v184_v10 }
  0xa3   :  { %308 = vmin.xlane.f32.xlu1 %v307_v11 }
  0xa4   :  { %305 = vmin.xlane.f32.xlu0 %v304_v14 }
  0xa7   :  { %356 = vmin.xlane.f32.xlu1 %v355_v15 }
  0xa8   :  { %353 = vmin.xlane.f32.xlu0 %v352_v18 }
  0xab   :  { %146 = vmax.xlane.f32.xlu1 %v145_v21 }
  0xac   :  { %143 = vmax.xlane.f32.xlu0 %v142_v22 }
  0xaf   :  { %194 = vmax.xlane.f32.xlu1 %v193_v27 }
  0xb0   :  { %191 = vmax.xlane.f32.xlu0 %v190_v30 }
  0xb3   :  { %314 = vmin.xlane.f32.xlu1 %v313_v31 }
  0xb4   :  { %311 = vmin.xlane.f32.xlu0 %v310_v32 }
  0xb7   :  { %362 = vmin.xlane.f32.xlu1 %v361_v33 }
  0xb8   :  { %359 = vmin.xlane.f32.xlu0 %v358_v34 }
  0xbb   :  { %152 = vmax.xlane.f32.xlu1 %v151_v39 }
  0xbc   :  { %149 = vmax.xlane.f32.xlu0 %v148_v42 }
  0xbf   :  { %200 = vmax.xlane.f32.xlu1 %v199_v45 }
  0xc0   :  { %197 = vmax.xlane.f32.xlu0 %v196_v46 }
  0xc3   :  { %320 = vmin.xlane.f32.xlu1 %v319_v47 }
  0xc4   :  { %317 = vmin.xlane.f32.xlu0 %v316_v49 }
  0xc7   :  { %368 = vmin.xlane.f32.xlu1 %v367_v50 }
  0xc8   :  { %365 = vmin.xlane.f32.xlu0 %v364_v53 }
  0xd8   :  { %v156_v54 = vpop.xlane.xlu1 %155 }
  0xd9   :  { %v108_v57 = vpop.xlane.xlu0 %107 }
  0xda   :  { %v202_v60 = vmax.f32 %v108_v57, %v156_v54 }
  0xdc   :  { %v159_v58 = vpop.xlane.xlu1 %158 }
  0xdd   :  { %v111_v59 = vpop.xlane.xlu0 %110 }
  0xde   :  { %v203_v61 = vmax.f32 %v111_v59, %v159_v58 }
  0xe0   :  { %v218_v62 = vmax.f32 %v202_v60, %v203_v61  ;;  %v279_v4 = vpop.xlane.xlu1 %278 }
  0xe1   :  { %v276_v6 = vpop.xlane.xlu0 %275 }
  0xe2   :  { %v219_v9 = vrot.slane %v218_v62, 4 }
  0xe4   :  { %v220_v10 = vmax.f32 %v218_v62, %v219_v9  ;;  %v327_v11 = vpop.xlane.xlu1 %326 }
  0xe5   :  { %v324_v14 = vpop.xlane.xlu0 %323  ;;  %v371_v15 = vmin.f32 %v279_v4, %v327_v11 }
  0xe6   :  { %v370_v18 = vmin.f32 %v276_v6, %v324_v14  ;;  %v221_v21 = vrot.slane %v220_v10, 2 }
  0xe8   :  { %v386_v22 = vmin.f32 %v370_v18, %v371_v15  ;;  %v117_v27 = vpop.xlane.xlu1 %116  ;;  %v222_v32 = vmax.f32 %v220_v10, %v221_v21 }
  0xe9   :  { %v114_v30 = vpop.xlane.xlu0 %113 }
  0xea   :  { %v387_v31 = vrot.slane %v386_v22, 4  ;;  %v223_v47 = vrot.slane %v222_v32, 1 }
  0xec   :  { %v388_v33 = vmin.f32 %v386_v22, %v387_v31  ;;  %v165_v34 = vpop.xlane.xlu1 %164  ;;  %v224_v59 = vmax.f32 %v222_v32, %v223_v47 }
  0xed   :  { %v162_v39 = vpop.xlane.xlu0 %161  ;;  %v205_v45 = vmax.f32 %v117_v27, %v165_v34 }
  0xee   :  { %v389_v42 = vrot.slane %v388_v33, 2  ;;  %v204_v46 = vmax.f32 %v114_v30, %v162_v39 }
  0xf0   :  { %v390_v49 = vmin.f32 %v388_v33, %v389_v42  ;;  %v225_v50 = vmax.f32 %v204_v46, %v205_v45  ;;  %v285_v53 = vpop.xlane.xlu1 %284 }
  0xf1   :  { %v282_v54 = vpop.xlane.xlu0 %281 }
  0xf2   :  { %v391_v57 = vrot.slane %v390_v49, 1  ;;  %v226_v58 = vrot.slane %v225_v50, 4 }
  0xf4   :  { %v392_v60 = vmin.f32 %v390_v49, %v391_v57  ;;  %v227_v61 = vmax.f32 %v225_v50, %v226_v58  ;;  %v333_v62 = vpop.xlane.xlu1 %332 }
  0xf5   :  { %v330_v4 = vpop.xlane.xlu0 %329  ;;  %v373_v9 = vmin.f32 %v285_v53, %v333_v62 }
  0xf6   :  { %v442_v6 = vsub.f32 %v224_v59, %v392_v60  ;;  %v372_v10 = vmin.f32 %v282_v54, %v330_v4  ;;  %v228_v14 = vrot.slane %v227_v61, 2  ;;  %v474_v54 = vsub.f32 %v4592_v1, %v392_v60 }
  0xf7   :  { %v506_v57 = vsub.f32 %v4590_v0, %v392_v60  ;;  %v475_v58 = vsub.f32 %v4600_v5, %v392_v60  ;;  %v507_v59 = vsub.f32 %v4594_v2, %v392_v60 }
  0xf8   :  { %v450_v11 = vadd.f32 1e-08, %v442_v6  ;;  %v393_v15 = vmin.f32 %v372_v10, %v373_v9  ;;  %v123_v18 = vpop.xlane.xlu1 %122  ;;  %v229_v27 = vmax.f32 %v227_v61, %v228_v14 }
  0xf9   :  { %v120_v21 = vpop.xlane.xlu0 %119 }
  0xfa   :  { %4215 = vrcp.f32 %v450_v11  ;;  %v394_v22 = vrot.slane %v393_v15, 4  ;;  %v230_v42 = vrot.slane %v229_v27, 1 }
  0xfc   :  { %v395_v30 = vmin.f32 %v393_v15, %v394_v22  ;;  %v171_v31 = vpop.xlane.xlu1 %170  ;;  %v231_v62 = vmax.f32 %v229_v27, %v230_v42 }
  0xfd   :  { %v168_v33 = vpop.xlane.xlu0 %167  ;;  %v207_v32 = vmax.f32 %v123_v18, %v171_v31 }
  0xfe   :  { %v396_v34 = vrot.slane %v395_v30, 2  ;;  %v206_v39 = vmax.f32 %v120_v21, %v168_v33 }
 0x100   :  { %v397_v45 = vmin.f32 %v395_v30, %v396_v34  ;;  %v232_v46 = vmax.f32 %v206_v39, %v207_v32  ;;  %v291_v47 = vpop.xlane.xlu1 %290 }
 0x101   :  { %v288_v49 = vpop.xlane.xlu0 %287 }
 0x102   :  { %v398_v50 = vrot.slane %v397_v45, 1  ;;  %v233_v53 = vrot.slane %v232_v46, 4 }
 0x104   :  { %v4216_v61 = vpop.eup %4215  ;;  %v399_v4 = vmin.f32 %v397_v45, %v398_v50  ;;  %v234_v6 = vmax.f32 %v232_v46, %v233_v53  ;;  %v339_v9 = vpop.xlane.xlu1 %338 }
 0x105   :  { %v336_v10 = vpop.xlane.xlu0 %335  ;;  %v4794_v11 = vmul.f32 %v4216_v61, %v474_v54  ;;  %v4796_v14 = vmul.f32 %v4216_v61, %v506_v57  ;;  %v4798_v15 = vmul.f32 %v4216_v61, %v475_v58  ;;  %v4800_v18 = vmul.f32 %v4216_v61, %v507_v59 }
 0x106   :  { %v443_v1 = vsub.f32 %v231_v62, %v399_v4  ;;  %v375_v0 = vmin.f32 %v291_v47, %v339_v9  ;;  %v374_v21 = vmin.f32 %v288_v49, %v336_v10  ;;  %v235_v60 = vrot.slane %v234_v6, 2 }
 0x107   :  { %3957 = vmatprep.mubr.msk.f32.mxu0 %vm105_vm0, %v4794_v11  ;;  %3985 = vmatprep.mubr.msk.f32.mxu1 %vm105_vm0, %v4796_v14  ;;  %v4808_v2 = vmul.f32 %v4800_v18, %v4798_v15  ;;  %v4819_v33 = vmul.f32 %v4796_v14, %v4794_v11  ;;  %v476_v61 = vsub.f32 %v4616_v13, %v399_v4 }
 0x108   :  { %v451_v5 = vadd.f32 1e-08, %v443_v1  ;;  %v400_v22 = vmin.f32 %v374_v21, %v375_v0  ;;  %3958 = vmatmul.mubr.msk.f32.vlgmr.msra.gmra.mrb[0].mxu0 %vm105_vm0, %v4798_v15  ;;  %3986 = vmatmul.mubr.msk.f32.vlgmr.msra.gmra.mrb[0].mxu1 %vm105_vm0, %v4800_v18  ;;  %v129_v27 = vpop.xlane.xlu1 %128  ;;  %v236_v34 = vmax.f32 %v234_v6, %v235_v60  ;;  %v508_v62 = vsub.f32 %v4624_v17, %v399_v4 }
 0x109   :  { %v126_v30 = vpop.xlane.xlu0 %125  ;;  %4160 = vmatpush3.bf16.msra.mxu0 %v4682_v48  ;;  %4164 = vmatpush3.bf16.msra.mxu1 %v4682_v48  ;;  %v477_v9 = vsub.f32 %v4614_v12, %v399_v4  ;;  %v509_v6 = vsub.f32 %v4622_v16, %v399_v4 }
 0x10a   :  { %4217 = vrcp.f32 %v451_v5  ;;  %v401_v31 = vrot.slane %v400_v22, 4  ;;  %4166 = vmatprep.subr.bf16.mxu0 %v4682_v48  ;;  %v237_v49 = vrot.slane %v236_v34, 1 }
 0x10c   :  { %v402_v32 = vmin.f32 %v400_v22, %v401_v31  ;;  %v177_v39 = vpop.xlane.xlu1 %176  ;;  %v238_v1 = vmax.f32 %v236_v34, %v237_v49 }
 0x10d   :  { %v174_v42 = vpop.xlane.xlu0 %173  ;;  %v209_v46 = vmax.f32 %v129_v27, %v177_v39 }
 0x10e   :  { %v403_v45 = vrot.slane %v402_v32, 2  ;;  %v208_v47 = vmax.f32 %v126_v30, %v174_v42 }
 0x110   :  { %v404_v50 = vmin.f32 %v402_v32, %v403_v45  ;;  %v239_v53 = vmax.f32 %v208_v47, %v209_v46  ;;  %v297_v54 = vpop.xlane.xlu1 %296 }
 0x111   :  { %v294_v57 = vpop.xlane.xlu0 %293 }
 0x112   :  { %v405_v58 = vrot.slane %v404_v50, 1  ;;  %v240_v59 = vrot.slane %v239_v53, 4 }
 0x114   :  { %v4218_v10 = vpop.eup %4217  ;;  %v406_v0 = vmin.f32 %v404_v50, %v405_v58  ;;  %v241_v21 = vmax.f32 %v239_v53, %v240_v59  ;;  %v345_v5 = vpop.xlane.xlu1 %344 }
 0x115   :  { %v342_v60 = vpop.xlane.xlu0 %341  ;;  %v4825_v22 = vmul.f32 %v4218_v10, %v476_v61  ;;  %v4827_v27 = vmul.f32 %v4218_v10, %v508_v62  ;;  %v4829_v30 = vmul.f32 %v4218_v10, %v477_v9  ;;  %v4831_v31 = vmul.f32 %v4218_v10, %v509_v6 }
 0x116   :  { %v444_v13 = vsub.f32 %v238_v1, %v406_v0  ;;  %v377_v17 = vmin.f32 %v297_v54, %v345_v5  ;;  %v376_v32 = vmin.f32 %v294_v57, %v342_v60  ;;  %v242_v16 = vrot.slane %v241_v21, 2 }
 0x117   :  { %3960 = vmatprep.mubr.msk.f32.mxu0 %vm105_vm0, %v4825_v22  ;;  %3988 = vmatprep.mubr.msk.f32.mxu1 %vm105_vm0, %v4827_v27  ;;  %v4843_v45 = vmul.f32 %v4827_v27, %v4825_v22  ;;  %v4847_v46 = vmul.f32 %v4831_v31, %v4829_v30  ;;  %v478_v5 = vsub.f32 %v4640_v25, %v406_v0 }
 0x118   :  { %v452_v12 = vadd.f32 1e-08, %v444_v13  ;;  %v407_v4 = vmin.f32 %v376_v32, %v377_v17  ;;  %3961 = vmatmul.mubr.msk.f32.gmra.mrb[2].mxu0 %vm105_vm0, %v4829_v30  ;;  %3989 = vmatmul.mubr.msk.f32.gmra.mrb[2].mxu1 %vm105_vm0, %v4831_v31  ;;  %v135_v34 = vpop.xlane.xlu1 %134  ;;  %v243_v47 = vmax.f32 %v241_v21, %v242_v16  ;;  %v510_v60 = vsub.f32 %v4648_v29, %v406_v0 }
 0x119   :  { %v132_v39 = vpop.xlane.xlu0 %131  ;;  %v479_v13 = vsub.f32 %v4638_v24, %v406_v0  ;;  %v511_v21 = vsub.f32 %v4646_v28, %v406_v0 }
 0x11a   :  { %4219 = vrcp.f32 %v452_v12  ;;  %v408_v42 = vrot.slane %v407_v4, 4  ;;  %v244_v59 = vrot.slane %v243_v47, 1 }
 0x11c   :  { %v409_v49 = vmin.f32 %v407_v4, %v408_v42  ;;  %v183_v50 = vpop.xlane.xlu1 %182  ;;  %v245_v32 = vmax.f32 %v243_v47, %v244_v59 }
 0x11d   :  { %v180_v53 = vpop.xlane.xlu0 %179  ;;  %v211_v57 = vmax.f32 %v135_v34, %v183_v50 }
 0x11e   :  { %v410_v54 = vrot.slane %v409_v49, 2  ;;  %v210_v58 = vmax.f32 %v132_v39, %v180_v53 }
 0x120   :  { %v411_v61 = vmin.f32 %v409_v49, %v410_v54  ;;  %v246_v62 = vmax.f32 %v210_v58, %v211_v57  ;;  %v303_v9 = vpop.xlane.xlu1 %302 }
 0x121   :  { %v300_v6 = vpop.xlane.xlu0 %299 }
 0x122   :  { %v412_v10 = vrot.slane %v411_v61, 1  ;;  %v247_v1 = vrot.slane %v246_v62, 4 }
 0x124   :  { %v4220_v17 = vpop.eup %4219  ;;  %v413_v12 = vmin.f32 %v411_v61, %v412_v10  ;;  %v248_v16 = vmax.f32 %v246_v62, %v247_v1  ;;  %v351_v4 = vpop.xlane.xlu1 %350 }
 0x125   :  { %v348_v34 = vpop.xlane.xlu0 %347  ;;  %v4853_v39 = vmul.f32 %v4220_v17, %v478_v5  ;;  %v4855_v42 = vmul.f32 %v4220_v17, %v510_v60  ;;  %v4857_v49 = vmul.f32 %v4220_v17, %v479_v13  ;;  %v4859_v50 = vmul.f32 %v4220_v17, %v511_v21 }
 0x126   :  { %v445_v25 = vsub.f32 %v245_v32, %v413_v12  ;;  %v379_v29 = vmin.f32 %v303_v9, %v351_v4  ;;  %v378_v53 = vmin.f32 %v300_v6, %v348_v34  ;;  %v249_v28 = vrot.slane %v248_v16, 2 }
 0x127   :  { %3963 = vmatprep.mubr.msk.f32.mxu0 %vm105_vm0, %v4853_v39  ;;  %3991 = vmatprep.mubr.msk.f32.mxu1 %vm105_vm0, %v4855_v42  ;;  %v4871_v58 = vmul.f32 %v4855_v42, %v4853_v39  ;;  %v4875_v59 = vmul.f32 %v4859_v50, %v4857_v49 }
 0x128   :  { %v453_v24 = vadd.f32 1e-08, %v445_v25  ;;  %v414_v0 = vmin.f32 %v378_v53, %v379_v29  ;;  %3964 = vmatmul.mubr.msk.f32.gmra.mrb[4].mxu0 %vm105_vm0, %v4857_v49  ;;  %3992 = vmatmul.mubr.msk.f32.gmra.mrb[4].mxu1 %vm105_vm0, %v4859_v50  ;;  %v141_v47 = vpop.xlane.xlu1 %140  ;;  %v250_v61 = vmax.f32 %v248_v16, %v249_v28  ;;  %v480_v25 = vsub.f32 %v4664_v37, %v413_v12 }
 0x129   :  { %v138_v54 = vpop.xlane.xlu0 %137  ;;  %v512_v29 = vsub.f32 %v4672_v41, %v413_v12  ;;  %v481_v53 = vsub.f32 %v4662_v36, %v413_v12  ;;  %v513_v16 = vsub.f32 %v4670_v40, %v413_v12 }
 0x12a   :  { %4221 = vrcp.f32 %v453_v24  ;;  %v415_v57 = vrot.slane %v414_v0, 4  ;;  %v251_v60 = vrot.slane %v250_v61, 1 }
 0x12c   :  { %v416_v62 = vmin.f32 %v414_v0, %v415_v57  ;;  %v189_v9 = vpop.xlane.xlu1 %188  ;;  %v252_v28 = vmax.f32 %v250_v61, %v251_v60 }
 0x12d   :  { %v186_v6 = vpop.xlane.xlu0 %185  ;;  %v213_v1 = vmax.f32 %v141_v47, %v189_v9 }
 0x12e   :  { %v417_v10 = vrot.slane %v416_v62, 2  ;;  %v212_v5 = vmax.f32 %v138_v54, %v186_v6 }
 0x130   :  { %v418_v13 = vmin.f32 %v416_v62, %v417_v10  ;;  %v253_v21 = vmax.f32 %v212_v5, %v213_v1  ;;  %v309_v17 = vpop.xlane.xlu1 %308 }
 0x131   :  { %v306_v32 = vpop.xlane.xlu0 %305 }
 0x132   :  { %v419_v4 = vrot.slane %v418_v13, 1  ;;  %v254_v34 = vrot.slane %v253_v21, 4 }
 0x134   :  { %v4222_v24 = vpop.eup %4221  ;;  %v420_v0 = vmin.f32 %v418_v13, %v419_v4  ;;  %v255_v47 = vmax.f32 %v253_v21, %v254_v34  ;;  %v357_v54 = vpop.xlane.xlu1 %356 }
 0x135   :  { %v354_v57 = vpop.xlane.xlu0 %353  ;;  %v4881_v62 = vmul.f32 %v4222_v24, %v480_v25  ;;  %v4883_v9 = vmul.f32 %v4222_v24, %v512_v29  ;;  %v4885_v6 = vmul.f32 %v4222_v24, %v481_v53  ;;  %v4887_v10 = vmul.f32 %v4222_v24, %v513_v16 }
 0x136   :  { %v446_v37 = vsub.f32 %v252_v28, %v420_v0  ;;  %v381_v41 = vmin.f32 %v309_v17, %v357_v54  ;;  %v380_v1 = vmin.f32 %v306_v32, %v354_v57  ;;  %v256_v40 = vrot.slane %v255_v47, 2 }
 0x137   :  { %3966 = vmatprep.mubr.msk.f32.mxu0 %vm105_vm0, %v4881_v62  ;;  %3994 = vmatprep.mubr.msk.f32.mxu1 %vm105_vm0, %v4883_v9  ;;  %v4899_v13 = vmul.f32 %v4883_v9, %v4881_v62  ;;  %v4903_v21 = vmul.f32 %v4887_v10, %v4885_v6 }
 0x138   :  { %v454_v36 = vadd.f32 1e-08, %v446_v37  ;;  %v421_v12 = vmin.f32 %v380_v1, %v381_v41  ;;  %3967 = vmatmul.mubr.msk.f32.gmra.mrb[6].mxu0 %vm105_vm0, %v4885_v6  ;;  %3995 = vmatmul.mubr.msk.f32.gmra.mrb[6].mxu1 %vm105_vm0, %v4887_v10  ;;  %v147_v61 = vpop.xlane.xlu1 %146  ;;  %v257_v17 = vmax.f32 %v255_v47, %v256_v40  ;;  %v482_v1 = vsub.f32 %v4692_v52, %v420_v0 }
 0x139   :  { %v144_v5 = vpop.xlane.xlu0 %143  ;;  %6254 = vst [vmem:[#allocation16_spill] sm:$0xff] %v4903_v21  ;;  %v483_v21 = vsub.f32 %v4690_v51, %v420_v0  ;;  %v515_v47 = vsub.f32 %v4702_v55, %v420_v0 }
 0x13a   :  { %4223 = vrcp.f32 %v454_v36  ;;  %v422_v60 = vrot.slane %v421_v12, 4  ;;  %v258_v16 = vrot.slane %v257_v17, 1  ;;  %v514_v36 = vsub.f32 %v4704_v56, %v420_v0 }
 0x13c   :  { %v423_v32 = vmin.f32 %v421_v12, %v422_v60  ;;  %v195_v4 = vpop.xlane.xlu1 %194  ;;  %v259_v12 = vmax.f32 %v257_v17, %v258_v16 }
 0x13d   :  { %v192_v34 = vpop.xlane.xlu0 %191  ;;  %v215_v29 = vmax.f32 %v147_v61, %v195_v4 }
 0x13e   :  { %v424_v25 = vrot.slane %v423_v32, 2  ;;  %v214_v53 = vmax.f32 %v144_v5, %v192_v34 }
 0x140   :  { %v425_v24 = vmin.f32 %v423_v32, %v424_v25  ;;  %v260_v28 = vmax.f32 %v214_v53, %v215_v29  ;;  %v315_v54 = vpop.xlane.xlu1 %314 }
 0x141   :  { %v312_v57 = vpop.xlane.xlu0 %311 }
 0x142   :  { %v426_v37 = vrot.slane %v425_v24, 1  ;;  %v261_v41 = vrot.slane %v260_v28, 4 }
 0x144   :  { %v4224_v40 = vpop.eup %4223  ;;  %v427_v60 = vmin.f32 %v425_v24, %v426_v37  ;;  %v262_v61 = vmax.f32 %v260_v28, %v261_v41  ;;  %v363_v5 = vpop.xlane.xlu1 %362 }
 0x145   :  { %v360_v4 = vpop.xlane.xlu0 %359  ;;  %v4909_v32 = vmul.f32 %v4224_v40, %v482_v1  ;;  %v4911_v34 = vmul.f32 %v4224_v40, %v514_v36  ;;  %v4913_v25 = vmul.f32 %v4224_v40, %v483_v21  ;;  %v4915_v29 = vmul.f32 %v4224_v40, %v515_v47 }
 0x146   :  { %v447_v52 = vsub.f32 %v259_v12, %v427_v60  ;;  %v383_v56 = vmin.f32 %v315_v54, %v363_v5  ;;  %v382_v53 = vmin.f32 %v312_v57, %v360_v4  ;;  %v263_v55 = vrot.slane %v262_v61, 2 }
 0x147   :  { %3969 = vmatprep.mubr.msk.f32.mxu0 %vm105_vm0, %v4909_v32  ;;  %3997 = vmatprep.mubr.msk.f32.mxu1 %vm105_vm0, %v4911_v34  ;;  %v4927_v24 = vmul.f32 %v4911_v34, %v4909_v32  ;;  %v4931_v28 = vmul.f32 %v4915_v29, %v4913_v25 }
 0x148   :  { %v455_v51 = vadd.f32 1e-08, %v447_v52  ;;  %v428_v0 = vmin.f32 %v382_v53, %v383_v56  ;;  %3970 = vmatmul.mubr.msk.f32.gmra.mrb[8].mxu0 %vm105_vm0, %v4913_v25  ;;  %3998 = vmatmul.mubr.msk.f32.gmra.mrb[8].mxu1 %vm105_vm0, %v4915_v29  ;;  %v153_v21 = vpop.xlane.xlu1 %152  ;;  %v264_v54 = vmax.f32 %v262_v61, %v263_v55  ;;  %v517_v61 = vsub.f32 %v4726_v7, %v427_v60 }
 0x149   :  { %v150_v17 = vpop.xlane.xlu0 %149  ;;  %6255 = vst [vmem:[#allocation17_spill] sm:$0xff] %v4927_v24  ;;  %6256 = vst [vmem:[#allocation18_spill] sm:$0xff] %v4931_v28  ;;  %v516_v24 = vsub.f32 %v4728_v8, %v427_v60  ;;  %v485_v28 = vsub.f32 %v4718_v63, %v427_v60 }
 0x14a   :  { %4225 = vrcp.f32 %v455_v51  ;;  %v429_v16 = vrot.slane %v428_v0, 4  ;;  %v265_v40 = vrot.slane %v264_v54, 1  ;;  %v484_v51 = vsub.f32 %v4720_v3, %v427_v60 }
 0x14c   :  { %v430_v57 = vmin.f32 %v428_v0, %v429_v16  ;;  %v201_v37 = vpop.xlane.xlu1 %200  ;;  %v266_v0 = vmax.f32 %v264_v54, %v265_v40 }
 0x14d   :  { %v198_v41 = vpop.xlane.xlu0 %197  ;;  %v217_v36 = vmax.f32 %v153_v21, %v201_v37 }
 0x14e   :  { %v431_v1 = vrot.slane %v430_v57, 2  ;;  %v216_v47 = vmax.f32 %v150_v17, %v198_v41 }
 0x150   :  { %v432_v12 = vmin.f32 %v430_v57, %v431_v1  ;;  %v267_v5 = vmax.f32 %v216_v47, %v217_v36  ;;  %v321_v4 = vpop.xlane.xlu1 %320 }
 0x151   :  { %v318_v52 = vpop.xlane.xlu0 %317 }
 0x152   :  { %v433_v56 = vrot.slane %v432_v12, 1  ;;  %v268_v53 = vrot.slane %v267_v5, 4 }
 0x154   :  { %v4226_v55 = vpop.eup %4225  ;;  %v434_v16 = vmin.f32 %v432_v12, %v433_v56  ;;  %v269_v21 = vmax.f32 %v267_v5, %v268_v53  ;;  %v369_v17 = vpop.xlane.xlu1 %368 }
 0x155   :  { %v366_v37 = vpop.xlane.xlu0 %365  ;;  %v4937_v57 = vmul.f32 %v4226_v55, %v484_v51  ;;  %v4939_v41 = vmul.f32 %v4226_v55, %v516_v24  ;;  %v4941_v1 = vmul.f32 %v4226_v55, %v485_v28  ;;  %v4943_v36 = vmul.f32 %v4226_v55, %v517_v61 }
 0x156   :  { %v448_v3 = vsub.f32 %v266_v0, %v434_v16  ;;  %v385_v8 = vmin.f32 %v321_v4, %v369_v17  ;;  %v384_v47 = vmin.f32 %v318_v52, %v366_v37  ;;  %v270_v7 = vrot.slane %v269_v21, 2 }
 0x157   :  { %3972 = vmatprep.mubr.msk.f32.mxu0 %vm105_vm0, %v4937_v57  ;;  %4000 = vmatprep.mubr.msk.f32.mxu1 %vm105_vm0, %v4939_v41  ;;  %v4955_v28 = vmul.f32 %v4939_v41, %v4937_v57  ;;  %v4959_v54 = vmul.f32 %v4943_v36, %v4941_v1  ;;  %v486_v53 = vsub.f32 %v4744_v20, %v434_v16 }
 0x158   :  { %v456_v63 = vadd.f32 1e-08, %v448_v3  ;;  %v435_v60 = vmin.f32 %v384_v47, %v385_v8  ;;  %3973 = vmatmul.mubr.msk.f32.gmra.mrb[10].mxu0 %vm105_vm0, %v4941_v1  ;;  %4001 = vmatmul.mubr.msk.f32.gmra.mrb[10].mxu1 %vm105_vm0, %v4943_v36  ;;  %v271_v40 = vmax.f32 %v269_v21, %v270_v7  ;;  %v518_v51 = vsub.f32 %v4752_v26, %v434_v16 }
 0x159   :  { %v487_v61 = vsub.f32 %v4742_v19, %v434_v16  ;;  %v519_v55 = vsub.f32 %v4750_v23, %v434_v16 }
 0x15a   :  { %4227 = vrcp.f32 %v456_v63  ;;  %v436_v24 = vrot.slane %v435_v60, 4  ;;  %v272_v4 = vrot.slane %v271_v40, 1 }
 0x15c   :  { %v437_v12 = vmin.f32 %v435_v60, %v436_v24  ;;  %v273_v17 = vmax.f32 %v271_v40, %v272_v4 }
 0x15e   :  { %v438_v5 = vrot.slane %v437_v12, 2 }
 0x160   :  { %v439_v52 = vmin.f32 %v437_v12, %v438_v5 }
 0x162   :  { %v440_v56 = vrot.slane %v439_v52, 1 }
 0x164   :  { %v4228_v0 = vpop.eup %4227  ;;  %v441_v37 = vmin.f32 %v439_v52, %v440_v56 }
 0x165   :  { %v4965_v3 = vmul.f32 %v4228_v0, %v486_v53  ;;  %v4967_v8 = vmul.f32 %v4228_v0, %v518_v51  ;;  %v4969_v21 = vmul.f32 %v4228_v0, %v487_v61  ;;  %v4971_v47 = vmul.f32 %v4228_v0, %v519_v55  ;;  %v6257_v51 = vld [vmem:[#allocation16_spill] sm:$0xff] }
 0x166   :  { %v449_v63 = vsub.f32 %v273_v17, %v441_v37  ;;  %v488_v26 = vsub.f32 %v4768_v38, %v441_v37  ;;  %v520_v16 = vsub.f32 %v4776_v44, %v441_v37  ;;  %v489_v7 = vsub.f32 %v4766_v35, %v441_v37 }
 0x167   :  { %3975 = vmatprep.mubr.msk.f32.mxu0 %vm105_vm0, %v4965_v3  ;;  %4003 = vmatprep.mubr.msk.f32.mxu1 %vm105_vm0, %v4967_v8  ;;  %v4983_v20 = vmul.f32 %v4967_v8, %v4965_v3  ;;  %v4987_v23 = vmul.f32 %v4971_v47, %v4969_v21  ;;  %v521_v60 = vsub.f32 %v4774_v43, %v441_v37 }
 0x168   :  { %v457_v19 = vadd.f32 1e-08, %v449_v63  ;;  %3976 = vmatmul.mubr.msk.f32.gmra.mrb[12].mxu0 %vm105_vm0, %v4969_v21  ;;  %4004 = vmatmul.mubr.msk.f32.gmra.mrb[12].mxu1 %vm105_vm0, %v4971_v47  ;;  %v542_v35 = vmul.f32 %v4794_v11, %v4794_v11  ;;  %v558_v38 = vmul.f32 %v4796_v14, %v4796_v14  ;;  %v543_v43 = vmul.f32 %v4798_v15, %v4798_v15 }
 0x169   :  { %v559_v44 = vmul.f32 %v4800_v18, %v4800_v18  ;;  %v544_v11 = vmul.f32 %v4825_v22, %v4825_v22  ;;  %v560_v14 = vmul.f32 %v4827_v27, %v4827_v27  ;;  %v545_v15 = vmul.f32 %v4829_v30, %v4829_v30 }
 0x16a   :  { %4229 = vrcp.f32 %v457_v19  ;;  %v561_v18 = vmul.f32 %v4831_v31, %v4831_v31  ;;  %v546_v22 = vmul.f32 %v4853_v39, %v4853_v39  ;;  %v562_v27 = vmul.f32 %v4855_v42, %v4855_v42 }
 0x16b   :  { %v547_v30 = vmul.f32 %v4857_v49, %v4857_v49  ;;  %v548_v31 = vmul.f32 %v4881_v62, %v4881_v62  ;;  %v564_v39 = vmul.f32 %v4883_v9, %v4883_v9  ;;  %v549_v42 = vmul.f32 %v4885_v6, %v4885_v6 }
 0x16c   :  { %v565_v49 = vmul.f32 %v4887_v10, %v4887_v10  ;;  %v566_v62 = vmul.f32 %v4911_v34, %v4911_v34  ;;  %v551_v9 = vmul.f32 %v4913_v25, %v4913_v25  ;;  %v567_v6 = vmul.f32 %v4915_v29, %v4915_v29 }
 0x16d   :  { %v552_v10 = vmul.f32 %v4937_v57, %v4937_v57  ;;  %v553_v34 = vmul.f32 %v4941_v1, %v4941_v1  ;;  %v569_v25 = vmul.f32 %v4943_v36, %v4943_v36  ;;  %v554_v29 = vmul.f32 %v4965_v3, %v4965_v3 }
 0x16e   :  { %v570_v57 = vmul.f32 %v4967_v8, %v4967_v8  ;;  %v571_v1 = vmul.f32 %v4971_v47, %v4971_v47 }
 0x174   :  { %v4230_v24 = vpop.eup %4229 }
 0x175   :  { %v4993_v40 = vmul.f32 %v4230_v24, %v488_v26  ;;  %v4995_v12 = vmul.f32 %v4230_v24, %v520_v16  ;;  %v4997_v5 = vmul.f32 %v4230_v24, %v489_v7  ;;  %v4999_v4 = vmul.f32 %v4230_v24, %v521_v60 }
 0x177   :  { %3978 = vmatprep.mubr.msk.f32.mxu0 %vm105_vm0, %v4993_v40  ;;  %4006 = vmatprep.mubr.msk.f32.mxu1 %vm105_vm0, %v4995_v12  ;;  %v556_v36 = vmul.f32 %v4993_v40, %v4993_v40  ;;  %v572_v52 = vmul.f32 %v4995_v12, %v4995_v12  ;;  %v557_v56 = vmul.f32 %v4997_v5, %v4997_v5 }
 0x178   :  { %3979 = vmatmul.mubr.msk.f32.gmra.mrb[14].mxu0 %vm105_vm0, %v4997_v5  ;;  %4007 = vmatmul.mubr.msk.f32.gmra.mrb[14].mxu1 %vm105_vm0, %v4999_v4  ;;  %v573_v53 = vmul.f32 %v4999_v4, %v4999_v4 }
 0x179   :  { %4013 = vmatprep.mubr.msk.f32.mxu0 %vm105_vm0, %v542_v35  ;;  %4041 = vmatprep.mubr.msk.f32.mxu1 %vm105_vm0, %v558_v38 }
 0x17c   :  { %4014 = vmatmul.mubr.msk.f32.vlgmr.msra.gmra.mrb[16].mxu0 %vm105_vm0, %v543_v43  ;;  %4042 = vmatmul.mubr.msk.f32.vlgmr.msra.gmra.mrb[16].mxu1 %vm105_vm0, %v559_v44 }
 0x17d   :  { %4016 = vmatprep.mubr.msk.f32.mxu0 %vm105_vm0, %v544_v11  ;;  %4044 = vmatprep.mubr.msk.f32.mxu1 %vm105_vm0, %v560_v14 }
 0x17e   :  { %4168 = vmatpush3.bf16.msra.mxu0 %v4682_v48  ;;  %v563_v48 = vmul.f32 %v4859_v50, %v4859_v50  ;;  %v550_v50 = vmul.f32 %v4909_v32, %v4909_v32  ;;  %v568_v32 = vmul.f32 %v4939_v41, %v4939_v41  ;;  %v555_v41 = vmul.f32 %v4969_v21, %v4969_v21 }
 0x180   :  { %4017 = vmatmul.mubr.msk.f32.gmra.mrb[18].mxu0 %vm105_vm0, %v545_v15  ;;  %4045 = vmatmul.mubr.msk.f32.gmra.mrb[18].mxu1 %vm105_vm0, %v561_v18 }
 0x181   :  { %4019 = vmatprep.mubr.msk.f32.mxu0 %vm105_vm0, %v546_v22  ;;  %4047 = vmatprep.mubr.msk.f32.mxu1 %vm105_vm0, %v562_v27 }
 0x184   :  { %4020 = vmatmul.mubr.msk.f32.gmra.mrb[20].mxu0 %vm105_vm0, %v547_v30  ;;  %4048 = vmatmul.mubr.msk.f32.gmra.mrb[20].mxu1 %vm105_vm0, %v563_v48 }
 0x185   :  { %4022 = vmatprep.mubr.msk.f32.mxu0 %vm105_vm0, %v548_v31  ;;  %4050 = vmatprep.mubr.msk.f32.mxu1 %vm105_vm0, %v564_v39 }
 0x188   :  { %4023 = vmatmul.mubr.msk.f32.gmra.mrb[22].mxu0 %vm105_vm0, %v549_v42  ;;  %4051 = vmatmul.mubr.msk.f32.gmra.mrb[22].mxu1 %vm105_vm0, %v565_v49 }
 0x189   :  { %4025 = vmatprep.mubr.msk.f32.mxu0 %vm105_vm0, %v550_v50  ;;  %4053 = vmatprep.mubr.msk.f32.mxu1 %vm105_vm0, %v566_v62 }
 0x18c   :  { %4026 = vmatmul.mubr.msk.f32.gmra.mrb[24].mxu0 %vm105_vm0, %v551_v9  ;;  %4054 = vmatmul.mubr.msk.f32.gmra.mrb[24].mxu1 %vm105_vm0, %v567_v6 }
 0x18d   :  { %4028 = vmatprep.mubr.msk.f32.mxu0 %vm105_vm0, %v552_v10  ;;  %4056 = vmatprep.mubr.msk.f32.mxu1 %vm105_vm0, %v568_v32 }
 0x190   :  { %4029 = vmatmul.mubr.msk.f32.gmra.mrb[26].mxu0 %vm105_vm0, %v553_v34  ;;  %4057 = vmatmul.mubr.msk.f32.gmra.mrb[26].mxu1 %vm105_vm0, %v569_v25 }
 0x191   :  { %4031 = vmatprep.mubr.msk.f32.mxu0 %vm105_vm0, %v554_v29  ;;  %4059 = vmatprep.mubr.msk.f32.mxu1 %vm105_vm0, %v570_v57 }
 0x194   :  { %4032 = vmatmul.mubr.msk.f32.gmra.mrb[28].mxu0 %vm105_vm0, %v555_v41  ;;  %4060 = vmatmul.mubr.msk.f32.gmra.mrb[28].mxu1 %vm105_vm0, %v571_v1 }
 0x195   :  { %4034 = vmatprep.mubr.msk.f32.mxu0 %vm105_vm0, %v556_v36  ;;  %4062 = vmatprep.mubr.msk.f32.mxu1 %vm105_vm0, %v572_v52 }
 0x198   :  { %4035 = vmatmul.mubr.msk.f32.gmra.mrb[30].mxu0 %vm105_vm0, %v557_v56  ;;  %4063 = vmatmul.mubr.msk.f32.gmra.mrb[30].mxu1 %vm105_vm0, %v573_v53 }
 0x199   :  { %4069 = vmatprep.mubr.msk.f32.mxu0 %vm105_vm0, %v4819_v33  ;;  %v6258_v33 = vld [vmem:[#allocation17_spill] sm:$0xff] }
 0x19c   :  { %4070 = vmatmul.mubr.msk.f32.vlgmr.msra.gmra.mrb[32].mxu0 %vm105_vm0, %v4808_v2  ;;  %v6259_v2 = vld [vmem:[#allocation18_spill] sm:$0xff] }
 0x19d   :  { %4072 = vmatprep.mubr.msk.f32.mxu0 %vm105_vm0, %v4843_v45  ;;  %v588_v45 = vmul.f32 %v4995_v12, %v4993_v40 }
 0x1a0   :  { %4073 = vmatmul.mubr.msk.f32.gmra.mrb[34].mxu0 %vm105_vm0, %v4847_v46  ;;  %v589_v46 = vmul.f32 %v4999_v4, %v4997_v5 }
 0x1a1   :  { %4075 = vmatprep.mubr.msk.f32.mxu0 %vm105_vm0, %v4871_v58 }
 0x1a4   :  { %4076 = vmatmul.mubr.msk.f32.gmra.mrb[36].mxu0 %vm105_vm0, %v4875_v59 }
 0x1a5   :  { %4078 = vmatprep.mubr.msk.f32.mxu0 %vm105_vm0, %v4899_v13 }
 0x1a8   :  { %4079 = vmatmul.mubr.msk.f32.gmra.mrb[38].mxu0 %vm105_vm0, %v6257_v51 }
 0x1a9   :  { %4081 = vmatprep.mubr.msk.f32.mxu0 %vm105_vm0, %v6258_v33 }
 0x1ac   :  { %4082 = vmatmul.mubr.msk.f32.gmra.mrb[40].mxu0 %vm105_vm0, %v6259_v2 }
 0x1ad   :  { %4084 = vmatprep.mubr.msk.f32.mxu0 %vm105_vm0, %v4955_v28 }
 0x1b0   :  { %4085 = vmatmul.mubr.msk.f32.gmra.mrb[42].mxu0 %vm105_vm0, %v4959_v54 }
 0x1b1   :  { %4087 = vmatprep.mubr.msk.f32.mxu0 %vm105_vm0, %v4983_v20 }
 0x1b4   :  { %4088 = vmatmul.mubr.msk.f32.gmra.mrb[44].mxu0 %vm105_vm0, %v4987_v23 }
 0x1b5   :  { %4090 = vmatprep.mubr.msk.f32.mxu0 %vm105_vm0, %v588_v45 }
 0x1b8   :  { %4091 = vmatmul.mubr.msk.f32.gmra.mrb[46].mxu0 %vm105_vm0, %v589_v46 }
 0x1db   :  { %v3959_v58 = vpop.f32.mrb[0].mxu0  ;;  %v3987_v59 = vpop.f32.mrb[0].mxu1 }
 0x1dc   :  { %784 = vst.msk [vmem:[#allocation2 + $0x8] sm:$0xff] %vm105_vm0, %v3959_v58  ;;  %1010 = vrot.lane.b32.xlu1 %v3987_v59, %s4483_s3  ;;  %v704_v13 = vpop.f32.mrb[1].mxu0  ;;  %v913_v28 = vpop.f32.mrb[1].mxu1 }
 0x1dd   :  { %783 = vst.msk [vmem:[#allocation2] sm:$0xff] %vm105_vm0, %v704_v13  ;;  %1008 = vrot.lane.b32.xlu0 %v913_v28, %s4483_s3 }
 0x1eb   :  { %v3962_v54 = vpop.f32.mrb[2].mxu0  ;;  %v3990_v61 = vpop.f32.mrb[2].mxu1 }
 0x1ec   :  { %786 = vst.msk [vmem:[#allocation2 + $0x18] sm:$0xff] %vm105_vm0, %v3962_v54  ;;  %1014 = vrot.lane.b32.xlu1 %v3990_v61, %s4483_s3  ;;  %v714_v55 = vpop.f32.mrb[3].mxu0  ;;  %v923_v0 = vpop.f32.mrb[3].mxu1 }
 0x1ed   :  { %785 = vst.msk [vmem:[#allocation2 + $0x10] sm:$0xff] %vm105_vm0, %v714_v55  ;;  %1012 = vrot.lane.b32.xlu0 %v923_v0, %s4483_s3 }
 0x1fb   :  { %v3965_v17 = vpop.f32.mrb[4].mxu0  ;;  %v3993_v37 = vpop.f32.mrb[4].mxu1 }
 0x1fc   :  { %788 = vst.msk [vmem:[#allocation2 + $0x28] sm:$0xff] %vm105_vm0, %v3965_v17  ;;  %1018 = vrot.lane.b32.xlu1 %v3993_v37, %s4483_s3  ;;  %v724_v3 = vpop.f32.mrb[5].mxu0  ;;  %v933_v8 = vpop.f32.mrb[5].mxu1 }
 0x1fd   :  { %787 = vst.msk [vmem:[#allocation2 + $0x20] sm:$0xff] %vm105_vm0, %v724_v3  ;;  %1016 = vrot.lane.b32.xlu0 %v933_v8, %s4483_s3 }
 0x20b   :  { %v3968_v21 = vpop.f32.mrb[6].mxu0  ;;  %v3996_v47 = vpop.f32.mrb[6].mxu1 }
 0x20c   :  { %790 = vst.msk [vmem:[#allocation2 + $0x38] sm:$0xff] %vm105_vm0, %v3968_v21  ;;  %1022 = vrot.lane.b32.xlu1 %v3996_v47, %s4483_s3  ;;  %v734_v63 = vpop.f32.mrb[7].mxu0  ;;  %v943_v19 = vpop.f32.mrb[7].mxu1 }
 0x20d   :  { %789 = vst.msk [vmem:[#allocation2 + $0x30] sm:$0xff] %vm105_vm0, %v734_v63  ;;  %1020 = vrot.lane.b32.xlu0 %v943_v19, %s4483_s3 }
 0x21b   :  { %v3971_v20 = vpop.f32.mrb[8].mxu0  ;;  %v3999_v23 = vpop.f32.mrb[8].mxu1 }
 0x21c   :  { %792 = vst.msk [vmem:[#allocation2 + $0x48] sm:$0xff] %vm105_vm0, %v3971_v20  ;;  %1026 = vrot.lane.b32.xlu1 %v3999_v23, %s4483_s3  ;;  %v744_v26 = vpop.f32.mrb[9].mxu0  ;;  %v953_v16 = vpop.f32.mrb[9].mxu1 }
 0x21d   :  { %791 = vst.msk [vmem:[#allocation2 + $0x40] sm:$0xff] %vm105_vm0, %v744_v26  ;;  %1024 = vrot.lane.b32.xlu0 %v953_v16, %s4483_s3 }
 0x22b   :  { %v3974_v7 = vpop.f32.mrb[10].mxu0  ;;  %v4002_v60 = vpop.f32.mrb[10].mxu1 }
 0x22c   :  { %794 = vst.msk [vmem:[#allocation2 + $0x58] sm:$0xff] %vm105_vm0, %v3974_v7  ;;  %1030 = vrot.lane.b32.xlu1 %v4002_v60, %s4483_s3  ;;  %v754_v24 = vpop.f32.mrb[11].mxu0  ;;  %v963_v40 = vpop.f32.mrb[11].mxu1 }
 0x22d   :  { %793 = vst.msk [vmem:[#allocation2 + $0x50] sm:$0xff] %vm105_vm0, %v754_v24  ;;  %1028 = vrot.lane.b32.xlu0 %v963_v40, %s4483_s3 }
 0x23b   :  { %v3977_v12 = vpop.f32.mrb[12].mxu0  ;;  %v4005_v5 = vpop.f32.mrb[12].mxu1 }
 0x23c   :  { %796 = vst.msk [vmem:[#allocation2 + $0x68] sm:$0xff] %vm105_vm0, %v3977_v12  ;;  %1034 = vrot.lane.b32.xlu1 %v4005_v5, %s4483_s3  ;;  %v764_v4 = vpop.f32.mrb[13].mxu0  ;;  %v973_v35 = vpop.f32.mrb[13].mxu1 }
 0x23d   :  { %795 = vst.msk [vmem:[#allocation2 + $0x60] sm:$0xff] %vm105_vm0, %v764_v4  ;;  %1032 = vrot.lane.b32.xlu0 %v973_v35, %s4483_s3  ;;  %v5217_v4 = vld [vmem:[#allocation8] sm:$0xff] }
 0x23e   :  { %4097 = vmatprep.mubr.msk.f32.mxu1 %vm105_vm0, %v5217_v4 }
 0x24b   :  { %v3980_v38 = vpop.f32.mrb[14].mxu0  ;;  %v4008_v43 = vpop.f32.mrb[14].mxu1 }
 0x24c   :  { %798 = vst.msk [vmem:[#allocation2 + $0x78] sm:$0xff] %vm105_vm0, %v3980_v38  ;;  %1038 = vrot.lane.b32.xlu1 %v4008_v43, %s4483_s3  ;;  %v774_v44 = vpop.f32.mrb[15].mxu0  ;;  %v983_v11 = vpop.f32.mrb[15].mxu1 }
 0x24d   :  { %797 = vst.msk [vmem:[#allocation2 + $0x70] sm:$0xff] %vm105_vm0, %v774_v44  ;;  %1036 = vrot.lane.b32.xlu0 %v983_v11, %s4483_s3 }
 0x24e   :  { %v1011_v14 = vpop.permute.xlu1 %1010 }
 0x24f   :  { %1058 = vst.msk [vmem:[#allocation2 + $0x8] sm:$0xff] %vm1056_vm1, %v1011_v14  ;;  %v4015_v15 = vpop.f32.mrb[16].mxu0  ;;  %v4043_v18 = vpop.f32.mrb[16].mxu1 }
 0x250   :  { %v1009_v22 = vpop.permute.xlu0 %1008  ;;  %v1461_v27 = vpop.f32.mrb[17].mxu1  ;;  %1284 = vrot.lane.b32.xlu1 %v4015_v15, %s4484_s27 }
 0x251   :  { %1057 = vst.msk [vmem:[#allocation2] sm:$0xff] %vm1056_vm1, %v1009_v22  ;;  %v1187_v30 = vpop.f32.mrb[17].mxu0  ;;  %1556 = vrot.lane.b32.xlu0 %v1461_v27, %s4485_s28 }
 0x253   :  { %v4018_v48 = vpop.f32.mrb[18].mxu0  ;;  %v4046_v31 = vpop.f32.mrb[18].mxu1 }
 0x254   :  { %v1471_v39 = vpop.f32.mrb[19].mxu1  ;;  %1558 = vrot.lane.b32.xlu1 %v4043_v18, %s4485_s28  ;;  %v1197_v42 = vpop.f32.mrb[19].mxu0 }
 0x255   :  { %1286 = vrot.lane.b32.xlu0 %v1197_v42, %s4484_s27 }
 0x257   :  { %v4021_v49 = vpop.f32.mrb[20].mxu0  ;;  %v4049_v50 = vpop.f32.mrb[20].mxu1 }
 0x258   :  { %v1481_v62 = vpop.f32.mrb[21].mxu1  ;;  %1282 = vrot.lane.b32.xlu1 %v1187_v30, %s4484_s27  ;;  %v1207_v9 = vpop.f32.mrb[21].mxu0 }
 0x259   :  { %1560 = vrot.lane.b32.xlu0 %v1471_v39, %s4485_s28 }
 0x25b   :  { %v4024_v6 = vpop.f32.mrb[22].mxu0  ;;  %v4052_v10 = vpop.f32.mrb[22].mxu1 }
 0x25c   :  { %v1491_v32 = vpop.f32.mrb[23].mxu1  ;;  %1288 = vrot.lane.b32.xlu1 %v4018_v48, %s4484_s27  ;;  %v1217_v34 = vpop.f32.mrb[23].mxu0 }
 0x25d   :  { %1290 = vrot.lane.b32.xlu0 %v1207_v9, %s4484_s27 }
 0x25e   :  { %v1015_v25 = vpop.permute.xlu1 %1014 }
 0x25f   :  { %1060 = vst.msk [vmem:[#allocation2 + $0x18] sm:$0xff] %vm1056_vm1, %v1015_v25  ;;  %v4027_v29 = vpop.f32.mrb[24].mxu0  ;;  %v4055_v57 = vpop.f32.mrb[24].mxu1 }
 0x260   :  { %v1013_v41 = vpop.permute.xlu0 %1012  ;;  %v1501_v1 = vpop.f32.mrb[25].mxu1  ;;  %1562 = vrot.lane.b32.xlu1 %v4046_v31, %s4485_s28 }
 0x261   :  { %1059 = vst.msk [vmem:[#allocation2 + $0x10] sm:$0xff] %vm1056_vm1, %v1013_v41  ;;  %v1227_v36 = vpop.f32.mrb[25].mxu0  ;;  %1564 = vrot.lane.b32.xlu0 %v1481_v62, %s4485_s28 }
 0x263   :  { %v4030_v52 = vpop.f32.mrb[26].mxu0  ;;  %v4058_v56 = vpop.f32.mrb[26].mxu1 }
 0x264   :  { %v1511_v53 = vpop.f32.mrb[27].mxu1  ;;  %1292 = vrot.lane.b32.xlu1 %v4021_v49, %s4484_s27  ;;  %v1237_v51 = vpop.f32.mrb[27].mxu0 }
 0x265   :  { %1294 = vrot.lane.b32.xlu0 %v1217_v34, %s4484_s27 }
 0x267   :  { %v4033_v33 = vpop.f32.mrb[28].mxu0  ;;  %v4061_v2 = vpop.f32.mrb[28].mxu1 }
 0x268   :  { %v1521_v45 = vpop.f32.mrb[29].mxu1  ;;  %1566 = vrot.lane.b32.xlu1 %v4049_v50, %s4485_s28  ;;  %v1247_v46 = vpop.f32.mrb[29].mxu0 }
 0x269   :  { %1568 = vrot.lane.b32.xlu0 %v1491_v32, %s4485_s28 }
 0x26b   :  { %v4036_v58 = vpop.f32.mrb[30].mxu0  ;;  %v4064_v59 = vpop.f32.mrb[30].mxu1 }
 0x26c   :  { %v1531_v13 = vpop.f32.mrb[31].mxu1  ;;  %1296 = vrot.lane.b32.xlu1 %v4024_v6, %s4484_s27  ;;  %v1257_v28 = vpop.f32.mrb[31].mxu0 }
 0x26d   :  { %1298 = vrot.lane.b32.xlu0 %v1227_v36, %s4484_s27 }
 0x26e   :  { %v1019_v54 = vpop.permute.xlu1 %1018 }
 0x26f   :  { %1062 = vst.msk [vmem:[#allocation2 + $0x28] sm:$0xff] %vm1056_vm1, %v1019_v54  ;;  %v4071_v61 = vpop.f32.mrb[32].mxu0  ;;  %v1017_v55 = vpop.permute.xlu0 %1016 }
 0x270   :  { %1061 = vst.msk [vmem:[#allocation2 + $0x20] sm:$0xff] %vm1056_vm1, %v1017_v55  ;;  %1570 = vrot.lane.b32.xlu1 %v4052_v10, %s4485_s28  ;;  %v1735_v0 = vpop.f32.mrb[33].mxu0 }
 0x271   :  { %1572 = vrot.lane.b32.xlu0 %v1501_v1, %s4485_s28 }
 0x273   :  { %v4074_v17 = vpop.f32.mrb[34].mxu0 }
 0x274   :  { %1300 = vrot.lane.b32.xlu1 %v4027_v29, %s4484_s27  ;;  %v1745_v37 = vpop.f32.mrb[35].mxu0 }
 0x275   :  { %1302 = vrot.lane.b32.xlu0 %v1237_v51, %s4484_s27 }
 0x277   :  { %v4077_v3 = vpop.f32.mrb[36].mxu0 }
 0x278   :  { %1574 = vrot.lane.b32.xlu1 %v4055_v57, %s4485_s28  ;;  %v1755_v8 = vpop.f32.mrb[37].mxu0 }
 0x279   :  { %1576 = vrot.lane.b32.xlu0 %v1511_v53, %s4485_s28 }
 0x27b   :  { %v4080_v21 = vpop.f32.mrb[38].mxu0 }
 0x27c   :  { %1304 = vrot.lane.b32.xlu1 %v4030_v52, %s4484_s27  ;;  %v1765_v47 = vpop.f32.mrb[39].mxu0 }
 0x27d   :  { %1306 = vrot.lane.b32.xlu0 %v1247_v46, %s4484_s27 }
 0x27e   :  { %v1023_v63 = vpop.permute.xlu1 %1022 }
 0x27f   :  { %1064 = vst.msk [vmem:[#allocation2 + $0x38] sm:$0xff] %vm1056_vm1, %v1023_v63  ;;  %v4083_v19 = vpop.f32.mrb[40].mxu0  ;;  %v1021_v20 = vpop.permute.xlu0 %1020 }
 0x280   :  { %1063 = vst.msk [vmem:[#allocation2 + $0x30] sm:$0xff] %vm1056_vm1, %v1021_v20  ;;  %1578 = vrot.lane.b32.xlu1 %v4058_v56, %s4485_s28  ;;  %v1775_v23 = vpop.f32.mrb[41].mxu0 }
 0x281   :  { %1580 = vrot.lane.b32.xlu0 %v1521_v45, %s4485_s28 }
 0x283   :  { %v4086_v26 = vpop.f32.mrb[42].mxu0 }
 0x284   :  { %1308 = vrot.lane.b32.xlu1 %v4033_v33, %s4484_s27  ;;  %v1785_v16 = vpop.f32.mrb[43].mxu0 }
 0x285   :  { %1310 = vrot.lane.b32.xlu0 %v1257_v28, %s4484_s27 }
 0x287   :  { %v4089_v7 = vpop.f32.mrb[44].mxu0 }
 0x288   :  { %1582 = vrot.lane.b32.xlu1 %v4061_v2, %s4485_s28  ;;  %v1795_v60 = vpop.f32.mrb[45].mxu0 }
 0x289   :  { %1584 = vrot.lane.b32.xlu0 %v1531_v13, %s4485_s28 }
 0x28b   :  { %v4092_v24 = vpop.f32.mrb[46].mxu0 }
 0x28c   :  { %1312 = vrot.lane.b32.xlu1 %v4036_v58, %s4484_s27  ;;  %v1805_v40 = vpop.f32.mrb[47].mxu0 }
 0x28d   :  { %1830 = vrot.lane.b32.xlu0 %v1735_v0, %s4486_s12 }
 0x28e   :  { %v1027_v12 = vpop.permute.xlu1 %1026 }
 0x28f   :  { %1066 = vst.msk [vmem:[#allocation2 + $0x48] sm:$0xff] %vm1056_vm1, %v1027_v12  ;;  %v1025_v5 = vpop.permute.xlu0 %1024 }
 0x290   :  { %1065 = vst.msk [vmem:[#allocation2 + $0x40] sm:$0xff] %vm1056_vm1, %v1025_v5  ;;  %1586 = vrot.lane.b32.xlu1 %v4064_v59, %s4485_s28 }
 0x291   :  { %1834 = vrot.lane.b32.xlu0 %v1745_v37, %s4486_s12 }
 0x294   :  { %1832 = vrot.lane.b32.xlu1 %v4071_v61, %s4486_s12 }
 0x295   :  { %1838 = vrot.lane.b32.xlu0 %v1755_v8, %s4486_s12 }
 0x298   :  { %1836 = vrot.lane.b32.xlu1 %v4074_v17, %s4486_s12 }
 0x299   :  { %1842 = vrot.lane.b32.xlu0 %v1765_v47, %s4486_s12  ;;  %v5280_v47 = vld [vmem:[#allocation8 + $0x8] sm:$0xff] }
 0x29c   :  { %1840 = vrot.lane.b32.xlu1 %v4077_v3, %s4486_s12 }
 0x29d   :  { %1846 = vrot.lane.b32.xlu0 %v1775_v23, %s4486_s12 }
 0x29e   :  { %v1031_v35 = vpop.permute.xlu1 %1030 }
 0x29f   :  { %1068 = vst.msk [vmem:[#allocation2 + $0x58] sm:$0xff] %vm1056_vm1, %v1031_v35  ;;  %v1029_v38 = vpop.permute.xlu0 %1028 }
 0x2a0   :  { %1067 = vst.msk [vmem:[#allocation2 + $0x50] sm:$0xff] %vm1056_vm1, %v1029_v38  ;;  %1844 = vrot.lane.b32.xlu1 %v4080_v21, %s4486_s12 }
 0x2a1   :  { %1850 = vrot.lane.b32.xlu0 %v1785_v16, %s4486_s12 }
 0x2a4   :  { %1848 = vrot.lane.b32.xlu1 %v4083_v19, %s4486_s12 }
 0x2a5   :  { %1854 = vrot.lane.b32.xlu0 %v1795_v60, %s4486_s12 }
 0x2a8   :  { %1852 = vrot.lane.b32.xlu1 %v4086_v26, %s4486_s12 }
 0x2a9   :  { %1858 = vrot.lane.b32.xlu0 %v1805_v40, %s4486_s12 }
 0x2ac   :  { %1856 = vrot.lane.b32.xlu1 %v4089_v7, %s4486_s12 }
 0x2ae   :  { %v1035_v43 = vpop.permute.xlu1 %1034 }
 0x2af   :  { %1070 = vst.msk [vmem:[#allocation2 + $0x68] sm:$0xff] %vm1056_vm1, %v1035_v43  ;;  %v1033_v44 = vpop.permute.xlu0 %1032 }
 0x2b0   :  { %1069 = vst.msk [vmem:[#allocation2 + $0x60] sm:$0xff] %vm1056_vm1, %v1033_v44  ;;  %1860 = vrot.lane.b32.xlu1 %v4092_v24, %s4486_s12 }
 0x2be   :  { %v1039_v11 = vpop.permute.xlu1 %1038 }
 0x2bf   :  { %1072 = vst.msk [vmem:[#allocation2 + $0x78] sm:$0xff] %vm1056_vm1, %v1039_v11  ;;  %v1037_v14 = vpop.permute.xlu0 %1036 }
 0x2c0   :  { %1071 = vst.msk [vmem:[#allocation2 + $0x70] sm:$0xff] %vm1056_vm1, %v1037_v14 }
 0x2c2   :  { %v1285_v15 = vpop.permute.xlu1 %1284 }
 0x2c3   :  { %1332 = vst.msk [vmem:[#allocation2 + $0x8] sm:$0xff] %vm1330_vm2, %v1285_v15  ;;  %v1557_v18 = vpop.permute.xlu0 %1556 }
 0x2c6   :  { %v1559_v22 = vpop.permute.xlu1 %1558 }
 0x2c7   :  { %1606 = vst.msk [vmem:[#allocation2 + $0x8] sm:$0xff] %vm1604_vm3, %v1559_v22  ;;  %v1287_v27 = vpop.permute.xlu0 %1286 }
 0x2c8   :  { %1333 = vst.msk [vmem:[#allocation2 + $0x10] sm:$0xff] %vm1330_vm2, %v1287_v27 }
 0x2ca   :  { %v1283_v30 = vpop.permute.xlu1 %1282 }
 0x2cb   :  { %1331 = vst.msk [vmem:[#allocation2] sm:$0xff] %vm1330_vm2, %v1283_v30  ;;  %v1561_v48 = vpop.permute.xlu0 %1560 }
 0x2cc   :  { %1605 = vst.msk [vmem:[#allocation2] sm:$0xff] %vm1604_vm3, %v1557_v18  ;;  %1607 = vst.msk [vmem:[#allocation2 + $0x10] sm:$0xff] %vm1604_vm3, %v1561_v48 }
 0x2ce   :  { %v1289_v31 = vpop.permute.xlu1 %1288 }
 0x2cf   :  { %1334 = vst.msk [vmem:[#allocation2 + $0x18] sm:$0xff] %vm1330_vm2, %v1289_v31  ;;  %v1291_v39 = vpop.permute.xlu0 %1290 }
 0x2d0   :  { %1335 = vst.msk [vmem:[#allocation2 + $0x20] sm:$0xff] %vm1330_vm2, %v1291_v39 }
 0x2d2   :  { %v1563_v42 = vpop.permute.xlu1 %1562 }
 0x2d3   :  { %1608 = vst.msk [vmem:[#allocation2 + $0x18] sm:$0xff] %vm1604_vm3, %v1563_v42  ;;  %v1565_v49 = vpop.permute.xlu0 %1564 }
 0x2d4   :  { %1609 = vst.msk [vmem:[#allocation2 + $0x20] sm:$0xff] %vm1604_vm3, %v1565_v49 }
 0x2d6   :  { %v1293_v50 = vpop.permute.xlu1 %1292 }
 0x2d7   :  { %1336 = vst.msk [vmem:[#allocation2 + $0x28] sm:$0xff] %vm1330_vm2, %v1293_v50  ;;  %v1295_v62 = vpop.permute.xlu0 %1294 }
 0x2d8   :  { %1337 = vst.msk [vmem:[#allocation2 + $0x30] sm:$0xff] %vm1330_vm2, %v1295_v62 }
 0x2da   :  { %v1567_v9 = vpop.permute.xlu1 %1566 }
 0x2db   :  { %1610 = vst.msk [vmem:[#allocation2 + $0x28] sm:$0xff] %vm1604_vm3, %v1567_v9  ;;  %v1569_v6 = vpop.permute.xlu0 %1568 }
 0x2dc   :  { %1611 = vst.msk [vmem:[#allocation2 + $0x30] sm:$0xff] %vm1604_vm3, %v1569_v6 }
 0x2de   :  { %v1297_v10 = vpop.permute.xlu1 %1296 }
 0x2df   :  { %1338 = vst.msk [vmem:[#allocation2 + $0x38] sm:$0xff] %vm1330_vm2, %v1297_v10  ;;  %v1299_v32 = vpop.permute.xlu0 %1298 }
 0x2e0   :  { %1339 = vst.msk [vmem:[#allocation2 + $0x40] sm:$0xff] %vm1330_vm2, %v1299_v32 }
 0x2e2   :  { %v1571_v34 = vpop.permute.xlu1 %1570 }
 0x2e3   :  { %1612 = vst.msk [vmem:[#allocation2 + $0x38] sm:$0xff] %vm1604_vm3, %v1571_v34  ;;  %v1573_v25 = vpop.permute.xlu0 %1572 }
 0x2e4   :  { %1613 = vst.msk [vmem:[#allocation2 + $0x40] sm:$0xff] %vm1604_vm3, %v1573_v25 }
 0x2e6   :  { %v1301_v29 = vpop.permute.xlu1 %1300 }
 0x2e7   :  { %1340 = vst.msk [vmem:[#allocation2 + $0x48] sm:$0xff] %vm1330_vm2, %v1301_v29  ;;  %v1303_v57 = vpop.permute.xlu0 %1302 }
 0x2e8   :  { %1341 = vst.msk [vmem:[#allocation2 + $0x50] sm:$0xff] %vm1330_vm2, %v1303_v57 }
 0x2ea   :  { %v1575_v41 = vpop.permute.xlu1 %1574 }
 0x2eb   :  { %1614 = vst.msk [vmem:[#allocation2 + $0x48] sm:$0xff] %vm1604_vm3, %v1575_v41  ;;  %v1577_v1 = vpop.permute.xlu0 %1576 }
 0x2ec   :  { %1615 = vst.msk [vmem:[#allocation2 + $0x50] sm:$0xff] %vm1604_vm3, %v1577_v1 }
 0x2ee   :  { %v1305_v36 = vpop.permute.xlu1 %1304 }
 0x2ef   :  { %1342 = vst.msk [vmem:[#allocation2 + $0x58] sm:$0xff] %vm1330_vm2, %v1305_v36  ;;  %v1307_v52 = vpop.permute.xlu0 %1306 }
 0x2f0   :  { %1343 = vst.msk [vmem:[#allocation2 + $0x60] sm:$0xff] %vm1330_vm2, %v1307_v52 }
 0x2f2   :  { %v1579_v56 = vpop.permute.xlu1 %1578 }
 0x2f3   :  { %1616 = vst.msk [vmem:[#allocation2 + $0x58] sm:$0xff] %vm1604_vm3, %v1579_v56  ;;  %v1581_v53 = vpop.permute.xlu0 %1580 }
 0x2f4   :  { %1617 = vst.msk [vmem:[#allocation2 + $0x60] sm:$0xff] %vm1604_vm3, %v1581_v53 }
 0x2f6   :  { %v1309_v51 = vpop.permute.xlu1 %1308 }
 0x2f7   :  { %1344 = vst.msk [vmem:[#allocation2 + $0x68] sm:$0xff] %vm1330_vm2, %v1309_v51  ;;  %v1311_v33 = vpop.permute.xlu0 %1310 }
 0x2f8   :  { %1345 = vst.msk [vmem:[#allocation2 + $0x70] sm:$0xff] %vm1330_vm2, %v1311_v33 }
 0x2fa   :  { %v1583_v2 = vpop.permute.xlu1 %1582 }
 0x2fb   :  { %1618 = vst.msk [vmem:[#allocation2 + $0x68] sm:$0xff] %vm1604_vm3, %v1583_v2  ;;  %v1585_v45 = vpop.permute.xlu0 %1584 }
 0x2fc   :  { %1619 = vst.msk [vmem:[#allocation2 + $0x70] sm:$0xff] %vm1604_vm3, %v1585_v45 }
 0x2fe   :  { %v1313_v46 = vpop.permute.xlu1 %1312 }
 0x2ff   :  { %1346 = vst.msk [vmem:[#allocation2 + $0x78] sm:$0xff] %vm1330_vm2, %v1313_v46  ;;  %v1831_v58 = vpop.permute.xlu0 %1830 }
 0x300   :  { %1879 = vst.msk [vmem:[#allocation2] sm:$0xff] %vm1878_vm4, %v1831_v58 }
 0x302   :  { %v1587_v59 = vpop.permute.xlu1 %1586 }
 0x303   :  { %1620 = vst.msk [vmem:[#allocation2 + $0x78] sm:$0xff] %vm1604_vm3, %v1587_v59  ;;  %v1835_v13 = vpop.permute.xlu0 %1834 }
 0x304   :  { %1881 = vst.msk [vmem:[#allocation2 + $0x10] sm:$0xff] %vm1878_vm4, %v1835_v13 }
 0x306   :  { %v1833_v28 = vpop.permute.xlu1 %1832 }
 0x307   :  { %1880 = vst.msk [vmem:[#allocation2 + $0x8] sm:$0xff] %vm1878_vm4, %v1833_v28  ;;  %v1839_v54 = vpop.permute.xlu0 %1838  ;;  %v1895_v17 = vld [vmem:[#allocation2] sm:$0xff] }
 0x308   :  { %1883 = vst.msk [vmem:[#allocation2 + $0x20] sm:$0xff] %vm1878_vm4, %v1839_v54 }
 0x30a   :  { %v1837_v61 = vpop.permute.xlu1 %1836 }
 0x30b   :  { %1882 = vst.msk [vmem:[#allocation2 + $0x18] sm:$0xff] %vm1878_vm4, %v1837_v61  ;;  %v1843_v55 = vpop.permute.xlu0 %1842  ;;  %v2128_v63 = vld [vmem:[#allocation2 + $0x10] sm:$0xff] }
 0x30c   :  { %1885 = vst.msk [vmem:[#allocation2 + $0x30] sm:$0xff] %vm1878_vm4, %v1843_v55 }
 0x30e   :  { %v1841_v0 = vpop.permute.xlu1 %1840  ;;  %v1896_v37 = vld [vmem:[#allocation2 + $0x8] sm:$0xff] }
 0x30f   :  { %1884 = vst.msk [vmem:[#allocation2 + $0x28] sm:$0xff] %vm1878_vm4, %v1841_v0  ;;  %v1847_v3 = vpop.permute.xlu0 %1846  ;;  %v4169_v8 = vpack.c.bf16 %v1896_v37, %v1895_v17  ;;  %v2355_v16 = vld [vmem:[#allocation2 + $0x20] sm:$0xff] }
 0x310   :  { %1887 = vst.msk [vmem:[#allocation2 + $0x40] sm:$0xff] %vm1878_vm4, %v1847_v3 }
 0x311   :  { %4170 = vmatprep.subr.bf16.mxu1 %v4169_v8 }
 0x312   :  { %v1845_v21 = vpop.permute.xlu1 %1844  ;;  %4172 = vmatpush3.bf16.msra.mxu1 %v4169_v8  ;;  %v2129_v19 = vld [vmem:[#allocation2 + $0x18] sm:$0xff] }
 0x313   :  { %1886 = vst.msk [vmem:[#allocation2 + $0x38] sm:$0xff] %vm1878_vm4, %v1845_v21  ;;  %v1851_v20 = vpop.permute.xlu0 %1850  ;;  %v4173_v23 = vpack.c.bf16 %v2129_v19, %v2128_v63  ;;  %v2582_v12 = vld [vmem:[#allocation2 + $0x30] sm:$0xff] }
 0x314   :  { %1889 = vst.msk [vmem:[#allocation2 + $0x50] sm:$0xff] %vm1878_vm4, %v1851_v20 }
 0x315   :  { %4098 = vmatmul.mubr.msk.f32.vlgmr.msra.gmra.mrb[32].mxu1 %vm105_vm0, %v5280_v47  ;;  %4174 = vmatprep.subr.bf16.mxu1 %v4173_v23 }
 0x316   :  { %v1849_v26 = vpop.permute.xlu1 %1848  ;;  %4176 = vmatpush3.bf16.msra.mxu1 %v4173_v23  ;;  %4104 = vmatprep.mubr.msk.f32.mxu1 %vm105_vm0, %v5217_v4  ;;  %v2356_v7 = vld [vmem:[#allocation2 + $0x28] sm:$0xff] }
 0x317   :  { %1888 = vst.msk [vmem:[#allocation2 + $0x48] sm:$0xff] %vm1878_vm4, %v1849_v26  ;;  %v1855_v60 = vpop.permute.xlu0 %1854  ;;  %v4177_v24 = vpack.c.bf16 %v2356_v7, %v2355_v16  ;;  %v2809_v44 = vld [vmem:[#allocation2 + $0x40] sm:$0xff] }
 0x318   :  { %1891 = vst.msk [vmem:[#allocation2 + $0x60] sm:$0xff] %vm1878_vm4, %v1855_v60 }
 0x319   :  { %4178 = vmatprep.subr.bf16.mxu1 %v4177_v24  ;;  %4105 = vmatmul.mubr.msk.f32.vlgmr.msra.gmra.mrb[34].mxu1 %vm105_vm0, %v5280_v47 }
 0x31a   :  { %v1853_v40 = vpop.permute.xlu1 %1852  ;;  %4180 = vmatpush3.bf16.msra.mxu1 %v4177_v24  ;;  %4111 = vmatprep.mubr.msk.f32.mxu1 %vm105_vm0, %v5217_v4  ;;  %v2583_v5 = vld [vmem:[#allocation2 + $0x38] sm:$0xff] }
 0x31b   :  { %1890 = vst.msk [vmem:[#allocation2 + $0x58] sm:$0xff] %vm1878_vm4, %v1853_v40  ;;  %v1859_v35 = vpop.permute.xlu0 %1858  ;;  %v4181_v38 = vpack.c.bf16 %v2583_v5, %v2582_v12  ;;  %v3036_v18 = vld [vmem:[#allocation2 + $0x50] sm:$0xff] }
 0x31c   :  { %1893 = vst.msk [vmem:[#allocation2 + $0x70] sm:$0xff] %vm1878_vm4, %v1859_v35 }
 0x31d   :  { %4182 = vmatprep.subr.bf16.mxu1 %v4181_v38  ;;  %4112 = vmatmul.mubr.msk.f32.vlgmr.msra.gmra.mrb[36].mxu1 %vm105_vm0, %v5280_v47 }
 0x31e   :  { %v1857_v43 = vpop.permute.xlu1 %1856  ;;  %4184 = vmatpush3.bf16.msra.mxu1 %v4181_v38  ;;  %4118 = vmatprep.mubr.msk.f32.mxu1 %vm105_vm0, %v5217_v4  ;;  %v2810_v11 = vld [vmem:[#allocation2 + $0x48] sm:$0xff] }
 0x31f   :  { %1892 = vst.msk [vmem:[#allocation2 + $0x68] sm:$0xff] %vm1878_vm4, %v1857_v43  ;;  %v4185_v14 = vpack.c.bf16 %v2810_v11, %v2809_v44  ;;  %v3263_v30 = vld [vmem:[#allocation2 + $0x60] sm:$0xff] }
 0x321   :  { %4186 = vmatprep.subr.bf16.mxu1 %v4185_v14  ;;  %4119 = vmatmul.mubr.msk.f32.vlgmr.msra.gmra.mrb[38].mxu1 %vm105_vm0, %v5280_v47 }
 0x322   :  { %v1861_v15 = vpop.permute.xlu1 %1860  ;;  %4188 = vmatpush3.bf16.msra.mxu1 %v4185_v14  ;;  %4125 = vmatprep.mubr.msk.f32.mxu1 %vm105_vm0, %v5217_v4  ;;  %v3037_v22 = vld [vmem:[#allocation2 + $0x58] sm:$0xff] }
 0x323   :  { %1894 = vst.msk [vmem:[#allocation2 + $0x78] sm:$0xff] %vm1878_vm4, %v1861_v15  ;;  %v4189_v27 = vpack.c.bf16 %v3037_v22, %v3036_v18  ;;  %v3490_v39 = vld [vmem:[#allocation2 + $0x70] sm:$0xff] }
 0x325   :  { %4190 = vmatprep.subr.bf16.mxu1 %v4189_v27  ;;  %4126 = vmatmul.mubr.msk.f32.vlgmr.msra.gmra.mrb[40].mxu1 %vm105_vm0, %v5280_v47 }
 0x326   :  { %4192 = vmatpush3.bf16.msra.mxu1 %v4189_v27  ;;  %4132 = vmatprep.mubr.msk.f32.mxu1 %vm105_vm0, %v5217_v4  ;;  %v3264_v48 = vld [vmem:[#allocation2 + $0x68] sm:$0xff] }
 0x327   :  { %v4193_v31 = vpack.c.bf16 %v3264_v48, %v3263_v30 }
 0x329   :  { %4194 = vmatprep.subr.bf16.mxu1 %v4193_v31  ;;  %4133 = vmatmul.mubr.msk.f32.vlgmr.msra.gmra.mrb[42].mxu1 %vm105_vm0, %v5280_v47 }
 0x32a   :  { %4196 = vmatpush3.bf16.msra.mxu1 %v4193_v31  ;;  %4139 = vmatprep.mubr.msk.f32.mxu1 %vm105_vm0, %v5217_v4  ;;  %v3491_v42 = vld [vmem:[#allocation2 + $0x78] sm:$0xff] }
 0x32b   :  { %v4197_v49 = vpack.c.bf16 %v3491_v42, %v3490_v39 }
 0x32d   :  { %4198 = vmatprep.subr.bf16.mxu1 %v4197_v49  ;;  %4140 = vmatmul.mubr.msk.f32.vlgmr.msra.gmra.mrb[44].mxu1 %vm105_vm0, %v5280_v47 }
 0x32e   :  { %4200 = vmatpush3.bf16.msra.mxu1 %v4197_v49  ;;  %4146 = vmatprep.mubr.msk.f32.mxu1 %vm105_vm0, %v5217_v4 }
 0x331   :  { %4147 = vmatmul.mubr.msk.f32.vlgmr.msra.gmra.mrb[46].mxu1 %vm105_vm0, %v5280_v47 }
 0x3e8   :  { %v5320_v50 = vpop.f32.mrb[32].mxu1 }
 0x3e9   :  { %6260 = vst [vmem:[#allocation16_spill] sm:$0xff] %v5320_v50  ;;  %1984 = vrot.lane.b32.xlu1 %v5320_v50, %s4487_s1  ;;  %v5324_v62 = vpop.f32.mrb[33].mxu1  ;;  %v5330_v9 = vmul.f32 %v5320_v50, %v5320_v50 }
 0x3ea   :  { %6261 = vst [vmem:[#allocation17_spill] sm:$0xff] %v5324_v62  ;;  %1982 = vrot.lane.b32.xlu0 %v5324_v62, %s4487_s1  ;;  %v5334_v4 = vmul.f32 %v5324_v62, %v5324_v62 }
 0x3eb   :  { %6262 = vst [vmem:[#allocation18_spill] sm:$0xff] %v5330_v9 }
 0x3ec   :  { %6263 = vst [vmem:[#allocation19_spill] sm:$0xff] %v5334_v4  ;;  %v5336_v6 = vpop.f32.mrb[34].mxu1 }
 0x3ed   :  { %6264 = vst [vmem:[#allocation20_spill] sm:$0xff] %v5336_v6  ;;  %1998 = vrot.lane.b32.xlu1 %v5330_v9, %s4487_s1  ;;  %v5340_v10 = vpop.f32.mrb[35].mxu1  ;;  %v5362_v57 = vmul.f32 %v5336_v6, %v5336_v6 }
 0x3ee   :  { %6265 = vst [vmem:[#allocation21_spill] sm:$0xff] %v5340_v10  ;;  %1996 = vrot.lane.b32.xlu0 %v5334_v4, %s4487_s1  ;;  %v5366_v41 = vmul.f32 %v5340_v10, %v5340_v10 }
 0x3ef   :  { %6270 = vst [vmem:[#allocation26_spill] sm:$0xff] %v5362_v57 }
 0x3f0   :  { %v5344_v32 = vpop.f32.mrb[36].mxu1  ;;  %6271 = vst [vmem:[#allocation27_spill] sm:$0xff] %v5366_v41 }
 0x3f1   :  { %6266 = vst [vmem:[#allocation22_spill] sm:$0xff] %v5344_v32  ;;  %2012 = vrot.lane.b32.xlu1 %v5330_v9, %s4484_s27  ;;  %v5348_v34 = vpop.f32.mrb[37].mxu1  ;;  %v5394_v33 = vmul.f32 %v5344_v32, %v5344_v32 }
 0x3f2   :  { %6267 = vst [vmem:[#allocation23_spill] sm:$0xff] %v5348_v34  ;;  %2010 = vrot.lane.b32.xlu0 %v5334_v4, %s4484_s27  ;;  %v5398_v2 = vmul.f32 %v5348_v34, %v5348_v34 }
 0x3f3   :  { %6274 = vst [vmem:[#allocation30_spill] sm:$0xff] %v5394_v33 }
 0x3f4   :  { %v5352_v25 = vpop.f32.mrb[38].mxu1  ;;  %6275 = vst [vmem:[#allocation31_spill] sm:$0xff] %v5398_v2 }
 0x3f5   :  { %6268 = vst [vmem:[#allocation24_spill] sm:$0xff] %v5352_v25  ;;  %2211 = vrot.lane.b32.xlu1 %v5336_v6, %s4487_s1  ;;  %v5356_v29 = vpop.f32.mrb[39].mxu1  ;;  %v5418_v58 = vmul.f32 %v5352_v25, %v5352_v25 }
 0x3f6   :  { %6269 = vst [vmem:[#allocation25_spill] sm:$0xff] %v5356_v29  ;;  %2209 = vrot.lane.b32.xlu0 %v5340_v10, %s4487_s1  ;;  %v5422_v59 = vmul.f32 %v5356_v29, %v5356_v29 }
 0x3f7   :  { %6276 = vst [vmem:[#allocation32_spill] sm:$0xff] %v5418_v58 }
 0x3f8   :  { %v5368_v1 = vpop.f32.mrb[40].mxu1  ;;  %6277 = vst [vmem:[#allocation33_spill] sm:$0xff] %v5422_v59 }
 0x3f9   :  { %6272 = vst [vmem:[#allocation28_spill] sm:$0xff] %v5368_v1  ;;  %2225 = vrot.lane.b32.xlu1 %v5362_v57, %s4487_s1  ;;  %v5372_v36 = vpop.f32.mrb[41].mxu1  ;;  %v5432_v13 = vmul.f32 %v5368_v1, %v5368_v1 }
 0x3fa   :  { %2223 = vrot.lane.b32.xlu0 %v5366_v41, %s4487_s1  ;;  %v5442_v28 = vmul.f32 %v5372_v36, %v5372_v36 }
 0x3fc   :  { %v5376_v52 = vpop.f32.mrb[42].mxu1 }
 0x3fd   :  { %6273 = vst [vmem:[#allocation29_spill] sm:$0xff] %v5376_v52  ;;  %2239 = vrot.lane.b32.xlu1 %v5362_v57, %s4484_s27  ;;  %v5380_v56 = vpop.f32.mrb[43].mxu1  ;;  %v5448_v54 = vmul.f32 %v5376_v52, %v5376_v52 }
 0x3fe   :  { %2237 = vrot.lane.b32.xlu0 %v5366_v41, %s4484_s27  ;;  %v5458_v61 = vmul.f32 %v5380_v56, %v5380_v56 }
 0x400   :  { %v5384_v53 = vpop.f32.mrb[44].mxu1 }
 0x401   :  { %2438 = vrot.lane.b32.xlu1 %v5344_v32, %s4487_s1  ;;  %v5388_v51 = vpop.f32.mrb[45].mxu1  ;;  %v5464_v55 = vmul.f32 %v5384_v53, %v5384_v53 }
 0x402   :  { %2436 = vrot.lane.b32.xlu0 %v5348_v34, %s4487_s1  ;;  %v5474_v0 = vmul.f32 %v5388_v51, %v5388_v51 }
 0x403   :  { %6278 = vst [vmem:[#allocation34_spill] sm:$0xff] %v5464_v55 }
 0x404   :  { %v5400_v45 = vpop.f32.mrb[46].mxu1 }
 0x405   :  { %2452 = vrot.lane.b32.xlu1 %v5394_v33, %s4487_s1  ;;  %v5404_v46 = vpop.f32.mrb[47].mxu1  ;;  %v5480_v17 = vmul.f32 %v5400_v45, %v5400_v45 }
 0x406   :  { %2450 = vrot.lane.b32.xlu0 %v5398_v2, %s4487_s1  ;;  %v5484_v37 = vmul.f32 %v5404_v46, %v5404_v46 }
 0x408   :  { %6279 = vst [vmem:[#allocation35_spill] sm:$0xff] %v5484_v37 }
 0x409   :  { %2466 = vrot.lane.b32.xlu1 %v5394_v33, %s4484_s27 }
 0x40a   :  { %2464 = vrot.lane.b32.xlu0 %v5398_v2, %s4484_s27 }
 0x40d   :  { %2665 = vrot.lane.b32.xlu1 %v5352_v25, %s4487_s1 }
 0x40e   :  { %2663 = vrot.lane.b32.xlu0 %v5356_v29, %s4487_s1 }
 0x411   :  { %2693 = vrot.lane.b32.xlu1 %v5418_v58, %s4484_s27 }
 0x412   :  { %2691 = vrot.lane.b32.xlu0 %v5422_v59, %s4484_s27 }
 0x415   :  { %2890 = vrot.lane.b32.xlu1 %v5372_v36, %s4487_s1 }
 0x416   :  { %2677 = vrot.lane.b32.xlu0 %v5422_v59, %s4487_s1 }
 0x419   :  { %2920 = vrot.lane.b32.xlu1 %v5432_v13, %s4484_s27 }
 0x41a   :  { %2892 = vrot.lane.b32.xlu0 %v5368_v1, %s4487_s1 }
 0x41d   :  { %3117 = vrot.lane.b32.xlu1 %v5380_v56, %s4487_s1 }
 0x41e   :  { %2918 = vrot.lane.b32.xlu0 %v5442_v28, %s4484_s27 }
 0x421   :  { %3147 = vrot.lane.b32.xlu1 %v5448_v54, %s4484_s27 }
 0x422   :  { %3119 = vrot.lane.b32.xlu0 %v5376_v52, %s4487_s1 }
 0x425   :  { %3344 = vrot.lane.b32.xlu1 %v5388_v51, %s4487_s1 }
 0x426   :  { %3145 = vrot.lane.b32.xlu0 %v5458_v61, %s4484_s27 }
 0x429   :  { %3374 = vrot.lane.b32.xlu1 %v5464_v55, %s4484_s27 }
 0x42a   :  { %3346 = vrot.lane.b32.xlu0 %v5384_v53, %s4487_s1 }
 0x42d   :  { %3571 = vrot.lane.b32.xlu1 %v5404_v46, %s4487_s1 }
 0x42e   :  { %3372 = vrot.lane.b32.xlu0 %v5474_v0, %s4484_s27 }
 0x431   :  { %3601 = vrot.lane.b32.xlu1 %v5480_v17, %s4484_s27 }
 0x432   :  { %3599 = vrot.lane.b32.xlu0 %v5484_v37, %s4484_s27 }
 0x435   :  { %2679 = vrot.lane.b32.xlu1 %v5418_v58, %s4487_s1 }
 0x436   :  { %3573 = vrot.lane.b32.xlu0 %v5400_v45, %s4487_s1 }
 0x45b   :  { %v1985_v3 = vpop.permute.xlu1 %1984 }
 0x45c   :  { %v5497_v8 = vmul.f32 %v5320_v50, %v1985_v3  ;;  %v1983_v21 = vpop.permute.xlu0 %1982 }
 0x45d   :  { %v5500_v47 = vmul.f32 %v1983_v21, %v5324_v62 }
 0x45e   :  { %6280 = vst [vmem:[#allocation36_spill] sm:$0xff] %v5497_v8  ;;  %2068 = vrot.lane.b32.xlu1 %v5497_v8, %s4486_s12 }
 0x45f   :  { %6281 = vst [vmem:[#allocation37_spill] sm:$0xff] %v5500_v47  ;;  %v5504_v63 = vpop.permute.xlu1 %1998  ;;  %2066 = vrot.lane.b32.xlu0 %v5500_v47, %s4486_s12 }
 0x460   :  { %6282 = vst [vmem:[#allocation38_spill] sm:$0xff] %v5504_v63  ;;  %v5508_v19 = vpop.permute.xlu0 %1996 }
 0x461   :  { %6283 = vst [vmem:[#allocation39_spill] sm:$0xff] %v5508_v19 }
 0x463   :  { %v2013_v20 = vpop.permute.xlu1 %2012 }
 0x464   :  { %v2017_v23 = vsub.f32 %v5320_v50, %v2013_v20  ;;  %v2011_v26 = vpop.permute.xlu0 %2010 }
 0x465   :  { %v2016_v16 = vsub.f32 %v5324_v62, %v2011_v26 }
 0x466   :  { %v5512_v7 = vmax.f32 %v2017_v23, 1e-08 }
 0x467   :  { %v5514_v60 = vmax.f32 %v2016_v16, 1e-08  ;;  %v2212_v24 = vpop.permute.xlu1 %2211 }
 0x468   :  { %2052 = vrot.lane.b32.xlu1 %v5512_v7, %s4487_s1  ;;  %v2210_v40 = vpop.permute.xlu0 %2209  ;;  %v5521_v12 = vmul.f32 %v5336_v6, %v2212_v24  ;;  %4231 = vrsqrt.f32 %v5512_v7  ;;  %vm2029_vm5 = vcmp.eq.f32.partialorder %v5512_v7, inf  ;;  %vm2031_vm7 = vcmp.eq.f32.partialorder %v5512_v7, 0.0 }
 0x469   :  { %2050 = vrot.lane.b32.xlu0 %v5514_v60, %s4487_s1  ;;  %v5524_v5 = vmul.f32 %v2210_v40, %v5340_v10  ;;  %4233 = vrsqrt.f32 %v5514_v60  ;;  %vm2022_vm6 = vcmp.eq.f32.partialorder %v5514_v60, inf  ;;  %vm2024_vm8 = vcmp.eq.f32.partialorder %v5514_v60, 0.0 }
 0x46a   :  { %6284 = vst [vmem:[#allocation40_spill] sm:$0xff] %v5521_v12 }
 0x46b   :  { %6285 = vst [vmem:[#allocation41_spill] sm:$0xff] %v5524_v5  ;;  %v5526_v35 = vpop.permute.xlu1 %2225 }
 0x46c   :  { %6286 = vst [vmem:[#allocation42_spill] sm:$0xff] %v5526_v35  ;;  %2295 = vrot.lane.b32.xlu1 %v5521_v12, %s4486_s12  ;;  %v5530_v38 = vpop.permute.xlu0 %2223 }
 0x46d   :  { %6287 = vst [vmem:[#allocation43_spill] sm:$0xff] %v5530_v38  ;;  %2293 = vrot.lane.b32.xlu0 %v5524_v5, %s4486_s12 }
 0x46f   :  { %v2240_v43 = vpop.permute.xlu1 %2239 }
 0x470   :  { %v2244_v44 = vsub.f32 %v5336_v6, %v2240_v43  ;;  %v2238_v11 = vpop.permute.xlu0 %2237 }
 0x471   :  { %v2243_v14 = vsub.f32 %v5340_v10, %v2238_v11 }
 0x472   :  { %v5536_v15 = vmax.f32 %v2244_v44, 1e-08  ;;  %v4232_v24 = vpop.eup %4231 }
 0x473   :  { %v5538_v18 = vmax.f32 %v2243_v14, 1e-08  ;;  %v2439_v22 = vpop.permute.xlu1 %2438  ;;  %v4234_v40 = vpop.eup %4233 }
 0x474   :  { %2279 = vrot.lane.b32.xlu1 %v5536_v15, %s4487_s1  ;;  %v2437_v27 = vpop.permute.xlu0 %2436  ;;  %v5545_v30 = vmul.f32 %v5344_v32, %v2439_v22  ;;  %vm2256_vm11 = vcmp.eq.f32.partialorder %v5536_v15, inf  ;;  %vm2258_vm12 = vcmp.eq.f32.partialorder %v5536_v15, 0.0 }
 0x475   :  { %2277 = vrot.lane.b32.xlu0 %v5538_v18, %s4487_s1  ;;  %v5548_v48 = vmul.f32 %v2437_v27, %v5348_v34  ;;  %4235 = vrsqrt.f32 %v5538_v18  ;;  %v2028_v27 = vmul.f32 %v4232_v24, %v5512_v7  ;;  %vm2249_vm9 = vcmp.eq.f32.partialorder %v5538_v18, inf }
 0x476   :  { %6288 = vst [vmem:[#allocation44_spill] sm:$0xff] %v5545_v30  ;;  %4237 = vrsqrt.f32 %v5536_v15  ;;  %vm2251_vm10 = vcmp.eq.f32.partialorder %v5538_v18, 0.0 }
 0x477   :  { %6289 = vst [vmem:[#allocation45_spill] sm:$0xff] %v5548_v48  ;;  %v5550_v31 = vpop.permute.xlu1 %2452  ;;  %v2030_v24 = vsel %vm2029_vm5, %v5512_v7, %v2028_v27 }
 0x478   :  { %6290 = vst [vmem:[#allocation46_spill] sm:$0xff] %v5550_v31  ;;  %2522 = vrot.lane.b32.xlu1 %v5545_v30, %s4486_s12  ;;  %v5555_v39 = vpop.permute.xlu0 %2450 }
 0x479   :  { %6291 = vst [vmem:[#allocation47_spill] sm:$0xff] %v5555_v39  ;;  %2520 = vrot.lane.b32.xlu0 %v5548_v48, %s4486_s12 }
 0x47b   :  { %v2467_v42 = vpop.permute.xlu1 %2466 }
 0x47c   :  { %v2471_v49 = vsub.f32 %v5344_v32, %v2467_v42  ;;  %v2465_v3 = vpop.permute.xlu0 %2464 }
 0x47d   :  { %v2470_v21 = vsub.f32 %v5348_v34, %v2465_v3 }
 0x47e   :  { %v5562_v20 = vmax.f32 %v2471_v49, 1e-08  ;;  %v2021_v49 = vmul.f32 %v4234_v40, %v5514_v60  ;;  %v2032_v40 = vand.u32 2147483648, %v5512_v7 }
 0x47f   :  { %v5564_v23 = vmax.f32 %v2470_v21, 1e-08  ;;  %v2666_v26 = vpop.permute.xlu1 %2665 }
 0x480   :  { %2506 = vrot.lane.b32.xlu1 %v5562_v20, %s4487_s1  ;;  %v2664_v16 = vpop.permute.xlu0 %2663  ;;  %v5572_v43 = vmul.f32 %v5352_v25, %v2666_v26  ;;  %vm2483_vm1 = vcmp.eq.f32.partialorder %v5562_v20, inf  ;;  %v2486_v31 = vand.u32 2147483648, %v5562_v20  ;;  %vm2485_vm3 = vcmp.eq.f32.partialorder %v5562_v20, 0.0 }
 0x481   :  { %2504 = vrot.lane.b32.xlu0 %v5564_v23, %s4487_s1  ;;  %v5575_v44 = vmul.f32 %v2664_v16, %v5356_v29  ;;  %4239 = vrsqrt.f32 %v5564_v23  ;;  %vm2476_vm13 = vcmp.eq.f32.partialorder %v5564_v23, inf  ;;  %vm2478_vm14 = vcmp.eq.f32.partialorder %v5564_v23, 0.0 }
 0x482   :  { %6292 = vst [vmem:[#allocation48_spill] sm:$0xff] %v5572_v43  ;;  %4241 = vrsqrt.f32 %v5562_v20 }
 0x483   :  { %6293 = vst [vmem:[#allocation49_spill] sm:$0xff] %v5575_v44  ;;  %v2694_v11 = vpop.permute.xlu1 %2693 }
 0x484   :  { %v2698_v14 = vsub.f32 %v5352_v25, %v2694_v11  ;;  %2749 = vrot.lane.b32.xlu1 %v5572_v43, %s4486_s12  ;;  %v2692_v22 = vpop.permute.xlu0 %2691  ;;  %v2023_v11 = vsel %vm2022_vm6, %v5514_v60, %v2021_v49  ;;  %v5606_v25 = vsel %vm2031_vm7, %v2032_v40, %v2030_v24 }
 0x485   :  { %v2697_v42 = vsub.f32 %v5356_v29, %v2692_v22  ;;  %2747 = vrot.lane.b32.xlu0 %v5575_v44, %s4486_s12  ;;  %v2025_v22 = vand.u32 2147483648, %v5514_v60 }
 0x486   :  { %v5586_v3 = vmax.f32 %v2698_v14, 1e-08  ;;  %v4236_v14 = vpop.eup %4235 }
 0x487   :  { %v5588_v21 = vmax.f32 %v2697_v42, 1e-08  ;;  %v5590_v26 = vpop.permute.xlu1 %2890  ;;  %v5615_v49 = vsel %vm2024_vm8, %v2025_v22, %v2023_v11  ;;  %v2248_v24 = vmul.f32 %v4236_v14, %v5538_v18  ;;  %v4238_v40 = vpop.eup %4237 }
 0x488   :  { %2733 = vrot.lane.b32.xlu1 %v5586_v3, %s4487_s1  ;;  %v5595_v16 = vpop.permute.xlu0 %2677  ;;  %4243 = vrsqrt.f32 %v5586_v3  ;;  %v2255_v34 = vmul.f32 %v4238_v40, %v5536_v15  ;;  %vm2710_vm15 = vcmp.eq.f32.partialorder %v5586_v3, inf  ;;  %vm2712_vm2 = vcmp.eq.f32.partialorder %v5586_v3, 0.0 }
 0x489   :  { %6294 = vst [vmem:[#allocation50_spill] sm:$0xff] %v5595_v16  ;;  %2731 = vrot.lane.b32.xlu0 %v5588_v21, %s4487_s1  ;;  %v2250_v22 = vsel %vm2249_vm9, %v5538_v18, %v2248_v24  ;;  %vm2703_vm7 = vcmp.eq.f32.partialorder %v5588_v21, inf  ;;  %vm2705_vm9 = vcmp.eq.f32.partialorder %v5588_v21, 0.0 }
 0x48a   :  { %v2257_v40 = vsel %vm2256_vm11, %v5536_v15, %v2255_v34 }
 0x48b   :  { %v2921_v42 = vpop.permute.xlu1 %2920  ;;  %v4240_v14 = vpop.eup %4239 }
 0x48c   :  { %v2925_v27 = vsub.f32 %v5368_v1, %v2921_v42  ;;  %2040 = vrot.lane.b32.xlu1 %v5606_v25, %s4487_s1  ;;  %v5613_v32 = vpop.permute.xlu0 %2892  ;;  %v4242_v24 = vpop.eup %4241 }
 0x48d   :  { %2038 = vrot.lane.b32.xlu0 %v5615_v49, %s4487_s1  ;;  %v2482_v34 = vmul.f32 %v4242_v24, %v5562_v20 }
 0x48e   :  { %v5621_v44 = vmax.f32 %v2925_v27, 1e-08  ;;  %v2252_v27 = vand.u32 2147483648, %v5538_v18 }
 0x48f   :  { %v5623_v43 = vpop.permute.xlu1 %3117 }
 0x490   :  { %v2919_v42 = vpop.permute.xlu0 %2918  ;;  %4245 = vrsqrt.f32 %v5621_v44  ;;  %vm2937_vm4 = vcmp.eq.f32.partialorder %v5621_v44, inf  ;;  %vm2939_vm5 = vcmp.eq.f32.partialorder %v5621_v44, 0.0 }
 0x491   :  { %v2924_v11 = vsub.f32 %v5372_v36, %v2919_v42  ;;  %2960 = vrot.lane.b32.xlu0 %v5621_v44, %s4487_s1  ;;  %v5639_v42 = vsel %vm2251_vm10, %v2252_v27, %v2250_v22  ;;  %4247 = vrsqrt.f32 %v5588_v21  ;;  %v2259_v22 = vand.u32 2147483648, %v5536_v15 }
 0x493   :  { %v5633_v6 = vmax.f32 %v2924_v11, 1e-08  ;;  %v3148_v30 = vpop.permute.xlu1 %3147  ;;  %v2475_v11 = vmul.f32 %v4240_v14, %v5564_v23  ;;  %v5656_v16 = vsel %vm2258_vm12, %v2259_v22, %v2257_v40  ;;  %v2479_v22 = vand.u32 2147483648, %v5564_v23 }
 0x494   :  { %v3152_v10 = vsub.f32 %v5376_v52, %v3148_v30  ;;  %v5637_v48 = vpop.permute.xlu0 %3119  ;;  %v4244_v30 = vpop.eup %4243 }
 0x495   :  { %2265 = vrot.lane.b32.xlu0 %v5639_v42, %s4487_s1  ;;  %2958 = vrot.lane.b32.xlu1 %v5633_v6, %s4487_s1  ;;  %4249 = vrsqrt.f32 %v5633_v6  ;;  %v2477_v14 = vsel %vm2476_vm13, %v5564_v23, %v2475_v11  ;;  %v2709_v59 = vmul.f32 %v4244_v30, %v5586_v3  ;;  %v2484_v30 = vsel %vm2483_vm1, %v5562_v20, %v2482_v34 }
 0x496   :  { %v5649_v58 = vmax.f32 %v3152_v10, 1e-08  ;;  %v5675_v50 = vsel %vm2478_vm14, %v2479_v22, %v2477_v14  ;;  %v5697_v34 = vsel %vm2485_vm3, %v2486_v31, %v2484_v30  ;;  %v2940_v31 = vand.u32 2147483648, %v5621_v44 }
 0x497   :  { %v5652_v27 = vpop.permute.xlu1 %3344  ;;  %v2711_v11 = vsel %vm2710_vm15, %v5586_v3, %v2709_v59  ;;  %vm2930_vm10 = vcmp.eq.f32.partialorder %v5633_v6, inf  ;;  %vm2932_vm11 = vcmp.eq.f32.partialorder %v5633_v6, 0.0 }
 0x498   :  { %v3146_v12 = vpop.permute.xlu0 %3145  ;;  %4251 = vrsqrt.f32 %v5649_v58  ;;  %vm3164_vm6 = vcmp.eq.f32.partialorder %v5649_v58, inf  ;;  %vm3166_vm8 = vcmp.eq.f32.partialorder %v5649_v58, 0.0 }
 0x499   :  { %v3151_v10 = vsub.f32 %v5380_v56, %v3146_v12  ;;  %3187 = vrot.lane.b32.xlu0 %v5649_v58, %s4487_s1  ;;  %2267 = vrot.lane.b32.xlu1 %v5656_v16, %s4487_s1 }
 0x49a   :  { %v4246_v40 = vpop.eup %4245 }
 0x49b   :  { %v5669_v62 = vmax.f32 %v3151_v10, 1e-08  ;;  %v3375_v24 = vpop.permute.xlu1 %3374  ;;  %v2936_v10 = vmul.f32 %v4246_v40, %v5621_v44  ;;  %v4248_v14 = vpop.eup %4247 }
 0x49c   :  { %v3379_v12 = vsub.f32 %v5384_v53, %v3375_v24  ;;  %v5673_v5 = vpop.permute.xlu0 %3346  ;;  %v2713_v24 = vand.u32 2147483648, %v5586_v3 }
 0x49d   :  { %2492 = vrot.lane.b32.xlu0 %v5675_v50, %s4487_s1  ;;  %3185 = vrot.lane.b32.xlu1 %v5669_v62, %s4487_s1  ;;  %4253 = vrsqrt.f32 %v5669_v62  ;;  %v2938_v2 = vsel %vm2937_vm4, %v5621_v44, %v2936_v10  ;;  %vm3157_vm12 = vcmp.eq.f32.partialorder %v5669_v62, inf  ;;  %v3160_v19 = vand.u32 2147483648, %v5669_v62 }
 0x49e   :  { %v5687_v22 = vmax.f32 %v3379_v12, 1e-08  ;;  %v5695_v39 = vsel %vm2712_vm2, %v2713_v24, %v2711_v11  ;;  %v2702_v11 = vmul.f32 %v4248_v14, %v5588_v21  ;;  %v5714_v35 = vsel %vm2939_vm5, %v2940_v31, %v2938_v2 }
 0x49f   :  { %v5691_v33 = vpop.permute.xlu1 %3571  ;;  %v4250_v40 = vpop.eup %4249  ;;  %vm3159_vm15 = vcmp.eq.f32.partialorder %v5669_v62, 0.0 }
 0x4a0   :  { %6295 = vst [vmem:[#allocation51_spill] sm:$0xff] %v5687_v22  ;;  %v3373_v59 = vpop.permute.xlu0 %3372  ;;  %4255 = vrsqrt.f32 %v5687_v22  ;;  %v2704_v14 = vsel %vm2703_vm7, %v5588_v21, %v2702_v11  ;;  %vm3391_vm13 = vcmp.eq.f32.partialorder %v5687_v22, inf  ;;  %v3394_v41 = vand.u32 2147483648, %v5687_v22 }
 0x4a1   :  { %v3378_v12 = vsub.f32 %v5388_v51, %v3373_v59  ;;  %2721 = vrot.lane.b32.xlu0 %v5695_v39, %s4487_s1  ;;  %2494 = vrot.lane.b32.xlu1 %v5697_v34, %s4487_s1  ;;  %vm3393_vm14 = vcmp.eq.f32.partialorder %v5687_v22, 0.0  ;;  %vm2125_vm7 = vcmask 0  }
 0x4a2   :  { %v4252_v24 = vpop.eup %4251 }
 0x4a3   :  { %v5709_v30 = vmax.f32 %v3378_v12, 1e-08  ;;  %v3602_v47 = vpop.permute.xlu1 %3601  ;;  %v3163_v59 = vmul.f32 %v4252_v24, %v5649_v58  ;;  %v2929_v12 = vmul.f32 %v4250_v40, %v5633_v6  ;;  %v2706_v24 = vand.u32 2147483648, %v5588_v21 }
 0x4a4   :  { %v3606_v8 = vsub.f32 %v5400_v45, %v3602_v47  ;;  %v3167_v47 = vand.u32 2147483648, %v5649_v58  ;;  %v3600_v40 = vpop.permute.xlu0 %3599 }
 0x4a5   :  { %6296 = vst [vmem:[#allocation52_spill] sm:$0xff] %v5709_v30  ;;  %2948 = vrot.lane.b32.xlu0 %v5714_v35, %s4487_s1  ;;  %3412 = vrot.lane.b32.xlu1 %v5709_v30, %s4487_s1  ;;  %v3165_v10 = vsel %vm3164_vm6, %v5649_v58, %v3163_v59  ;;  %4257 = vrsqrt.f32 %v5709_v30  ;;  %v5734_v59 = vsel %vm2705_vm9, %v2706_v24, %v2704_v14  ;;  %vm3384_vm1 = vcmp.eq.f32.partialorder %v5709_v30, inf }
 0x4a6   :  { %v5726_v2 = vmax.f32 %v3606_v8, 1e-08  ;;  %v5732_v57 = vsel %vm3166_vm8, %v3167_v47, %v3165_v10  ;;  %v2931_v8 = vsel %vm2930_vm10, %v5633_v6, %v2929_v12  ;;  %v2933_v10 = vand.u32 2147483648, %v5633_v6 }
 0x4a7   :  { %v4254_v31 = vpop.eup %4253  ;;  %v3605_v47 = vsub.f32 %v5404_v46, %v3600_v40  ;;  %vm3386_vm2 = vcmp.eq.f32.partialorder %v5709_v30, 0.0 }
 0x4a8   :  { %6297 = vst [vmem:[#allocation53_spill] sm:$0xff] %v5726_v2  ;;  %4259 = vrsqrt.f32 %v5726_v2  ;;  %v3156_v11 = vmul.f32 %v4254_v31, %v5669_v62  ;;  %v5749_v24 = vsel %vm2932_vm11, %v2933_v10, %v2931_v8  ;;  %vm3618_vm3 = vcmp.eq.f32.partialorder %v5726_v2, inf }
 0x4a9   :  { %3175 = vrot.lane.b32.xlu0 %v5732_v57, %s4487_s1  ;;  %2719 = vrot.lane.b32.xlu1 %v5734_v59, %s4487_s1  ;;  %v5764_v8 = vmax.f32 %v3605_v47, 1e-08  ;;  %vm3620_vm4 = vcmp.eq.f32.partialorder %v5726_v2, 0.0 }
 0x4aa   :  { %v4256_v38 = vpop.eup %4255  ;;  %v3158_v31 = vsel %vm3157_vm12, %v5669_v62, %v3156_v11 }
 0x4ab   :  { %v3390_v14 = vmul.f32 %v4256_v38, %v5687_v22  ;;  %v5766_v10 = vsel %vm3159_vm15, %v3160_v19, %v3158_v31  ;;  %v3621_v19 = vand.u32 2147483648, %v5726_v2  ;;  %4261 = vrsqrt.f32 %v5764_v8 }
 0x4ac   :  { %vm3611_vm5 = vcmp.eq.f32.partialorder %v5764_v8, inf  ;;  %vm3613_vm6 = vcmp.eq.f32.partialorder %v5764_v8, 0.0 }
 0x4ad   :  { %2946 = vrot.lane.b32.xlu1 %v5749_v24, %s4487_s1  ;;  %v3392_v12 = vsel %vm3391_vm13, %v5687_v22, %v3390_v14 }
 0x4ae   :  { %v5758_v38 = vsel %vm3393_vm14, %v3394_v41, %v3392_v12  ;;  %v3387_v41 = vand.u32 2147483648, %v5709_v30 }
 0x4af   :  { %v4258_v40 = vpop.eup %4257  ;;  %3402 = vrot.lane.b32.xlu0 %v5758_v38, %s4487_s1 }
 0x4b0   :  { %v3383_v14 = vmul.f32 %v4258_v40, %v5709_v30 }
 0x4b1   :  { %3173 = vrot.lane.b32.xlu1 %v5766_v10, %s4487_s1 }
 0x4b2   :  { %v4260_v11 = vpop.eup %4259  ;;  %v3385_v12 = vsel %vm3384_vm1, %v5709_v30, %v3383_v14  ;;  %v5793_v14 = vmul.f32 %v5590_v26, %v5372_v36 }
 0x4b3   :  { %v5775_v4 = vsel %vm3386_vm2, %v3387_v41, %v3385_v12  ;;  %v3617_v47 = vmul.f32 %v4260_v11, %v5726_v2  ;;  %v5801_v11 = vmul.f32 %v5623_v43, %v5380_v56  ;;  %v5807_v12 = vmul.f32 %v5368_v1, %v5613_v32 }
 0x4b4   :  { %6298 = vst [vmem:[#allocation54_spill] sm:$0xff] %v5793_v14  ;;  %v5821_v43 = vmul.f32 %v5376_v52, %v5637_v48  ;;  %v5836_v48 = vpop.permute.xlu0 %3573 }
 0x4b5   :  { %3400 = vrot.lane.b32.xlu1 %v5775_v4, %s4487_s1  ;;  %v3619_v31 = vsel %vm3618_vm3, %v5726_v2, %v3617_v47  ;;  %v4262_v41 = vpop.eup %4261  ;;  %6299 = vst [vmem:[#allocation55_spill] sm:$0xff] %v5801_v11  ;;  %6300 = vst [vmem:[#allocation56_spill] sm:$0xff] %v5807_v12  ;;  %v5814_v47 = vmul.f32 %v5652_v27, %v5388_v51 }
 0x4b6   :  { %v5785_v40 = vsel %vm3620_vm4, %v3621_v19, %v3619_v31  ;;  %v3610_v26 = vmul.f32 %v4262_v41, %v5764_v8  ;;  %6302 = vst [vmem:[#allocation58_spill] sm:$0xff] %v5821_v43  ;;  %v3614_v19 = vand.u32 2147483648, %v5764_v8  ;;  %v5834_v31 = vpop.permute.xlu1 %2679 }
 0x4b7   :  { %3629 = vrot.lane.b32.xlu0 %v5785_v40, %s4487_s1  ;;  %6301 = vst [vmem:[#allocation57_spill] sm:$0xff] %v5814_v47  ;;  %6303 = vst [vmem:[#allocation59_spill] sm:$0xff] %v5834_v31 }
 0x4b8   :  { %v3612_v32 = vsel %vm3611_vm5, %v5764_v8, %v3610_v26 }
 0x4b9   :  { %3639 = vrot.lane.b32.xlu1 %v5764_v8, %s4487_s1  ;;  %v5830_v27 = vsel %vm3613_vm6, %v3614_v19, %v3612_v32 }
 0x4bb   :  { %3414 = vrot.lane.b32.xlu0 %v5687_v22, %s4487_s1 }
 0x4bd   :  { %2974 = vrot.lane.b32.xlu1 %v5793_v14, %s4486_s12 }
 0x4bf   :  { %3641 = vrot.lane.b32.xlu0 %v5726_v2, %s4487_s1 }
 0x4c1   :  { %3201 = vrot.lane.b32.xlu1 %v5801_v11, %s4486_s12 }
 0x4c3   :  { %2976 = vrot.lane.b32.xlu0 %v5807_v12, %s4486_s12 }
 0x4c5   :  { %3428 = vrot.lane.b32.xlu1 %v5814_v47, %s4486_s12 }
 0x4c7   :  { %3203 = vrot.lane.b32.xlu0 %v5821_v43, %s4486_s12 }
 0x4c9   :  { %3627 = vrot.lane.b32.xlu1 %v5830_v27, %s4487_s1 }
 0x4d0   :  { %v5838_v41 = vpop.permute.xlu1 %2068 }
 0x4d1   :  { %6304 = vst [vmem:[#allocation60_spill] sm:$0xff] %v5838_v41  ;;  %v5840_v47 = vpop.permute.xlu0 %2066 }
 0x4d2   :  { %6305 = vst [vmem:[#allocation61_spill] sm:$0xff] %v5840_v47 }
 0x4da   :  { %v2053_v26 = vpop.permute.xlu1 %2052 }
 0x4db   :  { %v2051_v11 = vpop.permute.xlu0 %2050  ;;  %v2057_v1 = vadd.f32 %v2053_v26, %v5512_v7  ;;  %v2035_v7 = vmul.f32 2.0, %v5606_v25 }
 0x4dc   :  { %v2056_v63 = vadd.f32 %v2051_v11, %v5514_v60  ;;  %v2034_v60 = vmul.f32 2.0, %v5615_v49 }
 0x4dd   :  { %v2059_v9 = vadd.f32 0.0009, %v2057_v1 }
 0x4de   :  { %v5842_v12 = vpop.permute.xlu1 %2295  ;;  %v2058_v2 = vadd.f32 0.0009, %v2056_v63 }
 0x4df   :  { %6306 = vst [vmem:[#allocation62_spill] sm:$0xff] %v5842_v12  ;;  %v5844_v43 = vpop.permute.xlu0 %2293  ;;  %4263 = vrcp.f32 %v2059_v9 }
 0x4e0   :  { %6307 = vst [vmem:[#allocation63_spill] sm:$0xff] %v5844_v43  ;;  %4265 = vrcp.f32 %v2058_v2 }
 0x4e6   :  { %v2280_v14 = vpop.permute.xlu1 %2279 }
 0x4e7   :  { %v2278_v32 = vpop.permute.xlu0 %2277  ;;  %v2284_v1 = vadd.f32 %v2280_v14, %v5536_v15 }
 0x4e9   :  { %v4264_v55 = vpop.eup %4263 }
 0x4ea   :  { %v5846_v19 = vpop.permute.xlu1 %2522 }
 0x4eb   :  { %6308 = vst [vmem:[#allocation64_spill] sm:$0xff] %v5846_v19  ;;  %v5848_v52 = vpop.permute.xlu0 %2520 }
 0x4ec   :  { %6309 = vst [vmem:[#allocation65_spill] sm:$0xff] %v5848_v52  ;;  %v2283_v52 = vadd.f32 %v2278_v32, %v5538_v18  ;;  %v2286_v18 = vadd.f32 0.0009, %v2284_v1 }
 0x4ee   :  { %v2285_v37 = vadd.f32 0.0009, %v2283_v52 }
 0x4f0   :  { %4267 = vrcp.f32 %v2285_v37 }
 0x4f1   :  { %4269 = vrcp.f32 %v2286_v18 }
 0x4f2   :  { %v2507_v31 = vpop.permute.xlu1 %2506 }
 0x4f3   :  { %v2505_v41 = vpop.permute.xlu0 %2504 }
 0x4f4   :  { %v2510_v15 = vadd.f32 %v2505_v41, %v5564_v23 }
 0x4f6   :  { %v5852_v47 = vpop.permute.xlu1 %2749 }
 0x4f7   :  { %6310 = vst [vmem:[#allocation66_spill] sm:$0xff] %v5852_v47  ;;  %v5854_v22 = vpop.permute.xlu0 %2747 }
 0x4f8   :  { %6311 = vst [vmem:[#allocation67_spill] sm:$0xff] %v5854_v22 }
 0x4fa   :  { %v2734_v43 = vpop.permute.xlu1 %2733 }
 0x4fb   :  { %v2732_v19 = vpop.permute.xlu0 %2731 }
 0x4fe   :  { %v2041_v26 = vpop.permute.xlu1 %2040 }
 0x4ff   :  { %v2045_v11 = vmul.f32 %v2041_v26, %v2035_v7  ;;  %v2077_v63 = vmul.f32 %v2041_v26, %v5606_v25  ;;  %v2039_v47 = vpop.permute.xlu0 %2038  ;;  %v4266_v25 = vpop.eup %4265  ;;  %v2512_v26 = vadd.f32 0.0009, %v2510_v15 }
 0x500   :  { %v2044_v30 = vmul.f32 %v2039_v47, %v2034_v60  ;;  %v2076_v9 = vmul.f32 %v2039_v47, %v5615_v49  ;;  %v2261_v49 = vmul.f32 2.0, %v5639_v42  ;;  %v4268_v1 = vpop.eup %4267 }
 0x501   :  { %v2047_v12 = vadd.f32 0.0009, %v2045_v11  ;;  %v2079_v2 = vadd.f32 0.00045, %v2077_v63  ;;  %4271 = vrcp.f32 %v2512_v26  ;;  %v2738_v11 = vadd.f32 %v2734_v43, %v5586_v3 }
 0x502   :  { %v2046_v22 = vadd.f32 0.0009, %v2044_v30  ;;  %v2078_v29 = vadd.f32 0.00045, %v2076_v9  ;;  %v2511_v30 = vadd.f32 %v2507_v31, %v5562_v20  ;;  %v2488_v9 = vmul.f32 2.0, %v5675_v50 }
 0x503   :  { %2084 = vrot.lane.b32.xlu1 %v2079_v2, %s4484_s27  ;;  %v5865_v32 = vpop.permute.xlu0 %2960  ;;  %v2063_v52 = vmul.f32 %v4264_v55, %v2047_v12  ;;  %v2262_v55 = vmul.f32 2.0, %v5656_v16  ;;  %v2737_v2 = vadd.f32 %v2732_v19, %v5588_v21  ;;  %v2740_v3 = vadd.f32 0.0009, %v2738_v11 }
 0x504   :  { %2082 = vrot.lane.b32.xlu0 %v2078_v29, %s4484_s27  ;;  %v2061_v14 = vmul.f32 %v4266_v25, %v2046_v22  ;;  %v2513_v22 = vadd.f32 0.0009, %v2511_v30  ;;  %v2489_v30 = vmul.f32 2.0, %v5697_v34  ;;  %v2715_v11 = vmul.f32 2.0, %v5734_v59 }
 0x506   :  { %4273 = vrcp.f32 %v2513_v22 }
 0x507   :  { %v5871_v47 = vpop.permute.xlu1 %2958  ;;  %2096 = vrot.lane.b32.xlu1 %v2063_v52, %s4488_s13  ;;  %v2266_v7 = vpop.permute.xlu0 %2265  ;;  %4275 = vrcp.f32 %v2740_v3 }
 0x508   :  { %v2271_v37 = vmul.f32 %v2266_v7, %v2261_v49  ;;  %v2303_v23 = vmul.f32 %v2266_v7, %v5639_v42  ;;  %2094 = vrot.lane.b32.xlu0 %v2061_v14, %s4488_s13  ;;  %v2739_v7 = vadd.f32 0.0009, %v2737_v2 }
 0x50a   :  { %v2305_v29 = vadd.f32 0.00045, %v2303_v23  ;;  %v2273_v12 = vadd.f32 0.0009, %v2271_v37  ;;  %4277 = vrcp.f32 %v2739_v7 }
 0x50b   :  { %v2268_v41 = vpop.permute.xlu1 %2267  ;;  %v5877_v60 = vpop.permute.xlu0 %3187 }
 0x50c   :  { %v2272_v20 = vmul.f32 %v2268_v41, %v2262_v55  ;;  %v2304_v31 = vmul.f32 %v2268_v41, %v5656_v16  ;;  %2309 = vrot.lane.b32.xlu0 %v2305_v29, %s4484_s27  ;;  %v2288_v18 = vmul.f32 %v4268_v1, %v2273_v12  ;;  %v4270_v16 = vpop.eup %4269  ;;  %v2716_v12 = vmul.f32 2.0, %v5695_v39 }
 0x50e   :  { %v2274_v42 = vadd.f32 0.0009, %v2272_v20  ;;  %v2306_v63 = vadd.f32 0.00045, %v2304_v31 }
 0x50f   :  { %v5884_v15 = vpop.permute.xlu1 %3185  ;;  %v2493_v25 = vpop.permute.xlu0 %2492 }
 0x510   :  { %v2498_v52 = vmul.f32 %v2493_v25, %v2488_v9  ;;  %v2530_v14 = vmul.f32 %v2493_v25, %v5675_v50  ;;  %2311 = vrot.lane.b32.xlu1 %v2306_v63, %s4484_s27  ;;  %2321 = vrot.lane.b32.xlu0 %v2288_v18, %s4488_s13  ;;  %v2290_v43 = vmul.f32 %v4270_v16, %v2274_v42  ;;  %v4272_v50 = vpop.eup %4271 }
 0x511   :  { %v4274_v20 = vpop.eup %4273 }
 0x512   :  { %v2532_v49 = vadd.f32 0.00045, %v2530_v14  ;;  %v2500_v26 = vadd.f32 0.0009, %v2498_v52  ;;  %v4276_v3 = vpop.eup %4275 }
 0x513   :  { %v2495_v21 = vpop.permute.xlu1 %2494  ;;  %v2722_v55 = vpop.permute.xlu0 %2721 }
 0x514   :  { %v2499_v19 = vmul.f32 %v2495_v21, %v2489_v30  ;;  %v2531_v37 = vmul.f32 %v2495_v21, %v5697_v34  ;;  %2323 = vrot.lane.b32.xlu1 %v2290_v43, %s4488_s13  ;;  %2536 = vrot.lane.b32.xlu0 %v2532_v49, %s4484_s27  ;;  %v2515_v22 = vmul.f32 %v4272_v50, %v2500_v26 }
 0x515   :  { %v2726_v31 = vmul.f32 %v2722_v55, %v2716_v12  ;;  %v2758_v1 = vmul.f32 %v2722_v55, %v5695_v39  ;;  %v4278_v39 = vpop.eup %4277 }
 0x516   :  { %v2501_v23 = vadd.f32 0.0009, %v2499_v19  ;;  %v2533_v29 = vadd.f32 0.00045, %v2531_v37 }
 0x517   :  { %v5894_v41 = vpop.permute.xlu1 %3412  ;;  %v2728_v2 = vadd.f32 0.0009, %v2726_v31  ;;  %v5902_v18 = vpop.permute.xlu0 %2948  ;;  %v2760_v25 = vadd.f32 0.00045, %v2758_v1 }
 0x518   :  { %2538 = vrot.lane.b32.xlu1 %v2533_v29, %s4484_s27  ;;  %2548 = vrot.lane.b32.xlu0 %v2515_v22, %s4488_s13  ;;  %v2517_v34 = vmul.f32 %v4274_v20, %v2501_v23 }
 0x519   :  { %v2744_v43 = vmul.f32 %v4276_v3, %v2728_v2 }
 0x51b   :  { %v2720_v42 = vpop.permute.xlu1 %2719  ;;  %v5912_v7 = vpop.permute.xlu0 %3175 }
 0x51c   :  { %v2725_v63 = vmul.f32 %v2720_v42, %v2715_v11  ;;  %v2757_v9 = vmul.f32 %v2720_v42, %v5734_v59  ;;  %2550 = vrot.lane.b32.xlu1 %v2517_v34, %s4488_s13  ;;  %v2985_v59 = vmul.f32 %v5902_v18, %v5714_v35  ;;  %v3212_v19 = vmul.f32 %v5912_v7, %v5732_v57 }
 0x51e   :  { %v2727_v52 = vadd.f32 0.0009, %v2725_v63  ;;  %v2759_v14 = vadd.f32 0.00045, %v2757_v9  ;;  %v2987_v21 = vadd.f32 0.00045, %v2985_v59  ;;  %v5970_v59 = vmul.f32 %v5400_v45, %v5836_v48 }
 0x51f   :  { %v5904_v16 = vpop.permute.xlu1 %2946  ;;  %v3214_v55 = vadd.f32 0.00045, %v3212_v19 }
 0x520   :  { %2763 = vrot.lane.b32.xlu0 %v2759_v14, %s4484_s27  ;;  %2765 = vrot.lane.b32.xlu1 %v2760_v25, %s4484_s27  ;;  %v2742_v49 = vmul.f32 %v4278_v39, %v2727_v52  ;;  %v2984_v30 = vmul.f32 %v5904_v16, %v5749_v24  ;;  %v5947_v25 = vmul.f32 %v5691_v33, %v5404_v46 }
 0x521   :  { %v5922_v23 = vpop.permute.xlu0 %3402  ;;  %v5958_v39 = vmul.f32 %v5384_v53, %v5673_v5 }
 0x522   :  { %v2986_v37 = vadd.f32 0.00045, %v2984_v30  ;;  %v3439_v22 = vmul.f32 %v5922_v23, %v5758_v38 }
 0x523   :  { %v5914_v26 = vpop.permute.xlu1 %3173 }
 0x524   :  { %2775 = vrot.lane.b32.xlu0 %v2742_v49, %s4488_s13  ;;  %2777 = vrot.lane.b32.xlu1 %v2744_v43, %s4488_s13  ;;  %v3211_v50 = vmul.f32 %v5914_v26, %v5766_v10  ;;  %v3441_v1 = vadd.f32 0.00045, %v3439_v22  ;;  %v3623_v49 = vmul.f32 2.0, %v5830_v27  ;;  %v2965_v22 = vadd.f32 %v5865_v32, %v5621_v44 }
 0x525   :  { %v2943_v32 = vmul.f32 2.0, %v5714_v35 }
 0x526   :  { %v3213_v12 = vadd.f32 0.00045, %v3211_v50  ;;  %v2964_v50 = vadd.f32 %v5871_v47, %v5633_v6  ;;  %v3192_v47 = vadd.f32 %v5877_v60, %v5649_v58  ;;  %v6315_v60 = vld [vmem:[#allocation51_spill] sm:$0xff] }
 0x527   :  { %v5924_v29 = vpop.permute.xlu1 %3400 }
 0x528   :  { %2990 = vrot.lane.b32.xlu1 %v2986_v37, %s4484_s27  ;;  %2992 = vrot.lane.b32.xlu0 %v2987_v21, %s4484_s27  ;;  %v3438_v20 = vmul.f32 %v5924_v29, %v5775_v4 }
 0x529   :  { %v5932_v31 = vpop.permute.xlu0 %3629 }
 0x52a   :  { %v3440_v11 = vadd.f32 0.00045, %v3438_v20  ;;  %v3666_v42 = vmul.f32 %v5932_v31, %v5785_v40  ;;  %v2967_v20 = vadd.f32 0.0009, %v2965_v22  ;;  %v3396_v22 = vmul.f32 2.0, %v5775_v4 }
 0x52b   :  { %v3640_v34 = vpop.permute.xlu1 %3639 }
 0x52c   :  { %3217 = vrot.lane.b32.xlu1 %v3213_v12, %s4484_s27  ;;  %3219 = vrot.lane.b32.xlu0 %v3214_v55, %s4484_s27  ;;  %v3645_v63 = vadd.f32 %v3640_v34, %v5764_v8  ;;  %v3668_v52 = vadd.f32 0.00045, %v3666_v42  ;;  %v2966_v12 = vadd.f32 0.0009, %v2964_v50  ;;  %v2942_v34 = vmul.f32 2.0, %v5749_v24  ;;  %v6313_v42 = vld [vmem:[#allocation52_spill] sm:$0xff] }
 0x52d   :  { %v3194_v24 = vadd.f32 0.0009, %v3192_v47 }
 0x52e   :  { %v3647_v14 = vadd.f32 0.0009, %v3645_v63  ;;  %v2952_v6 = vmul.f32 %v5904_v16, %v2942_v34  ;;  %v3418_v63 = vadd.f32 %v5894_v41, %v6313_v42  ;;  %v3169_v16 = vmul.f32 2.0, %v5766_v10  ;;  %v6316_v10 = vld [vmem:[#allocation53_spill] sm:$0xff] }
 0x52f   :  { %v5939_v9 = vpop.permute.xlu1 %2974 }
 0x530   :  { %v2980_v2 = vsub.f32 %v5372_v36, %v5939_v9  ;;  %3444 = vrot.lane.b32.xlu1 %v3440_v11, %s4484_s27  ;;  %3446 = vrot.lane.b32.xlu0 %v3441_v1, %s4484_s27  ;;  %4279 = vrcp.f32 %v3647_v14  ;;  %v3415_v1 = vpop.permute.xlu0 %3414  ;;  %v6312_v11 = vld [vmem:[#allocation34_spill] sm:$0xff] }
 0x531   :  { %4281 = vrcp.f32 %v2966_v12  ;;  %v3419_v35 = vadd.f32 %v3415_v1, %v6315_v60  ;;  %v6319_v1 = vld [vmem:[#allocation19_spill] sm:$0xff] }
 0x532   :  { %4283 = vrcp.f32 %v2967_v20 }
 0x533   :  { %v5949_v3 = vpop.permute.xlu1 %3201 }
 0x534   :  { %v3207_v8 = vsub.f32 %v5380_v56, %v5949_v3  ;;  %3655 = vrot.lane.b32.xlu1 %v5947_v25, %s4486_s12  ;;  %3673 = vrot.lane.b32.xlu0 %v3668_v52, %s4484_s27  ;;  %v6314_v52 = vld [vmem:[#allocation35_spill] sm:$0xff] }
 0x537   :  { %v5960_v43 = vpop.permute.xlu1 %3428 }
 0x538   :  { %v3434_v33 = vsub.f32 %v5388_v51, %v5960_v43  ;;  %2904 = vrot.lane.b32.xlu1 %v5442_v28, %s4487_s1  ;;  %3430 = vrot.lane.b32.xlu0 %v5958_v39, %s4486_s12 }
 0x53a   :  { %v4280_v19 = vpop.eup %4279  ;;  %v3436_v56 = vadd.f32 0.00045, %v3434_v33 }
 0x53b   :  { %v3628_v5 = vpop.permute.xlu1 %3627  ;;  %v4282_v58 = vpop.eup %4281 }
 0x53c   :  { %v3633_v30 = vmul.f32 %v3628_v5, %v3623_v49  ;;  %2906 = vrot.lane.b32.xlu1 %v5432_v13, %s4487_s1  ;;  %3657 = vrot.lane.b32.xlu0 %v5970_v59, %s4486_s12  ;;  %v3665_v37 = vmul.f32 %v3628_v5, %v5830_v27  ;;  %v3191_v27 = vadd.f32 %v5884_v15, %v5669_v62  ;;  %v2954_v15 = vadd.f32 0.0009, %v2952_v6  ;;  %v4284_v41 = vpop.eup %4283 }
 0x53d   :  { %v2953_v62 = vmul.f32 %v5902_v18, %v2943_v32  ;;  %v3179_v5 = vmul.f32 %v5914_v26, %v3169_v16  ;;  %v3420_v18 = vadd.f32 0.0009, %v3418_v63  ;;  %v6318_v32 = vld [vmem:[#allocation38_spill] sm:$0xff]  ;;  %v3624_v63 = vmul.f32 2.0, %v5785_v40 }
 0x53e   :  { %v3635_v21 = vadd.f32 0.0009, %v3633_v30  ;;  %v3667_v55 = vadd.f32 0.00045, %v3665_v37  ;;  %v3193_v44 = vadd.f32 0.0009, %v3191_v27  ;;  %v2969_v49 = vmul.f32 %v4282_v58, %v2954_v15  ;;  %v3642_v30 = vpop.permute.xlu0 %3641 }
 0x53f   :  { %v2955_v14 = vadd.f32 0.0009, %v2953_v62  ;;  %v3406_v27 = vmul.f32 %v5924_v29, %v3396_v22  ;;  %v6320_v62 = vld [vmem:[#allocation39_spill] sm:$0xff] }
 0x540   :  { %3131 = vrot.lane.b32.xlu1 %v5458_v61, %s4487_s1  ;;  %3587 = vrot.lane.b32.xlu0 %v5480_v17, %s4487_s1  ;;  %v3650_v48 = vmul.f32 %v4280_v19, %v3635_v21  ;;  %4285 = vrcp.f32 %v3193_v44  ;;  %v3170_v21 = vmul.f32 2.0, %v5732_v57  ;;  %v3421_v19 = vadd.f32 0.0009, %v3419_v35  ;;  %v6317_v44 = vld [vmem:[#allocation18_spill] sm:$0xff] }
 0x541   :  { %4287 = vrcp.f32 %v3194_v24  ;;  %v2971_v37 = vmul.f32 %v4284_v41, %v2955_v14  ;;  %v3408_v47 = vadd.f32 0.0009, %v3406_v27  ;;  %v2003_v4 = vadd.f32 %v6318_v32, %v6317_v44  ;;  %v6323_v41 = vld [vmem:[#allocation26_spill] sm:$0xff] }
 0x542   :  { %v3180_v50 = vmul.f32 %v5912_v7, %v3170_v21  ;;  %4289 = vrcp.f32 %v3420_v18  ;;  %v3397_v7 = vmul.f32 2.0, %v5758_v38  ;;  %v2002_v15 = vadd.f32 %v6320_v62, %v6319_v1  ;;  %v6322_v18 = vld [vmem:[#allocation43_spill] sm:$0xff]  ;;  %v6329_v32 = vld [vmem:[#allocation30_spill] sm:$0xff] }
 0x543   :  { %4291 = vrcp.f32 %v3421_v19  ;;  %v2005_v58 = vadd.f32 0.0001, %v2003_v4  ;;  %v3634_v38 = vmul.f32 %v5932_v31, %v3624_v63  ;;  %v6324_v19 = vld [vmem:[#allocation42_spill] sm:$0xff] }
 0x544   :  { %3133 = vrot.lane.b32.xlu1 %v5448_v54, %s4487_s1  ;;  %3683 = vrot.lane.b32.xlu0 %v3650_v48, %s4488_s13  ;;  %v3646_v48 = vadd.f32 %v3642_v30, %v6316_v10  ;;  %v3182_v20 = vadd.f32 0.0009, %v3180_v50  ;;  %v3407_v24 = vmul.f32 %v5922_v23, %v3397_v7  ;;  %v2004_v60 = vadd.f32 0.0001, %v2002_v15  ;;  %v6027_v23 = vpop.permute.xlu0 %2976  ;;  %v6321_v30 = vld [vmem:[#allocation27_spill] sm:$0xff]  ;;  %v6330_v4 = vld [vmem:[#allocation46_spill] sm:$0xff] }
 0x545   :  { %v2229_v40 = vadd.f32 %v6322_v18, %v6321_v30  ;;  %v2230_v10 = vadd.f32 %v6324_v19, %v6323_v41  ;;  %v2457_v1 = vadd.f32 %v6330_v4, %v6329_v32  ;;  %v6335_v30 = vld [vmem:[#allocation17_spill] sm:$0xff] }
 0x546   :  { %v3648_v12 = vadd.f32 0.0009, %v3646_v48  ;;  %v3409_v35 = vadd.f32 0.0009, %v3407_v24  ;;  %v6325_v48 = vld [vmem:[#allocation36_spill] sm:$0xff] }
 0x547   :  { %v2231_v31 = vadd.f32 0.0001, %v2229_v40  ;;  %v6336_v40 = vld [vmem:[#allocation33_spill] sm:$0xff] }
 0x548   :  { %3671 = vrot.lane.b32.xlu1 %v3667_v55, %s4484_s27  ;;  %v3181_v55 = vadd.f32 0.0009, %v3179_v5  ;;  %4293 = vrcp.f32 %v3648_v12  ;;  %v3636_v5 = vadd.f32 0.0009, %v3634_v38  ;;  %v6036_v50 = vpop.permute.xlu0 %3203  ;;  %v6333_v38 = vld [vmem:[#allocation41_spill] sm:$0xff] }
 0x549   :  { %4295 = vrcp.f32 %v2005_v58  ;;  %v6332_v58 = vld [vmem:[#allocation16_spill] sm:$0xff] }
 0x54a   :  { %v4286_v26 = vpop.eup %4285  ;;  %4297 = vrcp.f32 %v2004_v60 }
 0x54b   :  { %v3196_v57 = vmul.f32 %v4286_v26, %v3181_v55  ;;  %v4288_v34 = vpop.eup %4287  ;;  %v6326_v55 = vld [vmem:[#allocation37_spill] sm:$0xff]  ;;  %v2232_v26 = vadd.f32 0.0001, %v2230_v10  ;;  %4299 = vrcp.f32 %v2231_v31  ;;  %v6338_v31 = vld [vmem:[#allocation40_spill] sm:$0xff] }
 0x54c   :  { %3358 = vrot.lane.b32.xlu1 %v5474_v0, %s4487_s1  ;;  %v3198_v6 = vmul.f32 %v4288_v34, %v3182_v20  ;;  %v4290_v42 = vpop.eup %4289  ;;  %v1990_v22 = vmul.f32 2.0, %v6326_v55  ;;  %v6327_v20 = vld [vmem:[#allocation31_spill] sm:$0xff] }
 0x54d   :  { %v3423_v29 = vmul.f32 %v4290_v42, %v3408_v47  ;;  %v4292_v16 = vpop.eup %4291  ;;  %v6340_v55 = vld [vmem:[#allocation59_spill] sm:$0xff] }
 0x54e   :  { %v3425_v14 = vmul.f32 %v4292_v16, %v3409_v35  ;;  %v1992_v44 = vadd.f32 0.0001, %v1990_v22  ;;  %v6331_v16 = vld [vmem:[#allocation60_spill] sm:$0xff] }
 0x54f   :  { %v2073_v60 = vsub.f32 %v6332_v58, %v6331_v16 }
 0x550   :  { %3360 = vrot.lane.b32.xlu1 %v6312_v11, %s4487_s1 }
 0x554   :  { %3585 = vrot.lane.b32.xlu1 %v6314_v52, %s4487_s1 }
 0x558   :  { %3002 = vrot.lane.b32.xlu1 %v2969_v49, %s4488_s13  ;;  %v4294_v49 = vpop.eup %4293 }
 0x559   :  { %v3652_v21 = vmul.f32 %v4294_v49, %v3636_v5  ;;  %v4296_v12 = vpop.eup %4295  ;;  %v2459_v49 = vadd.f32 0.0001, %v2457_v1  ;;  %v6334_v5 = vld [vmem:[#allocation61_spill] sm:$0xff] }
 0x55a   :  { %v2072_v18 = vsub.f32 %v6335_v30, %v6334_v5 }
 0x55c   :  { %3004 = vrot.lane.b32.xlu1 %v2971_v37, %s4488_s13  ;;  %v1991_v37 = vmul.f32 2.0, %v6325_v48  ;;  %v2218_v48 = vmul.f32 2.0, %v6338_v31 }
 0x55e   :  { %v1993_v7 = vadd.f32 0.0001, %v1991_v37  ;;  %v6339_v37 = vld [vmem:[#allocation32_spill] sm:$0xff]  ;;  %v2220_v4 = vadd.f32 0.0001, %v2218_v48 }
 0x55f   :  { %v2684_v22 = vadd.f32 %v6340_v55, %v6339_v37 }
 0x560   :  { %3229 = vrot.lane.b32.xlu1 %v3196_v57, %s4488_s13  ;;  %v6328_v57 = vld [vmem:[#allocation47_spill] sm:$0xff]  ;;  %v2009_v62 = vmul.f32 %v4296_v12, %v1993_v7 }
 0x561   :  { %v2456_v27 = vadd.f32 %v6328_v57, %v6327_v20  ;;  %v2074_v57 = vadd.f32 0.00045, %v2072_v18  ;;  %v2686_v1 = vadd.f32 0.0001, %v2684_v22 }
 0x563   :  { %v2458_v15 = vadd.f32 0.0001, %v2456_v27 }
 0x564   :  { %3231 = vrot.lane.b32.xlu1 %v3198_v6, %s4488_s13  ;;  %v4298_v6 = vpop.eup %4297 }
 0x565   :  { %v2007_v42 = vmul.f32 %v4298_v6, %v1992_v44  ;;  %v4300_v10 = vpop.eup %4299 }
 0x568   :  { %3456 = vrot.lane.b32.xlu1 %v3423_v29, %s4488_s13 }
 0x56c   :  { %3458 = vrot.lane.b32.xlu1 %v3425_v14, %s4488_s13  ;;  %v2217_v14 = vmul.f32 2.0, %v6333_v38 }
 0x56e   :  { %v2219_v20 = vadd.f32 0.0001, %v2217_v14 }
 0x570   :  { %3685 = vrot.lane.b32.xlu1 %v3652_v21, %s4488_s13  ;;  %v6337_v21 = vld [vmem:[#allocation50_spill] sm:$0xff]  ;;  %v2234_v44 = vmul.f32 %v4300_v10, %v2219_v20 }
 0x571   :  { %v2683_v41 = vadd.f32 %v6337_v21, %v6336_v40  ;;  %v6345_v21 = vld [vmem:[#allocation62_spill] sm:$0xff] }
 0x573   :  { %v2685_v7 = vadd.f32 0.0001, %v2683_v41  ;;  %v6346_v41 = vld [vmem:[#allocation20_spill] sm:$0xff] }
 0x575   :  { %v2085_v34 = vpop.permute.xlu1 %2084 }
 0x576   :  { %4301 = vrcp.f32 %v2085_v34  ;;  %v2083_v47 = vpop.permute.xlu0 %2082 }
 0x577   :  { %4303 = vrcp.f32 %v2083_v47 }
 0x578   :  { %4305 = vrcp.f32 %v2232_v26  ;;  %v2075_v26 = vadd.f32 0.00045, %v2073_v60 }
 0x579   :  { %v2097_v24 = vpop.permute.xlu1 %2096  ;;  %4307 = vrcp.f32 %v2458_v15  ;;  %v6341_v15 = vld [vmem:[#allocation45_spill] sm:$0xff] }
 0x57a   :  { %v6043_v29 = vmul.f32 %v2097_v24, %v2009_v62  ;;  %v2095_v63 = vpop.permute.xlu0 %2094  ;;  %v2444_v24 = vmul.f32 2.0, %v6341_v15 }
 0x57b   :  { %v6047_v35 = vmul.f32 %v2095_v63, %v2007_v42  ;;  %v6342_v42 = vld [vmem:[#allocation63_spill] sm:$0xff]  ;;  %v6343_v63 = vld [vmem:[#allocation21_spill] sm:$0xff] }
 0x57c   :  { %v2299_v16 = vsub.f32 %v6343_v63, %v6342_v42  ;;  %v2446_v40 = vadd.f32 0.0001, %v2444_v24  ;;  %v6351_v63 = vld [vmem:[#allocation64_spill] sm:$0xff] }
 0x57e   :  { %v2310_v19 = vpop.permute.xlu0 %2309  ;;  %v2301_v10 = vadd.f32 0.00045, %v2299_v16  ;;  %v6352_v16 = vld [vmem:[#allocation22_spill] sm:$0xff] }
 0x57f   :  { %4309 = vrcp.f32 %v2310_v19  ;;  %v2300_v19 = vsub.f32 %v6346_v41, %v6345_v21 }
 0x580   :  { %v4302_v12 = vpop.eup %4301  ;;  %4311 = vrcp.f32 %v2459_v49  ;;  %v6344_v49 = vld [vmem:[#allocation44_spill] sm:$0xff] }
 0x581   :  { %v4304_v27 = vpop.eup %4303  ;;  %v2091_v34 = vmul.f32 %v4302_v12, %v2075_v26  ;;  %v2445_v5 = vmul.f32 2.0, %v6344_v49  ;;  %v2302_v20 = vadd.f32 0.00045, %v2300_v19 }
 0x582   :  { %v4306_v6 = vpop.eup %4305  ;;  %v2312_v47 = vpop.permute.xlu1 %2311  ;;  %v2089_v32 = vmul.f32 %v4304_v27, %v2074_v57 }
 0x583   :  { %4313 = vrcp.f32 %v2312_v47  ;;  %v2322_v62 = vpop.permute.xlu0 %2321  ;;  %2106 = vrot.lane.b32.xlu1 %v2091_v34, %s4486_s12  ;;  %v2236_v60 = vmul.f32 %v4306_v6, %v2220_v4  ;;  %v4308_v14 = vpop.eup %4307  ;;  %v2447_v26 = vadd.f32 0.0001, %v2445_v5  ;;  %v6347_v34 = vld [vmem:[#allocation65_spill] sm:$0xff]  ;;  %v6348_v6 = vld [vmem:[#allocation23_spill] sm:$0xff]  ;;  %v6349_v4 = vld [vmem:[#allocation48_spill] sm:$0xff] }
 0x584   :  { %v6061_v58 = vmul.f32 %v2322_v62, %v2234_v44  ;;  %2104 = vrot.lane.b32.xlu0 %v2089_v32, %s4486_s12  ;;  %4315 = vrcp.f32 %v2685_v7  ;;  %v2461_v55 = vmul.f32 %v4308_v14, %v2446_v40  ;;  %v2526_v7 = vsub.f32 %v6348_v6, %v6347_v34  ;;  %v6350_v62 = vld [vmem:[#allocation49_spill] sm:$0xff] }
 0x585   :  { %4317 = vrcp.f32 %v2686_v1  ;;  %v2672_v1 = vmul.f32 2.0, %v6349_v4  ;;  %v2671_v15 = vmul.f32 2.0, %v6350_v62  ;;  %v6356_v4 = vld [vmem:[#allocation67_spill] sm:$0xff] }
 0x586   :  { %v2324_v38 = vpop.permute.xlu1 %2323  ;;  %v2528_v14 = vadd.f32 0.00045, %v2526_v7 }
 0x587   :  { %v6065_v30 = vmul.f32 %v2324_v38, %v2236_v60  ;;  %v2537_v18 = vpop.permute.xlu0 %2536  ;;  %v2527_v60 = vsub.f32 %v6352_v16, %v6351_v63  ;;  %v2674_v40 = vadd.f32 0.0001, %v2672_v1  ;;  %v2673_v21 = vadd.f32 0.0001, %v2671_v15 }
 0x588   :  { %4319 = vrcp.f32 %v2537_v18 }
 0x589   :  { %v4310_v31 = vpop.eup %4309  ;;  %v2529_v19 = vadd.f32 0.00045, %v2527_v60 }
 0x58a   :  { %v4312_v48 = vpop.eup %4311  ;;  %v2539_v37 = vpop.permute.xlu1 %2538  ;;  %v2316_v22 = vmul.f32 %v4310_v31, %v2301_v10 }
 0x58b   :  { %4321 = vrcp.f32 %v2539_v37  ;;  %v2549_v12 = vpop.permute.xlu0 %2548  ;;  %v2463_v47 = vmul.f32 %v4312_v48, %v2447_v26 }
 0x58c   :  { %v6069_v57 = vmul.f32 %v2549_v12, %v2461_v55  ;;  %2331 = vrot.lane.b32.xlu0 %v2316_v22, %s4486_s12 }
 0x58d   :  { %v4314_v27 = vpop.eup %4313 }
 0x58e   :  { %v2551_v44 = vpop.permute.xlu1 %2550  ;;  %v2318_v32 = vmul.f32 %v4314_v27, %v2302_v20  ;;  %v4316_v42 = vpop.eup %4315  ;;  %v6353_v20 = vld [vmem:[#allocation66_spill] sm:$0xff]  ;;  %v6354_v27 = vld [vmem:[#allocation24_spill] sm:$0xff] }
 0x58f   :  { %v6076_v24 = vmul.f32 %v2551_v44, %v2463_v47  ;;  %v4318_v38 = vpop.eup %4317  ;;  %v2688_v48 = vmul.f32 %v4316_v42, %v2673_v21  ;;  %v2754_v34 = vsub.f32 %v6354_v27, %v6353_v20 }
 0x590   :  { %2333 = vrot.lane.b32.xlu1 %v2318_v32, %s4486_s12  ;;  %v2690_v31 = vmul.f32 %v4318_v38, %v2674_v40  ;;  %v6355_v32 = vld [vmem:[#allocation25_spill] sm:$0xff]  ;;  %v6358_v38 = vld [vmem:[#allocation28_spill] sm:$0xff] }
 0x591   :  { %v2756_v47 = vadd.f32 0.00045, %v2754_v34  ;;  %v6357_v1 = vsub.f32 %v6355_v32, %v6356_v4 }
 0x592   :  { %v4320_v49 = vpop.eup %4319  ;;  %v2766_v5 = vpop.permute.xlu1 %2765 }
 0x593   :  { %v2764_v18 = vpop.permute.xlu0 %2763  ;;  %4323 = vrcp.f32 %v2766_v5  ;;  %v2543_v41 = vmul.f32 %v4320_v49, %v2528_v14  ;;  %v2755_v62 = vadd.f32 0.00045, %v6357_v1  ;;  %v2981_v14 = vsub.f32 %v6358_v38, %v6027_v23 }
 0x594   :  { %4325 = vrcp.f32 %v2764_v18  ;;  %v2982_v18 = vadd.f32 0.00045, %v2980_v2 }
 0x595   :  { %v4322_v10 = vpop.eup %4321  ;;  %2558 = vrot.lane.b32.xlu0 %v2543_v41, %s4486_s12  ;;  %v2983_v21 = vadd.f32 0.00045, %v2981_v14  ;;  %v6359_v41 = vld [vmem:[#allocation29_spill] sm:$0xff]  ;;  %v6361_v14 = vld [vmem:[#allocation56_spill] sm:$0xff] }
 0x596   :  { %v2778_v37 = vpop.permute.xlu1 %2777  ;;  %v2545_v22 = vmul.f32 %v4322_v10, %v2529_v19  ;;  %v3208_v19 = vsub.f32 %v6359_v41, %v6036_v50 }
 0x597   :  { %v2776_v55 = vpop.permute.xlu0 %2775  ;;  %v6082_v26 = vmul.f32 %v2778_v37, %v2690_v31 }
 0x598   :  { %v6084_v12 = vmul.f32 %v2776_v55, %v2688_v48  ;;  %2560 = vrot.lane.b32.xlu1 %v2545_v22, %s4486_s12  ;;  %v3209_v55 = vadd.f32 0.00045, %v3207_v8  ;;  %v3210_v9 = vadd.f32 0.00045, %v3208_v19 }
 0x59a   :  { %v2991_v6 = vpop.permute.xlu1 %2990 }
 0x59b   :  { %v2993_v7 = vpop.permute.xlu0 %2992  ;;  %4327 = vrcp.f32 %v2991_v6 }
 0x59c   :  { %4329 = vrcp.f32 %v2993_v7 }
 0x59d   :  { %v4324_v44 = vpop.eup %4323 }
 0x59e   :  { %v4326_v15 = vpop.eup %4325  ;;  %v3218_v42 = vpop.permute.xlu1 %3217  ;;  %v2772_v16 = vmul.f32 %v4324_v44, %v2756_v47 }
 0x59f   :  { %v3220_v63 = vpop.permute.xlu0 %3219  ;;  %4331 = vrcp.f32 %v3218_v42  ;;  %v2770_v60 = vmul.f32 %v4326_v15, %v2755_v62 }
 0x5a0   :  { %4333 = vrcp.f32 %v3220_v63  ;;  %2787 = vrot.lane.b32.xlu1 %v2772_v16, %s4486_s12  ;;  %v6360_v63 = vld [vmem:[#allocation54_spill] sm:$0xff] }
 0x5a1   :  { %2785 = vrot.lane.b32.xlu0 %v2770_v60, %s4486_s12  ;;  %v2898_v16 = vmul.f32 2.0, %v6360_v63 }
 0x5a2   :  { %v3445_v49 = vpop.permute.xlu1 %3444 }
 0x5a3   :  { %v3447_v5 = vpop.permute.xlu0 %3446  ;;  %4335 = vrcp.f32 %v3445_v49  ;;  %v2900_v38 = vadd.f32 0.0001, %v2898_v16  ;;  %v2899_v49 = vmul.f32 2.0, %v6361_v14 }
 0x5a4   :  { %4337 = vrcp.f32 %v3447_v5 }
 0x5a5   :  { %v4328_v40 = vpop.eup %4327  ;;  %v2901_v41 = vadd.f32 0.0001, %v2899_v49 }
 0x5a6   :  { %v4330_v10 = vpop.eup %4329  ;;  %v6101_v31 = vpop.permute.xlu1 %3655  ;;  %v2997_v23 = vmul.f32 %v4328_v40, %v2982_v18 }
 0x5a7   :  { %v3674_v48 = vpop.permute.xlu0 %3673  ;;  %v2999_v37 = vmul.f32 %v4330_v10, %v2983_v21 }
 0x5a8   :  { %4339 = vrcp.f32 %v3674_v48  ;;  %3012 = vrot.lane.b32.xlu0 %v2997_v23, %s4486_s12 }
 0x5a9   :  { %v4332_v36 = vpop.eup %4331  ;;  %3014 = vrot.lane.b32.xlu1 %v2999_v37, %s4486_s12 }
 0x5aa   :  { %v4334_v2 = vpop.eup %4333  ;;  %v2905_v22 = vpop.permute.xlu1 %2904  ;;  %v3224_v20 = vmul.f32 %v4332_v36, %v3209_v55  ;;  %v6363_v55 = vld [vmem:[#allocation58_spill] sm:$0xff] }
 0x5ab   :  { %v3431_v50 = vpop.permute.xlu0 %3430  ;;  %v2910_v27 = vadd.f32 %v2905_v22, %v5442_v28  ;;  %v3226_v6 = vmul.f32 %v4334_v2, %v3210_v9  ;;  %v3126_v36 = vmul.f32 2.0, %v6363_v55  ;;  %v3661_v2 = vsub.f32 %v5404_v46, %v6101_v31 }
 0x5ac   :  { %v3435_v34 = vsub.f32 %v5384_v53, %v3431_v50  ;;  %3239 = vrot.lane.b32.xlu0 %v3224_v20, %s4486_s12 }
 0x5ad   :  { %v4336_v3 = vpop.eup %4335  ;;  %v2912_v8 = vadd.f32 0.0001, %v2910_v27  ;;  %3241 = vrot.lane.b32.xlu1 %v3226_v6, %s4486_s12  ;;  %v3128_v27 = vadd.f32 0.0001, %v3126_v36  ;;  %v3663_v6 = vadd.f32 0.00045, %v3661_v2 }
 0x5ae   :  { %v3437_v7 = vadd.f32 0.00045, %v3435_v34  ;;  %v4338_v47 = vpop.eup %4337  ;;  %v2907_v44 = vpop.permute.xlu1 %2906  ;;  %v3451_v4 = vmul.f32 %v4336_v3, %v3436_v56 }
 0x5af   :  { %v3658_v32 = vpop.permute.xlu0 %3657  ;;  %4341 = vrcp.f32 %v2912_v8  ;;  %v2911_v53 = vadd.f32 %v2907_v44, %v5432_v13 }
 0x5b0   :  { %v3453_v28 = vmul.f32 %v4338_v47, %v3437_v7  ;;  %v3662_v1 = vsub.f32 %v5400_v45, %v3658_v32  ;;  %3466 = vrot.lane.b32.xlu0 %v3451_v4, %s4486_s12  ;;  %v6364_v47 = vld [vmem:[#allocation57_spill] sm:$0xff] }
 0x5b1   :  { %v2913_v43 = vadd.f32 0.0001, %v2911_v53  ;;  %v3352_v44 = vmul.f32 2.0, %v6364_v47  ;;  %v3579_v53 = vmul.f32 2.0, %v5947_v25 }
 0x5b2   :  { %v4340_v51 = vpop.eup %4339  ;;  %v3664_v33 = vadd.f32 0.00045, %v3662_v1  ;;  %3468 = vrot.lane.b32.xlu1 %v3453_v28, %s4486_s12  ;;  %v3132_v62 = vpop.permute.xlu1 %3131 }
 0x5b3   :  { %4343 = vrcp.f32 %v2913_v43  ;;  %v3137_v42 = vadd.f32 %v3132_v62, %v5458_v61  ;;  %v6362_v61 = vld [vmem:[#allocation55_spill] sm:$0xff]  ;;  %v3354_v46 = vadd.f32 0.0001, %v3352_v44  ;;  %v3588_v1 = vpop.permute.xlu0 %3587  ;;  %v3581_v43 = vadd.f32 0.0001, %v3579_v53 }
 0x5b4   :  { %v3680_v15 = vmul.f32 %v4340_v51, %v3664_v33  ;;  %v3125_v19 = vmul.f32 2.0, %v6362_v61  ;;  %v3592_v36 = vadd.f32 %v3588_v1, %v5480_v17  ;;  %v3580_v44 = vmul.f32 2.0, %v5970_v59 }
 0x5b5   :  { %v3139_v60 = vadd.f32 0.0001, %v3137_v42 }
 0x5b6   :  { %3695 = vrot.lane.b32.xlu1 %v3680_v15, %s4486_s12  ;;  %v3134_v13 = vpop.permute.xlu1 %3133  ;;  %v3594_v2 = vadd.f32 0.0001, %v3592_v36 }
 0x5b7   :  { %4345 = vrcp.f32 %v3139_v60  ;;  %v3138_v45 = vadd.f32 %v3134_v13, %v5448_v54  ;;  %v3127_v54 = vadd.f32 0.0001, %v3125_v19 }
 0x5b9   :  { %v4342_v5 = vpop.eup %4341  ;;  %v3140_v18 = vadd.f32 0.0001, %v3138_v45 }
 0x5ba   :  { %v3672_v40 = vpop.permute.xlu1 %3671  ;;  %v6124_v21 = vmul.f32 %v4342_v5, %v2900_v38 }
 0x5bb   :  { %4347 = vrcp.f32 %v3140_v18 }
 0x5bc   :  { %4349 = vrcp.f32 %v3672_v40 }
 0x5bd   :  { %v4344_v10 = vpop.eup %4343 }
 0x5be   :  { %v3359_v48 = vpop.permute.xlu1 %3358  ;;  %v6127_v23 = vmul.f32 %v4344_v10, %v2901_v41 }
 0x5bf   :  { %v3364_v37 = vadd.f32 %v3359_v48, %v5474_v0 }
 0x5c1   :  { %v4346_v9 = vpop.eup %4345  ;;  %v3366_v22 = vadd.f32 0.0001, %v3364_v37 }
 0x5c2   :  { %v3361_v50 = vpop.permute.xlu1 %3360  ;;  %v6133_v20 = vmul.f32 %v4346_v9, %v3127_v54 }
 0x5c3   :  { %4351 = vrcp.f32 %v3366_v22  ;;  %v3365_v54 = vadd.f32 %v3361_v50, %v6312_v11  ;;  %v3353_v50 = vmul.f32 2.0, %v5958_v39 }
 0x5c5   :  { %v4348_v34 = vpop.eup %4347  ;;  %v3355_v47 = vadd.f32 0.0001, %v3353_v50 }
 0x5c6   :  { %v4350_v56 = vpop.eup %4349  ;;  %v3586_v3 = vpop.permute.xlu1 %3585  ;;  %v6135_v8 = vmul.f32 %v4348_v34, %v3128_v27 }
 0x5c7   :  { %v3591_v0 = vadd.f32 %v3586_v3, %v6314_v52  ;;  %v3678_v7 = vmul.f32 %v4350_v56, %v3663_v6  ;;  %v3684_v52 = vpop.permute.xlu0 %3683 }
 0x5c9   :  { %v3593_v32 = vadd.f32 0.0001, %v3591_v0  ;;  %3693 = vrot.lane.b32.xlu0 %v3678_v7, %s4486_s12 }
 0x5ca   :  { %v3003_v4 = vpop.permute.xlu1 %3002 }
 0x5cb   :  { %4353 = vrcp.f32 %v3593_v32  ;;  %v3008_v11 = vmul.f32 %v3003_v4, %v6124_v21 }
 0x5cd   :  { %v4352_v31 = vpop.eup %4351 }
 0x5ce   :  { %v6140_v28 = vmul.f32 %v4352_v31, %v3354_v46  ;;  %v3005_v51 = vpop.permute.xlu1 %3004 }
 0x5cf   :  { %v3009_v17 = vmul.f32 %v3005_v51, %v6127_v23  ;;  %v3582_v51 = vadd.f32 0.0001, %v3580_v44 }
 0x5d2   :  { %v3230_v42 = vpop.permute.xlu1 %3229 }
 0x5d5   :  { %v4354_v33 = vpop.eup %4353 }
 0x5d6   :  { %v3596_v62 = vmul.f32 %v4354_v33, %v3581_v43  ;;  %v3232_v63 = vpop.permute.xlu1 %3231 }
 0x5d7   :  { %v3236_v21 = vmul.f32 %v3232_v63, %v6135_v8 }
 0x5d8   :  { %v6143_v15 = vmul.f32 %v3684_v52, %v3596_v62 }
 0x5da   :  { %v6145_v16 = vpop.permute.xlu1 %3456 }
 0x5de   :  { %v6147_v60 = vpop.permute.xlu1 %3458 }
 0x5e2   :  { %v6149_v13 = vpop.permute.xlu1 %3685 }
 0x5f5   :  { %v2107_v45 = vpop.permute.xlu1 %2106 }
 0x5f6   :  { %v2111_v38 = vmul.f32 %v2107_v45, %v6043_v29  ;;  %v2105_v25 = vpop.permute.xlu0 %2104 }
 0x5f7   :  { %v2110_v14 = vmul.f32 %v2105_v25, %v6047_v35 }
 0x5f8   :  { %v2115_v49 = vsel %vm105_vm0, %v2111_v38, 0.0 }
 0x5f9   :  { %2116 = vadd.xlane.f32.xlu1 %v2115_v49  ;;  %v2112_v5 = vsel %vm105_vm0, %v2110_v14, 0.0 }
 0x5fa   :  { %2113 = vadd.xlane.f32.xlu0 %v2112_v5 }
 0x5fe   :  { %v2332_v18 = vpop.permute.xlu0 %2331 }
 0x5ff   :  { %v2337_v40 = vmul.f32 %v2332_v18, %v6061_v58 }
 0x601   :  { %v2339_v41 = vsel %vm105_vm0, %v2337_v40, 0.0 }
 0x602   :  { %v2334_v61 = vpop.permute.xlu1 %2333  ;;  %2340 = vadd.xlane.f32.xlu0 %v2339_v41 }
 0x603   :  { %v2338_v19 = vmul.f32 %v2334_v61, %v6065_v30  ;;  %v3367_v30 = vadd.f32 0.0001, %v3365_v54 }
 0x605   :  { %v2342_v29 = vsel %vm105_vm0, %v2338_v19, 0.0  ;;  %4355 = vrcp.f32 %v3367_v30 }
 0x606   :  { %2343 = vadd.xlane.f32.xlu1 %v2342_v29  ;;  %4357 = vrcp.f32 %v3594_v2 }
 0x607   :  { %v2559_v10 = vpop.permute.xlu0 %2558 }
 0x608   :  { %v2564_v35 = vmul.f32 %v2559_v10, %v6069_v57 }
 0x60a   :  { %v2561_v48 = vpop.permute.xlu1 %2560  ;;  %v2566_v37 = vsel %vm105_vm0, %v2564_v35, 0.0 }
 0x60b   :  { %v2565_v55 = vmul.f32 %v2561_v48, %v6076_v24  ;;  %2567 = vadd.xlane.f32.xlu0 %v2566_v37 }
 0x60d   :  { %v2569_v58 = vsel %vm105_vm0, %v2565_v55, 0.0 }
 0x60e   :  { %2570 = vadd.xlane.f32.xlu1 %v2569_v58 }
 0x60f   :  { %v4356_v0 = vpop.eup %4355 }
 0x610   :  { %v3371_v31 = vmul.f32 %v4356_v0, %v3355_v47  ;;  %v4358_v53 = vpop.eup %4357 }
 0x611   :  { %v3598_v52 = vmul.f32 %v4358_v53, %v3582_v51 }
 0x612   :  { %v2788_v9 = vpop.permute.xlu1 %2787  ;;  %v3463_v59 = vmul.f32 %v6147_v60, %v3371_v31 }
 0x613   :  { %v2792_v22 = vmul.f32 %v2788_v9, %v6082_v26  ;;  %v2786_v57 = vpop.permute.xlu0 %2785  ;;  %v3690_v45 = vmul.f32 %v6149_v13, %v3598_v52 }
 0x614   :  { %v2791_v27 = vmul.f32 %v2786_v57, %v6084_v12  ;;  %v3235_v12 = vmul.f32 %v3230_v42, %v6133_v20  ;;  %v3462_v20 = vmul.f32 %v6145_v16, %v6140_v28 }
 0x615   :  { %v2796_v34 = vsel %vm105_vm0, %v2792_v22, 0.0 }
 0x616   :  { %2797 = vadd.xlane.f32.xlu0 %v2796_v34  ;;  %v2793_v24 = vsel %vm105_vm0, %v2791_v27, 0.0 }
 0x61a   :  { %2794 = vadd.xlane.f32.xlu0 %v2793_v24  ;;  %v3013_v6 = vpop.permute.xlu0 %3012 }
 0x61b   :  { %v3015_v56 = vpop.permute.xlu1 %3014  ;;  %v3018_v3 = vmul.f32 %v3013_v6, %v3008_v11 }
 0x61c   :  { %v3019_v26 = vmul.f32 %v3015_v56, %v3009_v17 }
 0x61d   :  { %v3020_v7 = vsel %vm105_vm0, %v3018_v3, 0.0 }
 0x61e   :  { %v3023_v32 = vsel %vm105_vm0, %v3019_v26, 0.0  ;;  %3021 = vadd.xlane.f32.xlu1 %v3020_v7  ;;  %v3240_v39 = vpop.permute.xlu0 %3239 }
 0x61f   :  { %v3242_v23 = vpop.permute.xlu1 %3241  ;;  %3024 = vadd.xlane.f32.xlu0 %v3023_v32  ;;  %v3245_v46 = vmul.f32 %v3240_v39, %v3235_v12 }
 0x620   :  { %v3246_v4 = vmul.f32 %v3242_v23, %v3236_v21 }
 0x621   :  { %v3247_v1 = vsel %vm105_vm0, %v3245_v46, 0.0 }
 0x622   :  { %v3250_v8 = vsel %vm105_vm0, %v3246_v4, 0.0  ;;  %v3467_v43 = vpop.permute.xlu0 %3466 }
 0x623   :  { %3251 = vadd.xlane.f32.xlu1 %v3250_v8  ;;  %3248 = vadd.xlane.f32.xlu0 %v3247_v1  ;;  %v3472_v33 = vmul.f32 %v3467_v43, %v3462_v20 }
 0x624   :  { %v3469_v62 = vpop.permute.xlu1 %3468 }
 0x625   :  { %v3473_v42 = vmul.f32 %v3469_v62, %v3463_v59  ;;  %v3474_v63 = vsel %vm105_vm0, %v3472_v33, 0.0 }
 0x627   :  { %v3477_v28 = vsel %vm105_vm0, %v3473_v42, 0.0  ;;  %3475 = vadd.xlane.f32.xlu0 %v3474_v63 }
 0x628   :  { %v3696_v16 = vpop.permute.xlu1 %3695  ;;  %3478 = vadd.xlane.f32.xlu1 %v3477_v28 }
 0x629   :  { %v3700_v38 = vmul.f32 %v3696_v16, %v3690_v45 }
 0x62b   :  { %v3704_v60 = vsel %vm105_vm0, %v3700_v38, 0.0 }
 0x62c   :  { %3705 = vadd.xlane.f32.xlu1 %v3704_v60 }
 0x63b   :  { %v3694_v25 = vpop.permute.xlu0 %3693 }
 0x63c   :  { %v3699_v14 = vmul.f32 %v3694_v25, %v6143_v15 }
 0x63e   :  { %v3701_v49 = vsel %vm105_vm0, %v3699_v14, 0.0 }
 0x63f   :  { %3702 = vadd.xlane.f32.xlu0 %v3701_v49 }
 0x686   :  { %v2117_v5 = vpop.xlane.xlu1 %2116 }
 0x687   :  { %v2114_v18 = vpop.xlane.xlu0 %2113 }
 0x688   :  { %v2118_v40 = vadd.f32 %v2117_v5, %v2114_v18 }
 0x68a   :  { %v2119_v41 = vrot.slane %v2118_v40, 4 }
 0x68c   :  { %v2120_v13 = vadd.f32 %v2119_v41, %v2118_v40 }
 0x68e   :  { %v2121_v61 = vrot.slane %v2120_v13, 2 }
 0x68f   :  { %v2341_v10 = vpop.xlane.xlu0 %2340 }
 0x690   :  { %v2122_v19 = vadd.f32 %v2121_v61, %v2120_v13 }
 0x692   :  { %v2123_v29 = vrot.slane %v2122_v19, 1 }
 0x693   :  { %v2344_v35 = vpop.xlane.xlu1 %2343 }
 0x694   :  { %v2124_v48 = vadd.f32 %v2123_v29, %v2122_v19  ;;  %v2345_v37 = vadd.f32 %v2344_v35, %v2341_v10 }
 0x696   :  { %2126 = vst.msk [vmem:[#allocation11] sm:$0x1] %vm2125_vm7, %v2124_v48  ;;  %v2346_v54 = vrot.slane %v2345_v37, 4 }
 0x698   :  { %v2347_v15 = vadd.f32 %v2346_v54, %v2345_v37  ;;  %v2568_v58 = vpop.xlane.xlu0 %2567 }
 0x69a   :  { %v2348_v55 = vrot.slane %v2347_v15, 2 }
 0x69b   :  { %v2571_v36 = vpop.xlane.xlu1 %2570 }
 0x69c   :  { %v2349_v30 = vadd.f32 %v2348_v55, %v2347_v15  ;;  %v2572_v9 = vadd.f32 %v2571_v36, %v2568_v58 }
 0x69e   :  { %v2350_v2 = vrot.slane %v2349_v30, 1  ;;  %v2573_v22 = vrot.slane %v2572_v9, 4 }
 0x6a0   :  { %v2351_v57 = vadd.f32 %v2350_v2, %v2349_v30  ;;  %v2574_v27 = vadd.f32 %v2573_v22, %v2572_v9 }
 0x6a2   :  { %2353 = vst.msk [vmem:[#allocation11 + $0x1] sm:$0x1] %vm2125_vm7, %v2351_v57  ;;  %v2575_v34 = vrot.slane %v2574_v27, 2 }
 0x6a3   :  { %v2798_v11 = vpop.xlane.xlu0 %2797 }
 0x6a4   :  { %v2576_v24 = vadd.f32 %v2575_v34, %v2574_v27 }
 0x6a6   :  { %v2577_v50 = vrot.slane %v2576_v24, 1 }
 0x6a7   :  { %v2795_v17 = vpop.xlane.xlu0 %2794 }
 0x6a8   :  { %v2578_v6 = vadd.f32 %v2577_v50, %v2576_v24  ;;  %v2799_v56 = vadd.f32 %v2798_v11, %v2795_v17 }
 0x6aa   :  { %2580 = vst.msk [vmem:[#allocation11 + $0x2] sm:$0x1] %vm2125_vm7, %v2578_v6  ;;  %v2800_v3 = vrot.slane %v2799_v56, 4 }
 0x6ab   :  { %v3022_v26 = vpop.xlane.xlu1 %3021 }
 0x6ac   :  { %v2801_v0 = vadd.f32 %v2800_v3, %v2799_v56  ;;  %v3025_v12 = vpop.xlane.xlu0 %3024 }
 0x6ad   :  { %v3026_v7 = vadd.f32 %v3025_v12, %v3022_v26 }
 0x6ae   :  { %v2802_v47 = vrot.slane %v2801_v0, 2 }
 0x6af   :  { %v3027_v44 = vrot.slane %v3026_v7, 4 }
 0x6b0   :  { %v2803_v21 = vadd.f32 %v2802_v47, %v2801_v0  ;;  %v3252_v32 = vpop.xlane.xlu1 %3251  ;;  %v3249_v39 = vpop.xlane.xlu0 %3248 }
 0x6b1   :  { %v3028_v23 = vadd.f32 %v3027_v44, %v3026_v7  ;;  %v3253_v46 = vadd.f32 %v3252_v32, %v3249_v39 }
 0x6b2   :  { %v2804_v31 = vrot.slane %v2803_v21, 1 }
 0x6b3   :  { %v3029_v4 = vrot.slane %v3028_v23, 2  ;;  %v3254_v53 = vrot.slane %v3253_v46, 4 }
 0x6b4   :  { %v2805_v20 = vadd.f32 %v2804_v31, %v2803_v21  ;;  %v3476_v1 = vpop.xlane.xlu0 %3475 }
 0x6b5   :  { %v3479_v51 = vpop.xlane.xlu1 %3478  ;;  %v3030_v59 = vadd.f32 %v3029_v4, %v3028_v23  ;;  %v3255_v8 = vadd.f32 %v3254_v53, %v3253_v46 }
 0x6b6   :  { %v3480_v43 = vadd.f32 %v3479_v51, %v3476_v1  ;;  %2807 = vst.msk [vmem:[#allocation11 + $0x3] sm:$0x1] %vm2125_vm7, %v2805_v20 }
 0x6b7   :  { %v3031_v33 = vrot.slane %v3030_v59, 1  ;;  %v3256_v62 = vrot.slane %v3255_v8, 2 }
 0x6b8   :  { %v3481_v52 = vrot.slane %v3480_v43, 4 }
 0x6b9   :  { %v3032_v42 = vadd.f32 %v3031_v33, %v3030_v59  ;;  %v3257_v63 = vadd.f32 %v3256_v62, %v3255_v8  ;;  %v3706_v49 = vpop.xlane.xlu1 %3705 }
 0x6ba   :  { %v3482_v45 = vadd.f32 %v3481_v52, %v3480_v43 }
 0x6bb   :  { %3034 = vst.msk [vmem:[#allocation11 + $0x4] sm:$0x1] %vm2125_vm7, %v3032_v42  ;;  %v3258_v28 = vrot.slane %v3257_v63, 1 }
 0x6bc   :  { %v3483_v16 = vrot.slane %v3482_v45, 2 }
 0x6bd   :  { %v3259_v38 = vadd.f32 %v3258_v28, %v3257_v63 }
 0x6be   :  { %v3484_v60 = vadd.f32 %v3483_v16, %v3482_v45 }
 0x6bf   :  { %3261 = vst.msk [vmem:[#allocation11 + $0x5] sm:$0x1] %vm2125_vm7, %v3259_v38 }
 0x6c0   :  { %v3485_v25 = vrot.slane %v3484_v60, 1 }
 0x6c2   :  { %v3486_v14 = vadd.f32 %v3485_v25, %v3484_v60 }
 0x6c4   :  { %3488 = vst.msk [vmem:[#allocation11 + $0x6] sm:$0x1] %vm2125_vm7, %v3486_v14 }
 0x6cc   :  { %v3703_v5 = vpop.xlane.xlu0 %3702 }
 0x6cd   :  { %v3707_v18 = vadd.f32 %v3706_v49, %v3703_v5 }
 0x6cf   :  { %v3708_v40 = vrot.slane %v3707_v18, 4 }
 0x6d1   :  { %v3709_v41 = vadd.f32 %v3708_v40, %v3707_v18 }
 0x6d3   :  { %v3710_v13 = vrot.slane %v3709_v41, 2 }
 0x6d5   :  { %v3711_v61 = vadd.f32 %v3710_v13, %v3709_v41 }
 0x6d7   :  { %v3712_v19 = vrot.slane %v3711_v61, 1 }
 0x6d9   :  { %v3713_v29 = vadd.f32 %v3712_v19, %v3711_v61 }
 0x6db   :  { %3715 = vst.msk [vmem:[#allocation11 + $0x7] sm:$0x1] %vm2125_vm7, %v3713_v29 }
 0x6dc   :  { %4458 = shalt.err (!%p4455_p8)
}
 0x6dd   :  { %s4459_s20 = scalar_lea.hbm %s6214_s4, 128 }
 0x6de   :  { %p4460_p9 = scmp.ne.s32.totalorder %s6214_s4, %s4459_s20  ;;  %p4463_p10 = scmp.lt.u32.totalorder %s4459_s20, %s6214_s4 }
 0x6e0   :  { %p4465_p11 = pnand %p4463_p10, %p4460_p9 }
 0x6e2   :  { %4468 = shalt.err (!%p4465_p11)
}
 0x6e3   :  { %s4490_s25 = smov 1  }
 0x6e4   :  { %3727 = dma.vmem_to_hbm [thread:$0]  %s3722_s15, 128, %s6214_s4, [#allocation5], %s4483_s3, %s4483_s3, %s4490_s25  }
 0x6e5   :  { %4475 = dma.done.wait [#allocation5], 128  }
 0x6e6   :  { %4476 = vsyncadd [#allocation5], 4294967168 }
 0x6e7   :  { %3731 = vsyncpa [#allocation4], 1 }
 0x6e8   :  { %3732 = vsyncpa [#allocation7], 1 }
 0x6e9   :  { %3733 = vsyncpa [#allocation10], 1 }
 0x6ea   :  { %3734 = vsyncpa [#allocation5], 1 }

</bundles_post_ra>
